<compile_context>
chip_gen: v5e
topology: v5e:2x2
jax: 0.10.0
libtpu: 0.0.40
codegen_flags: <defaults>
</compile_context>

<pallas_src>
import math

import jax
import jax.numpy as jnp
from jax import lax
from jax.experimental import pallas as pl
from jax.experimental.pallas import tpu as pltpu

# ---------------- configuration (small, synthetic) ----------------
B = 2            # batch
S = 8            # CLIP image tokens per batch element
W = 32           # transformer width
H = 4            # attention heads
L = 2            # residual attention blocks
NT = 4           # learnable style tokens
C = 16           # output context dim
MLP = 4 * W      # MLP hidden dim
DH = W // H      # head dim
T = S + NT       # tokens per batch element after style concat
R_IMG = B * S    # 16 image rows (grouped layout)
R_STY = B * NT   # 8  style rows
R = R_IMG + R_STY   # 24 total rows -- exact multiple of 8 sublanes
C_PAD = 128      # lane-dense padded output width
EPS = 1e-5       # LayerNorm eps (PyTorch default)
NEG = -1e30      # additive mask value (finite -> no inf-inf / NaN risk)

# packed-vector row layout (all rows are W wide)
V_STYLE = 0                       # NT rows of style tokens
V_LNPRE_G = NT + 0
V_LNPRE_B = NT + 1
V_LNPOST_G = NT + 2
V_LNPOST_B = NT + 3
V_LAYER0 = NT + 4                 # per-layer base
V_PER_LAYER = 9                   # ln1_g ln1_b ln2_g ln2_b bq bk bv bo bpm
N_VEC = V_LAYER0 + L * V_PER_LAYER


# ---------------- in-kernel helpers ----------------
def _ln(x, g, b):
    mu = jnp.mean(x, axis=-1, keepdims=True)
    var = jnp.mean(jnp.square(x - mu), axis=-1, keepdims=True)
    return (x - mu) * lax.rsqrt(var + EPS) * g + b


# ---------------- Pallas kernel: whole batch in one invocation ----------------
def style_adapter_kernel(x_ref, vec_ref, bfc_ref, wqkv_ref, wo_ref, wfc_ref,
                         wpm_ref, proj_ref, out_ref):
    f32 = jnp.float32
    vec = vec_ref[...]                                     # (N_VEC, W): all tiny vectors
    bfc = bfc_ref[...]                                     # (L, MLP)

    def vrow(i):                                           # (1, W) broadcast row
        return vec[i:i + 1, :]

    # ---- grouped activation slab: [all image rows ; all style rows] ----
    x_img = x_ref[...].reshape(R_IMG, W)                   # row = b*S + s (aligned reshape)
    style = vec[V_STYLE:V_STYLE + NT, :]                   # shared learnable style tokens
    x_sty = jnp.concatenate([style] * B, axis=0)           # row = b*NT + n
    x = jnp.concatenate([x_img, x_sty], axis=0)            # (R, W), offsets multiples of 8

    # ---- static block-diagonal batch mask: 0 same-batch, NEG cross-batch ----
    rid = lax.broadcasted_iota(jnp.int32, (R, R), 0)
    cid = lax.broadcasted_iota(jnp.int32, (R, R), 1)

    def batch_of(idx):                                     # comparisons only (no int div)
        bi = jnp.zeros_like(idx)
        bs = jnp.zeros_like(idx)
        for bb in range(1, B):
            bi = bi + (idx >= bb * S).astype(jnp.int32)
            bs = bs + (idx >= R_IMG + bb * NT).astype(jnp.int32)
        return jnp.where(idx < R_IMG, bi, bs)

    mask = jnp.where(batch_of(rid) == batch_of(cid), 0.0, NEG).astype(f32)   # (R, R)

    # ---- ln_pre ----
    x = _ln(x, vrow(V_LNPRE_G), vrow(V_LNPRE_B))

    for l in range(L):
        base = V_LAYER0 + l * V_PER_LAYER

        # ---- pre-LN multi-head self-attention + residual ----
        h1 = _ln(x, vrow(base + 0), vrow(base + 1))
        # lane-aligned q/k/v: three full-width dots; 1/sqrt(dh) pre-folded into wq & bq
        q = jnp.dot(h1, wqkv_ref[3 * l + 0], preferred_element_type=f32) + vrow(base + 4)
        k = jnp.dot(h1, wqkv_ref[3 * l + 1], preferred_element_type=f32) + vrow(base + 5)
        v = jnp.dot(h1, wqkv_ref[3 * l + 2], preferred_element_type=f32) + vrow(base + 6)
        wo_l = wo_ref[l]                                   # (W, W), loaded per layer
        acc = jnp.zeros((R, W), f32)
        for hh in range(H):                                # heads only; batch handled by mask
            c0 = hh * DH
            qh = q[:, c0:c0 + DH]
            kh = k[:, c0:c0 + DH]
            vh = v[:, c0:c0 + DH]
            s = lax.dot_general(qh, kh, (((1,), (1,)), ((), ())),
                                preferred_element_type=f32) + mask           # (R, R)
            m = jnp.max(s, axis=-1, keepdims=True)
            e = jnp.exp(s - m)
            p = e / jnp.sum(e, axis=-1, keepdims=True)     # exact normalization
            oh = jnp.dot(p, vh, preferred_element_type=f32)                  # (R, DH)
            # fold the output projection per head (sublane-aligned weight row slice)
            acc = acc + jnp.dot(oh, wo_l[c0:c0 + DH, :], preferred_element_type=f32)
        x = x + acc + vrow(base + 7)

        # ---- pre-LN MLP (QuickGELU) + residual ----
        h2 = _ln(x, vrow(base + 2), vrow(base + 3))
        h2 = jnp.dot(h2, wfc_ref[l], preferred_element_type=f32) + bfc[l:l + 1, :]
        h2 = h2 * jax.nn.sigmoid(1.702 * h2)               # QuickGELU
        h2 = jnp.dot(h2, wpm_ref[l], preferred_element_type=f32) + vrow(base + 8)
        x = x + h2

    # ---- ln_post on the style rows (one aligned slice), lane-dense padded projection ----
    y = _ln(x[R_IMG:R, :], vrow(V_LNPOST_G), vrow(V_LNPOST_B))               # (B*NT, W)
    out_ref[...] = jnp.dot(y, proj_ref[...], preferred_element_type=f32)     # (8, 128)


# ---------------- wrapper ----------------
def _full_spec(shape):
    rank = len(shape)
    return pl.BlockSpec(shape, lambda i, _r=rank: (0,) * _r)


def style_adapter_forward(x, packed):
    assert x.shape == (B, S, W)
    in_arrays = [x, packed["vec"], packed["bfc"], packed["wqkv"], packed["wo"],
                 packed["wfc"], packed["wpm"], packed["proj"]]
    in_specs = [_full_spec(a.shape) for a in in_arrays]

    out = pl.pallas_call(
        style_adapter_kernel,
        out_shape=jax.ShapeDtypeStruct((R_STY, C_PAD), jnp.float32),
        grid_spec=pltpu.PrefetchScalarGridSpec(
            num_scalar_prefetch=0,
            grid=(1,),                      # single TC sweep (whole problem fits VMEM)
            in_specs=in_specs,
            out_specs=_full_spec((R_STY, C_PAD)),
        ),
        compiler_params=pltpu.CompilerParams(dimension_semantics=("arbitrary",)),
    )(*in_arrays)
    return out[:, :C].reshape(B, NT, C)


# ---------------- one-time host-side parameter packing ----------------
def pack_inputs(p):
    f32 = jnp.float32
    scale = 1.0 / math.sqrt(DH)

    rows = [p["style_emb"][0, i] for i in range(NT)]
    rows += [p["lnpre_g"][0], p["lnpre_b"][0], p["lnpost_g"][0], p["lnpost_b"][0]]
    for l in range(L):
        bq = p["bqkv"][l, 0 * W:1 * W] * scale             # fold 1/sqrt(dh) into q bias
        bk = p["bqkv"][l, 1 * W:2 * W]
        bv = p["bqkv"][l, 2 * W:3 * W]
        rows += [p["ln1_g"][l], p["ln1_b"][l], p["ln2_g"][l], p["ln2_b"][l],
                 bq, bk, bv, p["bo"][l], p["bpm"][l]]
    vec = jnp.stack(rows, axis=0).astype(f32)              # (N_VEC, W)
    assert vec.shape == (N_VEC, W)

    wq = p["wqkv"][:, :, 0 * W:1 * W] * scale              # fold 1/sqrt(dh) into q weights
    wk = p["wqkv"][:, :, 1 * W:2 * W]
    wv = p["wqkv"][:, :, 2 * W:3 * W]
    wqkv = jnp.stack([wq, wk, wv], axis=1).reshape(L * 3, W, W)   # index = 3*l + {q,k,v}

    proj_pad = jnp.zeros((W, C_PAD), f32).at[:, :C].set(p["proj"])  # lane-dense store

    return {"vec": vec, "bfc": p["bfc"], "wqkv": wqkv, "wo": p["wo"],
            "wfc": p["wfc"], "wpm": p["wpm"], "proj": proj_pad}


# ---------------- deterministic parameter init (natural shapes) ----------------
def init_params(key):
    ks = jax.random.split(key, 10)
    sc = 0.02
    f32 = jnp.float32
    return {
        "style_emb": jax.random.normal(ks[0], (1, NT, W), f32) * (W ** -0.5),
        "lnpre_g": jnp.ones((1, W), f32),
        "lnpre_b": jnp.zeros((1, W), f32),
        "ln1_g": jnp.ones((L, W), f32),
        "ln1_b": jnp.zeros((L, W), f32),
        "ln2_g": jnp.ones((L, W), f32),
        "ln2_b": jnp.zeros((L, W), f32),
        "wqkv": jax.random.normal(ks[1], (L, W, 3 * W), f32) * sc,   # (in, out)
        "bqkv": jax.random.normal(ks[2], (L, 3 * W), f32) * sc,
        "wo": jax.random.normal(ks[3], (L, W, W), f32) * sc,
        "bo": jax.random.normal(ks[4], (L, W), f32) * sc,
        "wfc": jax.random.normal(ks[5], (L, W, MLP), f32) * sc,
        "bfc": jax.random.normal(ks[6], (L, MLP), f32) * sc,
        "wpm": jax.random.normal(ks[7], (L, MLP, W), f32) * sc,
        "bpm": jax.random.normal(ks[8], (L, W), f32) * sc,
        "lnpost_g": jnp.ones((1, W), f32),
        "lnpost_b": jnp.zeros((1, W), f32),
        "proj": jax.random.normal(ks[9], (W, C), f32) * (W ** -0.5),
    }


# ---------------- pure-JAX reference (for correctness check) ----------------
def reference_forward(x, p):
    xb = jnp.concatenate(
        [x, jnp.broadcast_to(p["style_emb"], (x.shape[0], NT, W))], axis=1)

    def ln(v, g, b):
        mu = v.mean(-1, keepdims=True)
        var = ((v - mu) ** 2).mean(-1, keepdims=True)
        return (v - mu) / jnp.sqrt(var + EPS) * g + b

    xb = ln(xb, p["lnpre_g"][0], p["lnpre_b"][0])
    bsz = x.shape[0]
    for l in range(L):
        h = ln(xb, p["ln1_g"][l], p["ln1_b"][l])
        qkv = h @ p["wqkv"][l] + p["bqkv"][l]
        q, k, v = jnp.split(qkv, 3, axis=-1)
        q = q.reshape(bsz, T, H, DH)
        k = k.reshape(bsz, T, H, DH)
        v = v.reshape(bsz, T, H, DH)
        s = jnp.einsum('bthd,bshd->bhts', q, k) / math.sqrt(DH)
        pm = jax.nn.softmax(s, axis=-1)
        o = jnp.einsum('bhts,bshd->bthd', pm, v).reshape(bsz, T, W)
        xb = xb + (o @ p["wo"][l] + p["bo"][l])
        h = ln(xb, p["ln2_g"][l], p["ln2_b"][l])
        h = h @ p["wfc"][l] + p["bfc"][l]
        h = h * jax.nn.sigmoid(1.702 * h)
        xb = xb + (h @ p["wpm"][l] + p["bpm"][l])
    y = ln(xb[:, -NT:, :], p["lnpost_g"][0], p["lnpost_b"][0])
    return y @ p["proj"]


if __name__ == "__main__":
    key = jax.random.PRNGKey(0)
    kx, kp = jax.random.split(key)
    x = jax.random.normal(kx, (B, S, W), jnp.float32)   # CLIP image tokens (B, S, W)
    params = init_params(kp)
    packed = pack_inputs(params)                        # one-time packing (not per call)

    out = style_adapter_forward(x, packed)
    out = jax.block_until_ready(out)

    ref = jax.block_until_ready(reference_forward(x, params))
    assert out.shape == (B, NT, C)
    assert bool(jnp.all(jnp.isfinite(out)))
    max_err = float(jnp.max(jnp.abs(out - ref)))
    assert max_err < 1e-3, f"mismatch vs reference: {max_err}"

    print("KERNEL_OK")
</pallas_src>

<mosaic_0001>
module attributes {stable_mosaic.version = 11 : i64} {
  func.func @style_adapter_kernel(%arg0: i32, %arg1: memref<2x8x32xf32, #tpu.memory_space<vmem>>, %arg2: memref<26x32xf32, #tpu.memory_space<vmem>>, %arg3: memref<2x128xf32, #tpu.memory_space<vmem>>, %arg4: memref<6x32x32xf32, #tpu.memory_space<vmem>>, %arg5: memref<2x32x32xf32, #tpu.memory_space<vmem>>, %arg6: memref<2x32x128xf32, #tpu.memory_space<vmem>>, %arg7: memref<2x128x32xf32, #tpu.memory_space<vmem>>, %arg8: memref<32x128xf32, #tpu.memory_space<vmem>>, %arg9: memref<8x128xf32, #tpu.memory_space<vmem>>) attributes {dimension_semantics = [#tpu.dimension_semantics<arbitrary>], iteration_bounds = array<i64: 1>, scalar_prefetch = 0 : i64, scratch_operands = 0 : i64, tpu.core_type = #tpu.core_type<tc>, window_params = [{pipeline_mode = #tpu.pipeline_mode<synchronous>, transform_indices = @transform_0, window_bounds = array<i64: 2, 8, 32>}, {pipeline_mode = #tpu.pipeline_mode<synchronous>, transform_indices = @transform_1, window_bounds = array<i64: 26, 32>}, {pipeline_mode = #tpu.pipeline_mode<synchronous>, transform_indices = @transform_2, window_bounds = array<i64: 2, 128>}, {pipeline_mode = #tpu.pipeline_mode<synchronous>, transform_indices = @transform_3, window_bounds = array<i64: 6, 32, 32>}, {pipeline_mode = #tpu.pipeline_mode<synchronous>, transform_indices = @transform_4, window_bounds = array<i64: 2, 32, 32>}, {pipeline_mode = #tpu.pipeline_mode<synchronous>, transform_indices = @transform_5, window_bounds = array<i64: 2, 32, 128>}, {pipeline_mode = #tpu.pipeline_mode<synchronous>, transform_indices = @transform_6, window_bounds = array<i64: 2, 128, 32>}, {pipeline_mode = #tpu.pipeline_mode<synchronous>, transform_indices = @transform_7, window_bounds = array<i64: 32, 128>}, {pipeline_mode = #tpu.pipeline_mode<synchronous>, transform_indices = @transform_8, window_bounds = array<i64: 8, 128>}]} {
    %c0 = arith.constant 0 : index
    %c0_0 = arith.constant 0 : index
    %0 = vector.load %arg2[%c0, %c0_0] : memref<26x32xf32, #tpu.memory_space<vmem>>, vector<26x32xf32>
    %c0_1 = arith.constant 0 : index
    %c0_2 = arith.constant 0 : index
    %1 = vector.load %arg3[%c0_1, %c0_2] : memref<2x128xf32, #tpu.memory_space<vmem>>, vector<2x128xf32>
    %c0_3 = arith.constant 0 : index
    %c0_4 = arith.constant 0 : index
    %c0_5 = arith.constant 0 : index
    %2 = vector.load %arg1[%c0_3, %c0_4, %c0_5] : memref<2x8x32xf32, #tpu.memory_space<vmem>>, vector<2x8x32xf32>
    %3 = vector.shape_cast %2 : vector<2x8x32xf32> to vector<16x32xf32>
    %4 = vector.extract_strided_slice %0 {offsets = [0, 0], sizes = [4, 32], strides = [1, 1]} : vector<26x32xf32> to vector<4x32xf32>
    %5 = tpu.concatenate %4, %4 in 0 : vector<4x32xf32>, vector<4x32xf32> -> vector<8x32xf32>
    %6 = tpu.concatenate %3, %5 in 0 : vector<16x32xf32>, vector<8x32xf32> -> vector<24x32xf32>
    %7 = tpu.iota {dimensions = array<i32: 0>} : vector<24x24xi32>
    %8 = tpu.iota {dimensions = array<i32: 1>} : vector<24x24xi32>
    %c0_i32 = arith.constant 0 : i32
    %9 = vector.broadcast %c0_i32 : i32 to vector<24x24xi32>
    %c0_i32_6 = arith.constant 0 : i32
    %10 = vector.broadcast %c0_i32_6 : i32 to vector<24x24xi32>
    %c8_i32 = arith.constant 8 : i32
    %11 = vector.broadcast %c8_i32 : i32 to vector<24x24xi32>
    %12 = arith.cmpi sge, %7, %11 : vector<24x24xi32>
    %13 = arith.extui %12 : vector<24x24xi1> to vector<24x24xi32>
    %14 = arith.addi %9, %13 : vector<24x24xi32>
    %c20_i32 = arith.constant 20 : i32
    %15 = vector.broadcast %c20_i32 : i32 to vector<24x24xi32>
    %16 = arith.cmpi sge, %7, %15 : vector<24x24xi32>
    %17 = arith.extui %16 : vector<24x24xi1> to vector<24x24xi32>
    %18 = arith.addi %10, %17 : vector<24x24xi32>
    %c16_i32 = arith.constant 16 : i32
    %19 = vector.broadcast %c16_i32 : i32 to vector<24x24xi32>
    %20 = arith.cmpi slt, %7, %19 : vector<24x24xi32>
    %21 = arith.select %20, %14, %18 : vector<24x24xi1>, vector<24x24xi32>
    %c0_i32_7 = arith.constant 0 : i32
    %22 = vector.broadcast %c0_i32_7 : i32 to vector<24x24xi32>
    %c0_i32_8 = arith.constant 0 : i32
    %23 = vector.broadcast %c0_i32_8 : i32 to vector<24x24xi32>
    %c8_i32_9 = arith.constant 8 : i32
    %24 = vector.broadcast %c8_i32_9 : i32 to vector<24x24xi32>
    %25 = arith.cmpi sge, %8, %24 : vector<24x24xi32>
    %26 = arith.extui %25 : vector<24x24xi1> to vector<24x24xi32>
    %27 = arith.addi %22, %26 : vector<24x24xi32>
    %c20_i32_10 = arith.constant 20 : i32
    %28 = vector.broadcast %c20_i32_10 : i32 to vector<24x24xi32>
    %29 = arith.cmpi sge, %8, %28 : vector<24x24xi32>
    %30 = arith.extui %29 : vector<24x24xi1> to vector<24x24xi32>
    %31 = arith.addi %23, %30 : vector<24x24xi32>
    %c16_i32_11 = arith.constant 16 : i32
    %32 = vector.broadcast %c16_i32_11 : i32 to vector<24x24xi32>
    %33 = arith.cmpi slt, %8, %32 : vector<24x24xi32>
    %34 = arith.select %33, %27, %31 : vector<24x24xi1>, vector<24x24xi32>
    %35 = arith.cmpi eq, %21, %34 : vector<24x24xi32>
    %cst = arith.constant 0.000000e+00 : f32
    %cst_12 = arith.constant -1.000000e+30 : f32
    %36 = vector.broadcast %cst : f32 to vector<24x24xf32>
    %37 = vector.broadcast %cst_12 : f32 to vector<24x24xf32>
    %38 = arith.select %35, %36, %37 : vector<24x24xi1>, vector<24x24xf32>
    %39 = vector.extract_strided_slice %0 {offsets = [4, 0], sizes = [1, 32], strides = [1, 1]} : vector<26x32xf32> to vector<1x32xf32>
    %40 = vector.extract_strided_slice %0 {offsets = [5, 0], sizes = [1, 32], strides = [1, 1]} : vector<26x32xf32> to vector<1x32xf32>
    %cst_13 = arith.constant dense<0.000000e+00> : vector<24xf32>
    %41 = vector.multi_reduction <add>, %6, %cst_13 [1] : vector<24x32xf32> to vector<24xf32>
    %42 = vector.shape_cast %41 : vector<24xf32> to vector<24x1xf32>
    %cst_14 = arith.constant 3.200000e+01 : f32
    %43 = vector.broadcast %cst_14 : f32 to vector<24x1xf32>
    %44 = arith.divf %42, %43 : vector<24x1xf32>
    %45 = vector.broadcast %44 : vector<24x1xf32> to vector<24x32xf32>
    %46 = arith.subf %6, %45 : vector<24x32xf32>
    %47 = arith.mulf %46, %46 : vector<24x32xf32>
    %cst_15 = arith.constant dense<0.000000e+00> : vector<24xf32>
    %48 = vector.multi_reduction <add>, %47, %cst_15 [1] : vector<24x32xf32> to vector<24xf32>
    %49 = vector.shape_cast %48 : vector<24xf32> to vector<24x1xf32>
    %cst_16 = arith.constant 3.200000e+01 : f32
    %50 = vector.broadcast %cst_16 : f32 to vector<24x1xf32>
    %51 = arith.divf %49, %50 : vector<24x1xf32>
    %52 = vector.broadcast %44 : vector<24x1xf32> to vector<24x32xf32>
    %53 = arith.subf %6, %52 : vector<24x32xf32>
    %cst_17 = arith.constant 9.99999974E-6 : f32
    %54 = vector.broadcast %cst_17 : f32 to vector<24x1xf32>
    %55 = arith.addf %51, %54 : vector<24x1xf32>
    %56 = math.rsqrt %55 : vector<24x1xf32>
    %57 = vector.broadcast %56 : vector<24x1xf32> to vector<24x32xf32>
    %58 = arith.mulf %53, %57 : vector<24x32xf32>
    %59 = vector.broadcast %39 : vector<1x32xf32> to vector<24x32xf32>
    %60 = arith.mulf %58, %59 : vector<24x32xf32>
    %61 = vector.broadcast %40 : vector<1x32xf32> to vector<24x32xf32>
    %62 = arith.addf %60, %61 : vector<24x32xf32>
    %63 = vector.extract_strided_slice %0 {offsets = [8, 0], sizes = [1, 32], strides = [1, 1]} : vector<26x32xf32> to vector<1x32xf32>
    %64 = vector.extract_strided_slice %0 {offsets = [9, 0], sizes = [1, 32], strides = [1, 1]} : vector<26x32xf32> to vector<1x32xf32>
    %cst_18 = arith.constant dense<0.000000e+00> : vector<24xf32>
    %65 = vector.multi_reduction <add>, %62, %cst_18 [1] : vector<24x32xf32> to vector<24xf32>
    %66 = vector.shape_cast %65 : vector<24xf32> to vector<24x1xf32>
    %cst_19 = arith.constant 3.200000e+01 : f32
    %67 = vector.broadcast %cst_19 : f32 to vector<24x1xf32>
    %68 = arith.divf %66, %67 : vector<24x1xf32>
    %69 = vector.broadcast %68 : vector<24x1xf32> to vector<24x32xf32>
    %70 = arith.subf %62, %69 : vector<24x32xf32>
    %71 = arith.mulf %70, %70 : vector<24x32xf32>
    %cst_20 = arith.constant dense<0.000000e+00> : vector<24xf32>
    %72 = vector.multi_reduction <add>, %71, %cst_20 [1] : vector<24x32xf32> to vector<24xf32>
    %73 = vector.shape_cast %72 : vector<24xf32> to vector<24x1xf32>
    %cst_21 = arith.constant 3.200000e+01 : f32
    %74 = vector.broadcast %cst_21 : f32 to vector<24x1xf32>
    %75 = arith.divf %73, %74 : vector<24x1xf32>
    %76 = vector.broadcast %68 : vector<24x1xf32> to vector<24x32xf32>
    %77 = arith.subf %62, %76 : vector<24x32xf32>
    %cst_22 = arith.constant 9.99999974E-6 : f32
    %78 = vector.broadcast %cst_22 : f32 to vector<24x1xf32>
    %79 = arith.addf %75, %78 : vector<24x1xf32>
    %80 = math.rsqrt %79 : vector<24x1xf32>
    %81 = vector.broadcast %80 : vector<24x1xf32> to vector<24x32xf32>
    %82 = arith.mulf %77, %81 : vector<24x32xf32>
    %83 = vector.broadcast %63 : vector<1x32xf32> to vector<24x32xf32>
    %84 = arith.mulf %82, %83 : vector<24x32xf32>
    %85 = vector.broadcast %64 : vector<1x32xf32> to vector<24x32xf32>
    %86 = arith.addf %84, %85 : vector<24x32xf32>
    %c0_23 = arith.constant 0 : index
    %c0_24 = arith.constant 0 : index
    %c0_25 = arith.constant 0 : index
    %87 = vector.load %arg4[%c0_23, %c0_24, %c0_25] : memref<6x32x32xf32, #tpu.memory_space<vmem>>, vector<1x32x32xf32>
    %88 = vector.shape_cast %87 : vector<1x32x32xf32> to vector<32x32xf32>
    %cst_26 = arith.constant dense<0.000000e+00> : vector<24x32xf32>
    %89 = tpu.matmul %86, %88, %cst_26 {dimension_numbers = #tpu.dot_dimension_numbers<[1], [0], [0], [1], [0, 0, 1, 1], [], []>} : vector<24x32xf32>, vector<32x32xf32>, vector<24x32xf32> -> vector<24x32xf32>
    %90 = vector.extract_strided_slice %0 {offsets = [12, 0], sizes = [1, 32], strides = [1, 1]} : vector<26x32xf32> to vector<1x32xf32>
    %91 = vector.broadcast %90 : vector<1x32xf32> to vector<24x32xf32>
    %92 = arith.addf %89, %91 : vector<24x32xf32>
    %c1 = arith.constant 1 : index
    %c0_27 = arith.constant 0 : index
    %c0_28 = arith.constant 0 : index
    %93 = vector.load %arg4[%c1, %c0_27, %c0_28] : memref<6x32x32xf32, #tpu.memory_space<vmem>>, vector<1x32x32xf32>
    %94 = vector.shape_cast %93 : vector<1x32x32xf32> to vector<32x32xf32>
    %cst_29 = arith.constant dense<0.000000e+00> : vector<24x32xf32>
    %95 = tpu.matmul %86, %94, %cst_29 {dimension_numbers = #tpu.dot_dimension_numbers<[1], [0], [0], [1], [0, 0, 1, 1], [], []>} : vector<24x32xf32>, vector<32x32xf32>, vector<24x32xf32> -> vector<24x32xf32>
    %96 = vector.extract_strided_slice %0 {offsets = [13, 0], sizes = [1, 32], strides = [1, 1]} : vector<26x32xf32> to vector<1x32xf32>
    %97 = vector.broadcast %96 : vector<1x32xf32> to vector<24x32xf32>
    %98 = arith.addf %95, %97 : vector<24x32xf32>
    %c2 = arith.constant 2 : index
    %c0_30 = arith.constant 0 : index
    %c0_31 = arith.constant 0 : index
    %99 = vector.load %arg4[%c2, %c0_30, %c0_31] : memref<6x32x32xf32, #tpu.memory_space<vmem>>, vector<1x32x32xf32>
    %100 = vector.shape_cast %99 : vector<1x32x32xf32> to vector<32x32xf32>
    %cst_32 = arith.constant dense<0.000000e+00> : vector<24x32xf32>
    %101 = tpu.matmul %86, %100, %cst_32 {dimension_numbers = #tpu.dot_dimension_numbers<[1], [0], [0], [1], [0, 0, 1, 1], [], []>} : vector<24x32xf32>, vector<32x32xf32>, vector<24x32xf32> -> vector<24x32xf32>
    %102 = vector.extract_strided_slice %0 {offsets = [14, 0], sizes = [1, 32], strides = [1, 1]} : vector<26x32xf32> to vector<1x32xf32>
    %103 = vector.broadcast %102 : vector<1x32xf32> to vector<24x32xf32>
    %104 = arith.addf %101, %103 : vector<24x32xf32>
    %c0_33 = arith.constant 0 : index
    %c0_34 = arith.constant 0 : index
    %c0_35 = arith.constant 0 : index
    %105 = vector.load %arg5[%c0_33, %c0_34, %c0_35] : memref<2x32x32xf32, #tpu.memory_space<vmem>>, vector<1x32x32xf32>
    %106 = vector.shape_cast %105 : vector<1x32x32xf32> to vector<32x32xf32>
    %cst_36 = arith.constant 0.000000e+00 : f32
    %107 = vector.broadcast %cst_36 : f32 to vector<24x32xf32>
    %108 = vector.extract_strided_slice %92 {offsets = [0, 0], sizes = [24, 8], strides = [1, 1]} : vector<24x32xf32> to vector<24x8xf32>
    %109 = vector.extract_strided_slice %98 {offsets = [0, 0], sizes = [24, 8], strides = [1, 1]} : vector<24x32xf32> to vector<24x8xf32>
    %110 = vector.extract_strided_slice %104 {offsets = [0, 0], sizes = [24, 8], strides = [1, 1]} : vector<24x32xf32> to vector<24x8xf32>
    %cst_37 = arith.constant dense<0.000000e+00> : vector<24x24xf32>
    %111 = tpu.matmul %108, %109, %cst_37 {dimension_numbers = #tpu.dot_dimension_numbers<[1], [1], [0], [0], [0, 0, 1, 0], [], []>} : vector<24x8xf32>, vector<24x8xf32>, vector<24x24xf32> -> vector<24x24xf32>
    %112 = arith.addf %111, %38 : vector<24x24xf32>
    %cst_38 = arith.constant dense<0xFF800000> : vector<24xf32>
    %113 = vector.multi_reduction <maximumf>, %112, %cst_38 [1] : vector<24x24xf32> to vector<24xf32>
    %114 = vector.shape_cast %113 : vector<24xf32> to vector<24x1xf32>
    %115 = vector.broadcast %114 : vector<24x1xf32> to vector<24x24xf32>
    %116 = arith.subf %112, %115 : vector<24x24xf32>
    %117 = math.exp %116 : vector<24x24xf32>
    %cst_39 = arith.constant dense<0.000000e+00> : vector<24xf32>
    %118 = vector.multi_reduction <add>, %117, %cst_39 [1] : vector<24x24xf32> to vector<24xf32>
    %119 = vector.shape_cast %118 : vector<24xf32> to vector<24x1xf32>
    %120 = vector.broadcast %119 : vector<24x1xf32> to vector<24x24xf32>
    %121 = arith.divf %117, %120 : vector<24x24xf32>
    %cst_40 = arith.constant dense<0.000000e+00> : vector<24x8xf32>
    %122 = tpu.matmul %121, %110, %cst_40 {dimension_numbers = #tpu.dot_dimension_numbers<[1], [0], [0], [1], [0, 0, 1, 1], [], []>} : vector<24x24xf32>, vector<24x8xf32>, vector<24x8xf32> -> vector<24x8xf32>
    %123 = vector.extract_strided_slice %106 {offsets = [0, 0], sizes = [8, 32], strides = [1, 1]} : vector<32x32xf32> to vector<8x32xf32>
    %cst_41 = arith.constant dense<0.000000e+00> : vector<24x32xf32>
    %124 = tpu.matmul %122, %123, %cst_41 {dimension_numbers = #tpu.dot_dimension_numbers<[1], [0], [0], [1], [0, 0, 1, 1], [], []>} : vector<24x8xf32>, vector<8x32xf32>, vector<24x32xf32> -> vector<24x32xf32>
    %125 = arith.addf %107, %124 : vector<24x32xf32>
    %126 = vector.extract_strided_slice %92 {offsets = [0, 8], sizes = [24, 8], strides = [1, 1]} : vector<24x32xf32> to vector<24x8xf32>
    %127 = vector.extract_strided_slice %98 {offsets = [0, 8], sizes = [24, 8], strides = [1, 1]} : vector<24x32xf32> to vector<24x8xf32>
    %128 = vector.extract_strided_slice %104 {offsets = [0, 8], sizes = [24, 8], strides = [1, 1]} : vector<24x32xf32> to vector<24x8xf32>
    %cst_42 = arith.constant dense<0.000000e+00> : vector<24x24xf32>
    %129 = tpu.matmul %126, %127, %cst_42 {dimension_numbers = #tpu.dot_dimension_numbers<[1], [1], [0], [0], [0, 0, 1, 0], [], []>} : vector<24x8xf32>, vector<24x8xf32>, vector<24x24xf32> -> vector<24x24xf32>
    %130 = arith.addf %129, %38 : vector<24x24xf32>
    %cst_43 = arith.constant dense<0xFF800000> : vector<24xf32>
    %131 = vector.multi_reduction <maximumf>, %130, %cst_43 [1] : vector<24x24xf32> to vector<24xf32>
    %132 = vector.shape_cast %131 : vector<24xf32> to vector<24x1xf32>
    %133 = vector.broadcast %132 : vector<24x1xf32> to vector<24x24xf32>
    %134 = arith.subf %130, %133 : vector<24x24xf32>
    %135 = math.exp %134 : vector<24x24xf32>
    %cst_44 = arith.constant dense<0.000000e+00> : vector<24xf32>
    %136 = vector.multi_reduction <add>, %135, %cst_44 [1] : vector<24x24xf32> to vector<24xf32>
    %137 = vector.shape_cast %136 : vector<24xf32> to vector<24x1xf32>
    %138 = vector.broadcast %137 : vector<24x1xf32> to vector<24x24xf32>
    %139 = arith.divf %135, %138 : vector<24x24xf32>
    %cst_45 = arith.constant dense<0.000000e+00> : vector<24x8xf32>
    %140 = tpu.matmul %139, %128, %cst_45 {dimension_numbers = #tpu.dot_dimension_numbers<[1], [0], [0], [1], [0, 0, 1, 1], [], []>} : vector<24x24xf32>, vector<24x8xf32>, vector<24x8xf32> -> vector<24x8xf32>
    %141 = vector.extract_strided_slice %106 {offsets = [8, 0], sizes = [8, 32], strides = [1, 1]} : vector<32x32xf32> to vector<8x32xf32>
    %cst_46 = arith.constant dense<0.000000e+00> : vector<24x32xf32>
    %142 = tpu.matmul %140, %141, %cst_46 {dimension_numbers = #tpu.dot_dimension_numbers<[1], [0], [0], [1], [0, 0, 1, 1], [], []>} : vector<24x8xf32>, vector<8x32xf32>, vector<24x32xf32> -> vector<24x32xf32>
    %143 = arith.addf %125, %142 : vector<24x32xf32>
    %144 = vector.extract_strided_slice %92 {offsets = [0, 16], sizes = [24, 8], strides = [1, 1]} : vector<24x32xf32> to vector<24x8xf32>
    %145 = vector.extract_strided_slice %98 {offsets = [0, 16], sizes = [24, 8], strides = [1, 1]} : vector<24x32xf32> to vector<24x8xf32>
    %146 = vector.extract_strided_slice %104 {offsets = [0, 16], sizes = [24, 8], strides = [1, 1]} : vector<24x32xf32> to vector<24x8xf32>
    %cst_47 = arith.constant dense<0.000000e+00> : vector<24x24xf32>
    %147 = tpu.matmul %144, %145, %cst_47 {dimension_numbers = #tpu.dot_dimension_numbers<[1], [1], [0], [0], [0, 0, 1, 0], [], []>} : vector<24x8xf32>, vector<24x8xf32>, vector<24x24xf32> -> vector<24x24xf32>
    %148 = arith.addf %147, %38 : vector<24x24xf32>
    %cst_48 = arith.constant dense<0xFF800000> : vector<24xf32>
    %149 = vector.multi_reduction <maximumf>, %148, %cst_48 [1] : vector<24x24xf32> to vector<24xf32>
    %150 = vector.shape_cast %149 : vector<24xf32> to vector<24x1xf32>
    %151 = vector.broadcast %150 : vector<24x1xf32> to vector<24x24xf32>
    %152 = arith.subf %148, %151 : vector<24x24xf32>
    %153 = math.exp %152 : vector<24x24xf32>
    %cst_49 = arith.constant dense<0.000000e+00> : vector<24xf32>
    %154 = vector.multi_reduction <add>, %153, %cst_49 [1] : vector<24x24xf32> to vector<24xf32>
    %155 = vector.shape_cast %154 : vector<24xf32> to vector<24x1xf32>
    %156 = vector.broadcast %155 : vector<24x1xf32> to vector<24x24xf32>
    %157 = arith.divf %153, %156 : vector<24x24xf32>
    %cst_50 = arith.constant dense<0.000000e+00> : vector<24x8xf32>
    %158 = tpu.matmul %157, %146, %cst_50 {dimension_numbers = #tpu.dot_dimension_numbers<[1], [0], [0], [1], [0, 0, 1, 1], [], []>} : vector<24x24xf32>, vector<24x8xf32>, vector<24x8xf32> -> vector<24x8xf32>
    %159 = vector.extract_strided_slice %106 {offsets = [16, 0], sizes = [8, 32], strides = [1, 1]} : vector<32x32xf32> to vector<8x32xf32>
    %cst_51 = arith.constant dense<0.000000e+00> : vector<24x32xf32>
    %160 = tpu.matmul %158, %159, %cst_51 {dimension_numbers = #tpu.dot_dimension_numbers<[1], [0], [0], [1], [0, 0, 1, 1], [], []>} : vector<24x8xf32>, vector<8x32xf32>, vector<24x32xf32> -> vector<24x32xf32>
    %161 = arith.addf %143, %160 : vector<24x32xf32>
    %162 = vector.extract_strided_slice %92 {offsets = [0, 24], sizes = [24, 8], strides = [1, 1]} : vector<24x32xf32> to vector<24x8xf32>
    %163 = vector.extract_strided_slice %98 {offsets = [0, 24], sizes = [24, 8], strides = [1, 1]} : vector<24x32xf32> to vector<24x8xf32>
    %164 = vector.extract_strided_slice %104 {offsets = [0, 24], sizes = [24, 8], strides = [1, 1]} : vector<24x32xf32> to vector<24x8xf32>
    %cst_52 = arith.constant dense<0.000000e+00> : vector<24x24xf32>
    %165 = tpu.matmul %162, %163, %cst_52 {dimension_numbers = #tpu.dot_dimension_numbers<[1], [1], [0], [0], [0, 0, 1, 0], [], []>} : vector<24x8xf32>, vector<24x8xf32>, vector<24x24xf32> -> vector<24x24xf32>
    %166 = arith.addf %165, %38 : vector<24x24xf32>
    %cst_53 = arith.constant dense<0xFF800000> : vector<24xf32>
    %167 = vector.multi_reduction <maximumf>, %166, %cst_53 [1] : vector<24x24xf32> to vector<24xf32>
    %168 = vector.shape_cast %167 : vector<24xf32> to vector<24x1xf32>
    %169 = vector.broadcast %168 : vector<24x1xf32> to vector<24x24xf32>
    %170 = arith.subf %166, %169 : vector<24x24xf32>
    %171 = math.exp %170 : vector<24x24xf32>
    %cst_54 = arith.constant dense<0.000000e+00> : vector<24xf32>
    %172 = vector.multi_reduction <add>, %171, %cst_54 [1] : vector<24x24xf32> to vector<24xf32>
    %173 = vector.shape_cast %172 : vector<24xf32> to vector<24x1xf32>
    %174 = vector.broadcast %173 : vector<24x1xf32> to vector<24x24xf32>
    %175 = arith.divf %171, %174 : vector<24x24xf32>
    %cst_55 = arith.constant dense<0.000000e+00> : vector<24x8xf32>
    %176 = tpu.matmul %175, %164, %cst_55 {dimension_numbers = #tpu.dot_dimension_numbers<[1], [0], [0], [1], [0, 0, 1, 1], [], []>} : vector<24x24xf32>, vector<24x8xf32>, vector<24x8xf32> -> vector<24x8xf32>
    %177 = vector.extract_strided_slice %106 {offsets = [24, 0], sizes = [8, 32], strides = [1, 1]} : vector<32x32xf32> to vector<8x32xf32>
    %cst_56 = arith.constant dense<0.000000e+00> : vector<24x32xf32>
    %178 = tpu.matmul %176, %177, %cst_56 {dimension_numbers = #tpu.dot_dimension_numbers<[1], [0], [0], [1], [0, 0, 1, 1], [], []>} : vector<24x8xf32>, vector<8x32xf32>, vector<24x32xf32> -> vector<24x32xf32>
    %179 = arith.addf %161, %178 : vector<24x32xf32>
    %180 = arith.addf %62, %179 : vector<24x32xf32>
    %181 = vector.extract_strided_slice %0 {offsets = [15, 0], sizes = [1, 32], strides = [1, 1]} : vector<26x32xf32> to vector<1x32xf32>
    %182 = vector.broadcast %181 : vector<1x32xf32> to vector<24x32xf32>
    %183 = arith.addf %180, %182 : vector<24x32xf32>
    %184 = vector.extract_strided_slice %0 {offsets = [10, 0], sizes = [1, 32], strides = [1, 1]} : vector<26x32xf32> to vector<1x32xf32>
    %185 = vector.extract_strided_slice %0 {offsets = [11, 0], sizes = [1, 32], strides = [1, 1]} : vector<26x32xf32> to vector<1x32xf32>
    %cst_57 = arith.constant dense<0.000000e+00> : vector<24xf32>
    %186 = vector.multi_reduction <add>, %183, %cst_57 [1] : vector<24x32xf32> to vector<24xf32>
    %187 = vector.shape_cast %186 : vector<24xf32> to vector<24x1xf32>
    %cst_58 = arith.constant 3.200000e+01 : f32
    %188 = vector.broadcast %cst_58 : f32 to vector<24x1xf32>
    %189 = arith.divf %187, %188 : vector<24x1xf32>
    %190 = vector.broadcast %189 : vector<24x1xf32> to vector<24x32xf32>
    %191 = arith.subf %183, %190 : vector<24x32xf32>
    %192 = arith.mulf %191, %191 : vector<24x32xf32>
    %cst_59 = arith.constant dense<0.000000e+00> : vector<24xf32>
    %193 = vector.multi_reduction <add>, %192, %cst_59 [1] : vector<24x32xf32> to vector<24xf32>
    %194 = vector.shape_cast %193 : vector<24xf32> to vector<24x1xf32>
    %cst_60 = arith.constant 3.200000e+01 : f32
    %195 = vector.broadcast %cst_60 : f32 to vector<24x1xf32>
    %196 = arith.divf %194, %195 : vector<24x1xf32>
    %197 = vector.broadcast %189 : vector<24x1xf32> to vector<24x32xf32>
    %198 = arith.subf %183, %197 : vector<24x32xf32>
    %cst_61 = arith.constant 9.99999974E-6 : f32
    %199 = vector.broadcast %cst_61 : f32 to vector<24x1xf32>
    %200 = arith.addf %196, %199 : vector<24x1xf32>
    %201 = math.rsqrt %200 : vector<24x1xf32>
    %202 = vector.broadcast %201 : vector<24x1xf32> to vector<24x32xf32>
    %203 = arith.mulf %198, %202 : vector<24x32xf32>
    %204 = vector.broadcast %184 : vector<1x32xf32> to vector<24x32xf32>
    %205 = arith.mulf %203, %204 : vector<24x32xf32>
    %206 = vector.broadcast %185 : vector<1x32xf32> to vector<24x32xf32>
    %207 = arith.addf %205, %206 : vector<24x32xf32>
    %c0_62 = arith.constant 0 : index
    %c0_63 = arith.constant 0 : index
    %c0_64 = arith.constant 0 : index
    %208 = vector.load %arg6[%c0_62, %c0_63, %c0_64] : memref<2x32x128xf32, #tpu.memory_space<vmem>>, vector<1x32x128xf32>
    %209 = vector.shape_cast %208 : vector<1x32x128xf32> to vector<32x128xf32>
    %cst_65 = arith.constant dense<0.000000e+00> : vector<24x128xf32>
    %210 = tpu.matmul %207, %209, %cst_65 {dimension_numbers = #tpu.dot_dimension_numbers<[1], [0], [0], [1], [0, 0, 1, 1], [], []>} : vector<24x32xf32>, vector<32x128xf32>, vector<24x128xf32> -> vector<24x128xf32>
    %211 = vector.extract_strided_slice %1 {offsets = [0, 0], sizes = [1, 128], strides = [1, 1]} : vector<2x128xf32> to vector<1x128xf32>
    %212 = vector.broadcast %211 : vector<1x128xf32> to vector<24x128xf32>
    %213 = arith.addf %210, %212 : vector<24x128xf32>
    %cst_66 = arith.constant 1.702000e+00 : f32
    %214 = vector.broadcast %cst_66 : f32 to vector<24x128xf32>
    %215 = arith.mulf %214, %213 : vector<24x128xf32>
    %216 = arith.negf %215 : vector<24x128xf32>
    %217 = math.exp %216 : vector<24x128xf32>
    %cst_67 = arith.constant 1.000000e+00 : f32
    %218 = vector.broadcast %cst_67 : f32 to vector<24x128xf32>
    %219 = arith.addf %218, %217 : vector<24x128xf32>
    %220 = arith.divf %218, %219 : vector<24x128xf32>
    %221 = arith.mulf %213, %220 : vector<24x128xf32>
    %c0_68 = arith.constant 0 : index
    %c0_69 = arith.constant 0 : index
    %c0_70 = arith.constant 0 : index
    %222 = vector.load %arg7[%c0_68, %c0_69, %c0_70] : memref<2x128x32xf32, #tpu.memory_space<vmem>>, vector<1x128x32xf32>
    %223 = vector.shape_cast %222 : vector<1x128x32xf32> to vector<128x32xf32>
    %cst_71 = arith.constant dense<0.000000e+00> : vector<24x32xf32>
    %224 = tpu.matmul %221, %223, %cst_71 {dimension_numbers = #tpu.dot_dimension_numbers<[1], [0], [0], [1], [0, 0, 1, 1], [], []>} : vector<24x128xf32>, vector<128x32xf32>, vector<24x32xf32> -> vector<24x32xf32>
    %225 = vector.extract_strided_slice %0 {offsets = [16, 0], sizes = [1, 32], strides = [1, 1]} : vector<26x32xf32> to vector<1x32xf32>
    %226 = vector.broadcast %225 : vector<1x32xf32> to vector<24x32xf32>
    %227 = arith.addf %224, %226 : vector<24x32xf32>
    %228 = arith.addf %183, %227 : vector<24x32xf32>
    %229 = vector.extract_strided_slice %0 {offsets = [17, 0], sizes = [1, 32], strides = [1, 1]} : vector<26x32xf32> to vector<1x32xf32>
    %230 = vector.extract_strided_slice %0 {offsets = [18, 0], sizes = [1, 32], strides = [1, 1]} : vector<26x32xf32> to vector<1x32xf32>
    %cst_72 = arith.constant dense<0.000000e+00> : vector<24xf32>
    %231 = vector.multi_reduction <add>, %228, %cst_72 [1] : vector<24x32xf32> to vector<24xf32>
    %232 = vector.shape_cast %231 : vector<24xf32> to vector<24x1xf32>
    %cst_73 = arith.constant 3.200000e+01 : f32
    %233 = vector.broadcast %cst_73 : f32 to vector<24x1xf32>
    %234 = arith.divf %232, %233 : vector<24x1xf32>
    %235 = vector.broadcast %234 : vector<24x1xf32> to vector<24x32xf32>
    %236 = arith.subf %228, %235 : vector<24x32xf32>
    %237 = arith.mulf %236, %236 : vector<24x32xf32>
    %cst_74 = arith.constant dense<0.000000e+00> : vector<24xf32>
    %238 = vector.multi_reduction <add>, %237, %cst_74 [1] : vector<24x32xf32> to vector<24xf32>
    %239 = vector.shape_cast %238 : vector<24xf32> to vector<24x1xf32>
    %cst_75 = arith.constant 3.200000e+01 : f32
    %240 = vector.broadcast %cst_75 : f32 to vector<24x1xf32>
    %241 = arith.divf %239, %240 : vector<24x1xf32>
    %242 = vector.broadcast %234 : vector<24x1xf32> to vector<24x32xf32>
    %243 = arith.subf %228, %242 : vector<24x32xf32>
    %cst_76 = arith.constant 9.99999974E-6 : f32
    %244 = vector.broadcast %cst_76 : f32 to vector<24x1xf32>
    %245 = arith.addf %241, %244 : vector<24x1xf32>
    %246 = math.rsqrt %245 : vector<24x1xf32>
    %247 = vector.broadcast %246 : vector<24x1xf32> to vector<24x32xf32>
    %248 = arith.mulf %243, %247 : vector<24x32xf32>
    %249 = vector.broadcast %229 : vector<1x32xf32> to vector<24x32xf32>
    %250 = arith.mulf %248, %249 : vector<24x32xf32>
    %251 = vector.broadcast %230 : vector<1x32xf32> to vector<24x32xf32>
    %252 = arith.addf %250, %251 : vector<24x32xf32>
    %c3 = arith.constant 3 : index
    %c0_77 = arith.constant 0 : index
    %c0_78 = arith.constant 0 : index
    %253 = vector.load %arg4[%c3, %c0_77, %c0_78] : memref<6x32x32xf32, #tpu.memory_space<vmem>>, vector<1x32x32xf32>
    %254 = vector.shape_cast %253 : vector<1x32x32xf32> to vector<32x32xf32>
    %cst_79 = arith.constant dense<0.000000e+00> : vector<24x32xf32>
    %255 = tpu.matmul %252, %254, %cst_79 {dimension_numbers = #tpu.dot_dimension_numbers<[1], [0], [0], [1], [0, 0, 1, 1], [], []>} : vector<24x32xf32>, vector<32x32xf32>, vector<24x32xf32> -> vector<24x32xf32>
    %256 = vector.extract_strided_slice %0 {offsets = [21, 0], sizes = [1, 32], strides = [1, 1]} : vector<26x32xf32> to vector<1x32xf32>
    %257 = vector.broadcast %256 : vector<1x32xf32> to vector<24x32xf32>
    %258 = arith.addf %255, %257 : vector<24x32xf32>
    %c4 = arith.constant 4 : index
    %c0_80 = arith.constant 0 : index
    %c0_81 = arith.constant 0 : index
    %259 = vector.load %arg4[%c4, %c0_80, %c0_81] : memref<6x32x32xf32, #tpu.memory_space<vmem>>, vector<1x32x32xf32>
    %260 = vector.shape_cast %259 : vector<1x32x32xf32> to vector<32x32xf32>
    %cst_82 = arith.constant dense<0.000000e+00> : vector<24x32xf32>
    %261 = tpu.matmul %252, %260, %cst_82 {dimension_numbers = #tpu.dot_dimension_numbers<[1], [0], [0], [1], [0, 0, 1, 1], [], []>} : vector<24x32xf32>, vector<32x32xf32>, vector<24x32xf32> -> vector<24x32xf32>
    %262 = vector.extract_strided_slice %0 {offsets = [22, 0], sizes = [1, 32], strides = [1, 1]} : vector<26x32xf32> to vector<1x32xf32>
    %263 = vector.broadcast %262 : vector<1x32xf32> to vector<24x32xf32>
    %264 = arith.addf %261, %263 : vector<24x32xf32>
    %c5 = arith.constant 5 : index
    %c0_83 = arith.constant 0 : index
    %c0_84 = arith.constant 0 : index
    %265 = vector.load %arg4[%c5, %c0_83, %c0_84] : memref<6x32x32xf32, #tpu.memory_space<vmem>>, vector<1x32x32xf32>
    %266 = vector.shape_cast %265 : vector<1x32x32xf32> to vector<32x32xf32>
    %cst_85 = arith.constant dense<0.000000e+00> : vector<24x32xf32>
    %267 = tpu.matmul %252, %266, %cst_85 {dimension_numbers = #tpu.dot_dimension_numbers<[1], [0], [0], [1], [0, 0, 1, 1], [], []>} : vector<24x32xf32>, vector<32x32xf32>, vector<24x32xf32> -> vector<24x32xf32>
    %268 = vector.extract_strided_slice %0 {offsets = [23, 0], sizes = [1, 32], strides = [1, 1]} : vector<26x32xf32> to vector<1x32xf32>
    %269 = vector.broadcast %268 : vector<1x32xf32> to vector<24x32xf32>
    %270 = arith.addf %267, %269 : vector<24x32xf32>
    %c1_86 = arith.constant 1 : index
    %c0_87 = arith.constant 0 : index
    %c0_88 = arith.constant 0 : index
    %271 = vector.load %arg5[%c1_86, %c0_87, %c0_88] : memref<2x32x32xf32, #tpu.memory_space<vmem>>, vector<1x32x32xf32>
    %272 = vector.shape_cast %271 : vector<1x32x32xf32> to vector<32x32xf32>
    %cst_89 = arith.constant 0.000000e+00 : f32
    %273 = vector.broadcast %cst_89 : f32 to vector<24x32xf32>
    %274 = vector.extract_strided_slice %258 {offsets = [0, 0], sizes = [24, 8], strides = [1, 1]} : vector<24x32xf32> to vector<24x8xf32>
    %275 = vector.extract_strided_slice %264 {offsets = [0, 0], sizes = [24, 8], strides = [1, 1]} : vector<24x32xf32> to vector<24x8xf32>
    %276 = vector.extract_strided_slice %270 {offsets = [0, 0], sizes = [24, 8], strides = [1, 1]} : vector<24x32xf32> to vector<24x8xf32>
    %cst_90 = arith.constant dense<0.000000e+00> : vector<24x24xf32>
    %277 = tpu.matmul %274, %275, %cst_90 {dimension_numbers = #tpu.dot_dimension_numbers<[1], [1], [0], [0], [0, 0, 1, 0], [], []>} : vector<24x8xf32>, vector<24x8xf32>, vector<24x24xf32> -> vector<24x24xf32>
    %278 = arith.addf %277, %38 : vector<24x24xf32>
    %cst_91 = arith.constant dense<0xFF800000> : vector<24xf32>
    %279 = vector.multi_reduction <maximumf>, %278, %cst_91 [1] : vector<24x24xf32> to vector<24xf32>
    %280 = vector.shape_cast %279 : vector<24xf32> to vector<24x1xf32>
    %281 = vector.broadcast %280 : vector<24x1xf32> to vector<24x24xf32>
    %282 = arith.subf %278, %281 : vector<24x24xf32>
    %283 = math.exp %282 : vector<24x24xf32>
    %cst_92 = arith.constant dense<0.000000e+00> : vector<24xf32>
    %284 = vector.multi_reduction <add>, %283, %cst_92 [1] : vector<24x24xf32> to vector<24xf32>
    %285 = vector.shape_cast %284 : vector<24xf32> to vector<24x1xf32>
    %286 = vector.broadcast %285 : vector<24x1xf32> to vector<24x24xf32>
    %287 = arith.divf %283, %286 : vector<24x24xf32>
    %cst_93 = arith.constant dense<0.000000e+00> : vector<24x8xf32>
    %288 = tpu.matmul %287, %276, %cst_93 {dimension_numbers = #tpu.dot_dimension_numbers<[1], [0], [0], [1], [0, 0, 1, 1], [], []>} : vector<24x24xf32>, vector<24x8xf32>, vector<24x8xf32> -> vector<24x8xf32>
    %289 = vector.extract_strided_slice %272 {offsets = [0, 0], sizes = [8, 32], strides = [1, 1]} : vector<32x32xf32> to vector<8x32xf32>
    %cst_94 = arith.constant dense<0.000000e+00> : vector<24x32xf32>
    %290 = tpu.matmul %288, %289, %cst_94 {dimension_numbers = #tpu.dot_dimension_numbers<[1], [0], [0], [1], [0, 0, 1, 1], [], []>} : vector<24x8xf32>, vector<8x32xf32>, vector<24x32xf32> -> vector<24x32xf32>
    %291 = arith.addf %273, %290 : vector<24x32xf32>
    %292 = vector.extract_strided_slice %258 {offsets = [0, 8], sizes = [24, 8], strides = [1, 1]} : vector<24x32xf32> to vector<24x8xf32>
    %293 = vector.extract_strided_slice %264 {offsets = [0, 8], sizes = [24, 8], strides = [1, 1]} : vector<24x32xf32> to vector<24x8xf32>
    %294 = vector.extract_strided_slice %270 {offsets = [0, 8], sizes = [24, 8], strides = [1, 1]} : vector<24x32xf32> to vector<24x8xf32>
    %cst_95 = arith.constant dense<0.000000e+00> : vector<24x24xf32>
    %295 = tpu.matmul %292, %293, %cst_95 {dimension_numbers = #tpu.dot_dimension_numbers<[1], [1], [0], [0], [0, 0, 1, 0], [], []>} : vector<24x8xf32>, vector<24x8xf32>, vector<24x24xf32> -> vector<24x24xf32>
    %296 = arith.addf %295, %38 : vector<24x24xf32>
    %cst_96 = arith.constant dense<0xFF800000> : vector<24xf32>
    %297 = vector.multi_reduction <maximumf>, %296, %cst_96 [1] : vector<24x24xf32> to vector<24xf32>
    %298 = vector.shape_cast %297 : vector<24xf32> to vector<24x1xf32>
    %299 = vector.broadcast %298 : vector<24x1xf32> to vector<24x24xf32>
    %300 = arith.subf %296, %299 : vector<24x24xf32>
    %301 = math.exp %300 : vector<24x24xf32>
    %cst_97 = arith.constant dense<0.000000e+00> : vector<24xf32>
    %302 = vector.multi_reduction <add>, %301, %cst_97 [1] : vector<24x24xf32> to vector<24xf32>
    %303 = vector.shape_cast %302 : vector<24xf32> to vector<24x1xf32>
    %304 = vector.broadcast %303 : vector<24x1xf32> to vector<24x24xf32>
    %305 = arith.divf %301, %304 : vector<24x24xf32>
    %cst_98 = arith.constant dense<0.000000e+00> : vector<24x8xf32>
    %306 = tpu.matmul %305, %294, %cst_98 {dimension_numbers = #tpu.dot_dimension_numbers<[1], [0], [0], [1], [0, 0, 1, 1], [], []>} : vector<24x24xf32>, vector<24x8xf32>, vector<24x8xf32> -> vector<24x8xf32>
    %307 = vector.extract_strided_slice %272 {offsets = [8, 0], sizes = [8, 32], strides = [1, 1]} : vector<32x32xf32> to vector<8x32xf32>
    %cst_99 = arith.constant dense<0.000000e+00> : vector<24x32xf32>
    %308 = tpu.matmul %306, %307, %cst_99 {dimension_numbers = #tpu.dot_dimension_numbers<[1], [0], [0], [1], [0, 0, 1, 1], [], []>} : vector<24x8xf32>, vector<8x32xf32>, vector<24x32xf32> -> vector<24x32xf32>
    %309 = arith.addf %291, %308 : vector<24x32xf32>
    %310 = vector.extract_strided_slice %258 {offsets = [0, 16], sizes = [24, 8], strides = [1, 1]} : vector<24x32xf32> to vector<24x8xf32>
    %311 = vector.extract_strided_slice %264 {offsets = [0, 16], sizes = [24, 8], strides = [1, 1]} : vector<24x32xf32> to vector<24x8xf32>
    %312 = vector.extract_strided_slice %270 {offsets = [0, 16], sizes = [24, 8], strides = [1, 1]} : vector<24x32xf32> to vector<24x8xf32>
    %cst_100 = arith.constant dense<0.000000e+00> : vector<24x24xf32>
    %313 = tpu.matmul %310, %311, %cst_100 {dimension_numbers = #tpu.dot_dimension_numbers<[1], [1], [0], [0], [0, 0, 1, 0], [], []>} : vector<24x8xf32>, vector<24x8xf32>, vector<24x24xf32> -> vector<24x24xf32>
    %314 = arith.addf %313, %38 : vector<24x24xf32>
    %cst_101 = arith.constant dense<0xFF800000> : vector<24xf32>
    %315 = vector.multi_reduction <maximumf>, %314, %cst_101 [1] : vector<24x24xf32> to vector<24xf32>
    %316 = vector.shape_cast %315 : vector<24xf32> to vector<24x1xf32>
    %317 = vector.broadcast %316 : vector<24x1xf32> to vector<24x24xf32>
    %318 = arith.subf %314, %317 : vector<24x24xf32>
    %319 = math.exp %318 : vector<24x24xf32>
    %cst_102 = arith.constant dense<0.000000e+00> : vector<24xf32>
    %320 = vector.multi_reduction <add>, %319, %cst_102 [1] : vector<24x24xf32> to vector<24xf32>
    %321 = vector.shape_cast %320 : vector<24xf32> to vector<24x1xf32>
    %322 = vector.broadcast %321 : vector<24x1xf32> to vector<24x24xf32>
    %323 = arith.divf %319, %322 : vector<24x24xf32>
    %cst_103 = arith.constant dense<0.000000e+00> : vector<24x8xf32>
    %324 = tpu.matmul %323, %312, %cst_103 {dimension_numbers = #tpu.dot_dimension_numbers<[1], [0], [0], [1], [0, 0, 1, 1], [], []>} : vector<24x24xf32>, vector<24x8xf32>, vector<24x8xf32> -> vector<24x8xf32>
    %325 = vector.extract_strided_slice %272 {offsets = [16, 0], sizes = [8, 32], strides = [1, 1]} : vector<32x32xf32> to vector<8x32xf32>
    %cst_104 = arith.constant dense<0.000000e+00> : vector<24x32xf32>
    %326 = tpu.matmul %324, %325, %cst_104 {dimension_numbers = #tpu.dot_dimension_numbers<[1], [0], [0], [1], [0, 0, 1, 1], [], []>} : vector<24x8xf32>, vector<8x32xf32>, vector<24x32xf32> -> vector<24x32xf32>
    %327 = arith.addf %309, %326 : vector<24x32xf32>
    %328 = vector.extract_strided_slice %258 {offsets = [0, 24], sizes = [24, 8], strides = [1, 1]} : vector<24x32xf32> to vector<24x8xf32>
    %329 = vector.extract_strided_slice %264 {offsets = [0, 24], sizes = [24, 8], strides = [1, 1]} : vector<24x32xf32> to vector<24x8xf32>
    %330 = vector.extract_strided_slice %270 {offsets = [0, 24], sizes = [24, 8], strides = [1, 1]} : vector<24x32xf32> to vector<24x8xf32>
    %cst_105 = arith.constant dense<0.000000e+00> : vector<24x24xf32>
    %331 = tpu.matmul %328, %329, %cst_105 {dimension_numbers = #tpu.dot_dimension_numbers<[1], [1], [0], [0], [0, 0, 1, 0], [], []>} : vector<24x8xf32>, vector<24x8xf32>, vector<24x24xf32> -> vector<24x24xf32>
    %332 = arith.addf %331, %38 : vector<24x24xf32>
    %cst_106 = arith.constant dense<0xFF800000> : vector<24xf32>
    %333 = vector.multi_reduction <maximumf>, %332, %cst_106 [1] : vector<24x24xf32> to vector<24xf32>
    %334 = vector.shape_cast %333 : vector<24xf32> to vector<24x1xf32>
    %335 = vector.broadcast %334 : vector<24x1xf32> to vector<24x24xf32>
    %336 = arith.subf %332, %335 : vector<24x24xf32>
    %337 = math.exp %336 : vector<24x24xf32>
    %cst_107 = arith.constant dense<0.000000e+00> : vector<24xf32>
    %338 = vector.multi_reduction <add>, %337, %cst_107 [1] : vector<24x24xf32> to vector<24xf32>
    %339 = vector.shape_cast %338 : vector<24xf32> to vector<24x1xf32>
    %340 = vector.broadcast %339 : vector<24x1xf32> to vector<24x24xf32>
    %341 = arith.divf %337, %340 : vector<24x24xf32>
    %cst_108 = arith.constant dense<0.000000e+00> : vector<24x8xf32>
    %342 = tpu.matmul %341, %330, %cst_108 {dimension_numbers = #tpu.dot_dimension_numbers<[1], [0], [0], [1], [0, 0, 1, 1], [], []>} : vector<24x24xf32>, vector<24x8xf32>, vector<24x8xf32> -> vector<24x8xf32>
    %343 = vector.extract_strided_slice %272 {offsets = [24, 0], sizes = [8, 32], strides = [1, 1]} : vector<32x32xf32> to vector<8x32xf32>
    %cst_109 = arith.constant dense<0.000000e+00> : vector<24x32xf32>
    %344 = tpu.matmul %342, %343, %cst_109 {dimension_numbers = #tpu.dot_dimension_numbers<[1], [0], [0], [1], [0, 0, 1, 1], [], []>} : vector<24x8xf32>, vector<8x32xf32>, vector<24x32xf32> -> vector<24x32xf32>
    %345 = arith.addf %327, %344 : vector<24x32xf32>
    %346 = arith.addf %228, %345 : vector<24x32xf32>
    %347 = vector.extract_strided_slice %0 {offsets = [24, 0], sizes = [1, 32], strides = [1, 1]} : vector<26x32xf32> to vector<1x32xf32>
    %348 = vector.broadcast %347 : vector<1x32xf32> to vector<24x32xf32>
    %349 = arith.addf %346, %348 : vector<24x32xf32>
    %350 = vector.extract_strided_slice %0 {offsets = [19, 0], sizes = [1, 32], strides = [1, 1]} : vector<26x32xf32> to vector<1x32xf32>
    %351 = vector.extract_strided_slice %0 {offsets = [20, 0], sizes = [1, 32], strides = [1, 1]} : vector<26x32xf32> to vector<1x32xf32>
    %cst_110 = arith.constant dense<0.000000e+00> : vector<24xf32>
    %352 = vector.multi_reduction <add>, %349, %cst_110 [1] : vector<24x32xf32> to vector<24xf32>
    %353 = vector.shape_cast %352 : vector<24xf32> to vector<24x1xf32>
    %cst_111 = arith.constant 3.200000e+01 : f32
    %354 = vector.broadcast %cst_111 : f32 to vector<24x1xf32>
    %355 = arith.divf %353, %354 : vector<24x1xf32>
    %356 = vector.broadcast %355 : vector<24x1xf32> to vector<24x32xf32>
    %357 = arith.subf %349, %356 : vector<24x32xf32>
    %358 = arith.mulf %357, %357 : vector<24x32xf32>
    %cst_112 = arith.constant dense<0.000000e+00> : vector<24xf32>
    %359 = vector.multi_reduction <add>, %358, %cst_112 [1] : vector<24x32xf32> to vector<24xf32>
    %360 = vector.shape_cast %359 : vector<24xf32> to vector<24x1xf32>
    %cst_113 = arith.constant 3.200000e+01 : f32
    %361 = vector.broadcast %cst_113 : f32 to vector<24x1xf32>
    %362 = arith.divf %360, %361 : vector<24x1xf32>
    %363 = vector.broadcast %355 : vector<24x1xf32> to vector<24x32xf32>
    %364 = arith.subf %349, %363 : vector<24x32xf32>
    %cst_114 = arith.constant 9.99999974E-6 : f32
    %365 = vector.broadcast %cst_114 : f32 to vector<24x1xf32>
    %366 = arith.addf %362, %365 : vector<24x1xf32>
    %367 = math.rsqrt %366 : vector<24x1xf32>
    %368 = vector.broadcast %367 : vector<24x1xf32> to vector<24x32xf32>
    %369 = arith.mulf %364, %368 : vector<24x32xf32>
    %370 = vector.broadcast %350 : vector<1x32xf32> to vector<24x32xf32>
    %371 = arith.mulf %369, %370 : vector<24x32xf32>
    %372 = vector.broadcast %351 : vector<1x32xf32> to vector<24x32xf32>
    %373 = arith.addf %371, %372 : vector<24x32xf32>
    %c1_115 = arith.constant 1 : index
    %c0_116 = arith.constant 0 : index
    %c0_117 = arith.constant 0 : index
    %374 = vector.load %arg6[%c1_115, %c0_116, %c0_117] : memref<2x32x128xf32, #tpu.memory_space<vmem>>, vector<1x32x128xf32>
    %375 = vector.shape_cast %374 : vector<1x32x128xf32> to vector<32x128xf32>
    %cst_118 = arith.constant dense<0.000000e+00> : vector<24x128xf32>
    %376 = tpu.matmul %373, %375, %cst_118 {dimension_numbers = #tpu.dot_dimension_numbers<[1], [0], [0], [1], [0, 0, 1, 1], [], []>} : vector<24x32xf32>, vector<32x128xf32>, vector<24x128xf32> -> vector<24x128xf32>
    %377 = vector.extract_strided_slice %1 {offsets = [1, 0], sizes = [1, 128], strides = [1, 1]} : vector<2x128xf32> to vector<1x128xf32>
    %378 = vector.broadcast %377 : vector<1x128xf32> to vector<24x128xf32>
    %379 = arith.addf %376, %378 : vector<24x128xf32>
    %cst_119 = arith.constant 1.702000e+00 : f32
    %380 = vector.broadcast %cst_119 : f32 to vector<24x128xf32>
    %381 = arith.mulf %380, %379 : vector<24x128xf32>
    %382 = arith.negf %381 : vector<24x128xf32>
    %383 = math.exp %382 : vector<24x128xf32>
    %cst_120 = arith.constant 1.000000e+00 : f32
    %384 = vector.broadcast %cst_120 : f32 to vector<24x128xf32>
    %385 = arith.addf %384, %383 : vector<24x128xf32>
    %386 = arith.divf %384, %385 : vector<24x128xf32>
    %387 = arith.mulf %379, %386 : vector<24x128xf32>
    %c1_121 = arith.constant 1 : index
    %c0_122 = arith.constant 0 : index
    %c0_123 = arith.constant 0 : index
    %388 = vector.load %arg7[%c1_121, %c0_122, %c0_123] : memref<2x128x32xf32, #tpu.memory_space<vmem>>, vector<1x128x32xf32>
    %389 = vector.shape_cast %388 : vector<1x128x32xf32> to vector<128x32xf32>
    %cst_124 = arith.constant dense<0.000000e+00> : vector<24x32xf32>
    %390 = tpu.matmul %387, %389, %cst_124 {dimension_numbers = #tpu.dot_dimension_numbers<[1], [0], [0], [1], [0, 0, 1, 1], [], []>} : vector<24x128xf32>, vector<128x32xf32>, vector<24x32xf32> -> vector<24x32xf32>
    %391 = vector.extract_strided_slice %0 {offsets = [25, 0], sizes = [1, 32], strides = [1, 1]} : vector<26x32xf32> to vector<1x32xf32>
    %392 = vector.broadcast %391 : vector<1x32xf32> to vector<24x32xf32>
    %393 = arith.addf %390, %392 : vector<24x32xf32>
    %394 = arith.addf %349, %393 : vector<24x32xf32>
    %395 = vector.extract_strided_slice %394 {offsets = [16, 0], sizes = [8, 32], strides = [1, 1]} : vector<24x32xf32> to vector<8x32xf32>
    %396 = vector.extract_strided_slice %0 {offsets = [6, 0], sizes = [1, 32], strides = [1, 1]} : vector<26x32xf32> to vector<1x32xf32>
    %397 = vector.extract_strided_slice %0 {offsets = [7, 0], sizes = [1, 32], strides = [1, 1]} : vector<26x32xf32> to vector<1x32xf32>
    %cst_125 = arith.constant dense<0.000000e+00> : vector<8xf32>
    %398 = vector.multi_reduction <add>, %395, %cst_125 [1] : vector<8x32xf32> to vector<8xf32>
    %399 = vector.shape_cast %398 : vector<8xf32> to vector<8x1xf32>
    %cst_126 = arith.constant 3.200000e+01 : f32
    %400 = vector.broadcast %cst_126 : f32 to vector<8x1xf32>
    %401 = arith.divf %399, %400 : vector<8x1xf32>
    %402 = vector.broadcast %401 : vector<8x1xf32> to vector<8x32xf32>
    %403 = arith.subf %395, %402 : vector<8x32xf32>
    %404 = arith.mulf %403, %403 : vector<8x32xf32>
    %cst_127 = arith.constant dense<0.000000e+00> : vector<8xf32>
    %405 = vector.multi_reduction <add>, %404, %cst_127 [1] : vector<8x32xf32> to vector<8xf32>
    %406 = vector.shape_cast %405 : vector<8xf32> to vector<8x1xf32>
    %cst_128 = arith.constant 3.200000e+01 : f32
    %407 = vector.broadcast %cst_128 : f32 to vector<8x1xf32>
    %408 = arith.divf %406, %407 : vector<8x1xf32>
    %409 = vector.broadcast %401 : vector<8x1xf32> to vector<8x32xf32>
    %410 = arith.subf %395, %409 : vector<8x32xf32>
    %cst_129 = arith.constant 9.99999974E-6 : f32
    %411 = vector.broadcast %cst_129 : f32 to vector<8x1xf32>
    %412 = arith.addf %408, %411 : vector<8x1xf32>
    %413 = math.rsqrt %412 : vector<8x1xf32>
    %414 = vector.broadcast %413 : vector<8x1xf32> to vector<8x32xf32>
    %415 = arith.mulf %410, %414 : vector<8x32xf32>
    %416 = vector.broadcast %396 : vector<1x32xf32> to vector<8x32xf32>
    %417 = arith.mulf %415, %416 : vector<8x32xf32>
    %418 = vector.broadcast %397 : vector<1x32xf32> to vector<8x32xf32>
    %419 = arith.addf %417, %418 : vector<8x32xf32>
    %c0_130 = arith.constant 0 : index
    %c0_131 = arith.constant 0 : index
    %420 = vector.load %arg8[%c0_130, %c0_131] : memref<32x128xf32, #tpu.memory_space<vmem>>, vector<32x128xf32>
    %cst_132 = arith.constant dense<0.000000e+00> : vector<8x128xf32>
    %421 = tpu.matmul %419, %420, %cst_132 {dimension_numbers = #tpu.dot_dimension_numbers<[1], [0], [0], [1], [0, 0, 1, 1], [], []>} : vector<8x32xf32>, vector<32x128xf32>, vector<8x128xf32> -> vector<8x128xf32>
    %c0_133 = arith.constant 0 : index
    %c0_134 = arith.constant 0 : index
    %422 = vector.load %arg9[%c0_133, %c0_134] : memref<8x128xf32, #tpu.memory_space<vmem>>, vector<8x128xf32>
    tpu.vector_store %arg9[%c0_133, %c0_134], %421 {strides = array<i32>} : memref<8x128xf32, #tpu.memory_space<vmem>>, vector<8x128xf32>,
    return
  }
  func.func @transform_0(%arg0: i32) -> (i32, i32, i32) {
    %c0_i32 = arith.constant 0 : i32
    %c0_i32_0 = arith.constant 0 : i32
    %c0_i32_1 = arith.constant 0 : i32
    %c0_i32_2 = arith.constant 0 : i32
    return %c0_i32, %c0_i32_0, %c0_i32_1 : i32, i32, i32
  }
  func.func @transform_1(%arg0: i32) -> (i32, i32) {
    %c0_i32 = arith.constant 0 : i32
    %c0_i32_0 = arith.constant 0 : i32
    %c0_i32_1 = arith.constant 0 : i32
    return %c0_i32, %c0_i32_0 : i32, i32
  }
  func.func @transform_2(%arg0: i32) -> (i32, i32) {
    %c0_i32 = arith.constant 0 : i32
    %c0_i32_0 = arith.constant 0 : i32
    %c0_i32_1 = arith.constant 0 : i32
    return %c0_i32, %c0_i32_0 : i32, i32
  }
  func.func @transform_3(%arg0: i32) -> (i32, i32, i32) {
    %c0_i32 = arith.constant 0 : i32
    %c0_i32_0 = arith.constant 0 : i32
    %c0_i32_1 = arith.constant 0 : i32
    %c0_i32_2 = arith.constant 0 : i32
    return %c0_i32, %c0_i32_0, %c0_i32_1 : i32, i32, i32
  }
  func.func @transform_4(%arg0: i32) -> (i32, i32, i32) {
    %c0_i32 = arith.constant 0 : i32
    %c0_i32_0 = arith.constant 0 : i32
    %c0_i32_1 = arith.constant 0 : i32
    %c0_i32_2 = arith.constant 0 : i32
    return %c0_i32, %c0_i32_0, %c0_i32_1 : i32, i32, i32
  }
  func.func @transform_5(%arg0: i32) -> (i32, i32, i32) {
    %c0_i32 = arith.constant 0 : i32
    %c0_i32_0 = arith.constant 0 : i32
    %c0_i32_1 = arith.constant 0 : i32
    %c0_i32_2 = arith.constant 0 : i32
    return %c0_i32, %c0_i32_0, %c0_i32_1 : i32, i32, i32
  }
  func.func @transform_6(%arg0: i32) -> (i32, i32, i32) {
    %c0_i32 = arith.constant 0 : i32
    %c0_i32_0 = arith.constant 0 : i32
    %c0_i32_1 = arith.constant 0 : i32
    %c0_i32_2 = arith.constant 0 : i32
    return %c0_i32, %c0_i32_0, %c0_i32_1 : i32, i32, i32
  }
  func.func @transform_7(%arg0: i32) -> (i32, i32) {
    %c0_i32 = arith.constant 0 : i32
    %c0_i32_0 = arith.constant 0 : i32
    %c0_i32_1 = arith.constant 0 : i32
    return %c0_i32, %c0_i32_0 : i32, i32
  }
  func.func @transform_8(%arg0: i32) -> (i32, i32) {
    %c0_i32 = arith.constant 0 : i32
    %c0_i32_0 = arith.constant 0 : i32
    %c0_i32_1 = arith.constant 0 : i32
    return %c0_i32, %c0_i32_0 : i32, i32
  }
}

</mosaic_0001>

<bundles_post_ra>
// kernel: tpu_custom_call.1
= control target key start
LH: loop header
LB: loop body
LE: loop exit
PB: predicated region body
PF: predicated region fallthrough
CT: control target
= control target key end

     0   :  { %13 = vsyncpa [#allocation3], 0  ;;  %s4105_s0 = inlined_call_operand.hbm [shape: f32[2,8,32], index: 0, kind: input, shape index: {}]   ;;  %s4106_s1 = inlined_call_operand.hbm [shape: f32[26,32], index: 1, kind: input, shape index: {}]   ;;  %s4107_s2 = inlined_call_operand.vmem [shape: f32[2,128], index: 2, kind: input, shape index: {}]   ;;  %s4108_s3 = inlined_call_operand.vmem [shape: f32[6,32,32], index: 3, kind: input, shape index: {}]   ;;  %s4109_s4 = inlined_call_operand.vmem [shape: f32[2,32,32], index: 4, kind: input, shape index: {}]   ;;  %s4110_s5 = inlined_call_operand.vmem [shape: f32[2,32,128], index: 5, kind: input, shape index: {}]   ;;  %s4111_s6 = inlined_call_operand.vmem [shape: f32[2,128,32], index: 6, kind: input, shape index: {}]   ;;  %s4112_s7 = inlined_call_operand.hbm [shape: f32[32,128], index: 7, kind: input, shape index: {}]   ;;  %s4113_s8 = inlined_call_operand.hbm [shape: f32[8,128], index: 8, kind: output, shape index: {}]  }
   0x1   :  { %14 = vsyncpa [#allocation6], 0 }
   0x2   :  { %15 = vsyncpa [#allocation4], 0  ;;  %s33_s29 = sshll.u32 %s4106_s1, 4  ;;  %s3184_s30 = smov [#allocation5]   ;;  %s34_s29 = int_to_ptr.hbm [resolvable:$true] %s33_s29 }
   0x3   :  { %s35_s9 = sshll.u32 %s3184_s30, 4  ;;  %s20_s12 = sshll.u32 %s4105_s0, 4  ;;  %s36_s9 = int_to_ptr.vmem [resolvable:$true] %s35_s9  ;;  %s21_s12 = int_to_ptr.hbm [resolvable:$true] %s20_s12 }
   0x4   :  { %s3185_s13 = smov 128   ;;  %s3186_s14 = smov 8  }
   0x5   :  { %41 = dma.hbm_to_vmem [thread:$0]  %s34_s29, 512, %s36_s9, [#allocation6], %s3185_s13, %s3185_s13, %s3186_s14  }
   0x6   :  { %s3187_s15 = smov [#allocation2]   ;;  %s56_s19 = sshll.u32 %s4112_s7, 4  ;;  %s57_s19 = int_to_ptr.hbm [resolvable:$true] %s56_s19 }
   0x7   :  { %s22_s16 = sshll.u32 %s3187_s15, 4  ;;  %s3188_s1 = smov [#allocation7]   ;;  %s23_s16 = int_to_ptr.vmem [resolvable:$true] %s22_s16 }
   0x8   :  { %28 = dma.hbm_to_vmem [thread:$0]  %s21_s12, 256, %s23_s16, [#allocation3], %s3185_s13, %s3185_s13, %s3186_s14  }
   0x9   :  { %s58_s20 = sshll.u32 %s3188_s1, 4  ;;  %s59_s20 = int_to_ptr.vmem [resolvable:$true] %s58_s20 }
   0xa   :  { %64 = dma.hbm_to_vmem [thread:$0]  %s57_s19, 512, %s59_s20, [#allocation6], %s3185_s13, %s3185_s13, %s3186_s14  }
   0xb   :  { %3178 = dma.done.wait [#allocation3], 256  }
   0xc   :  { %3179 = vsyncadd [#allocation3], 4294967040 }
   0xd   :  { %3180 = dma.done.wait [#allocation6], 1024  }
   0xe   :  { %3181 = vsyncadd [#allocation6], 4294966272  ;;  %vm125_vm0 = vcmask 261120   ;;  %v82_v0 = vld [vmem:[#allocation2] sm:$0xff]  ;;  %v3250_v1 = vld [vmem:[#allocation5] sm:$0xff]  ;;  %vm87_vm1 = vcmask 1043456  }
   0xf   :  { %v126_v2 = vsel %vm125_vm0, %v82_v0, 0.0  ;;  %v85_v3 = vrot.slane %v3250_v1, 4  ;;  %v83_v5 = vld [vmem:[#allocation2 + $0x8] sm:$0xff]  ;;  %v3189_v8 = vmov 32.0   ;;  %v199_v47 = vperm.slane %v3250_v1, 4  ;;  %s3192_s20 = smov 120  }
  0x10   :  { %127 = vadd.xlane.f32.xlu0 %v126_v2  ;;  %v129_v7 = vsel %vm125_vm0, %v83_v5, 0.0  ;;  %2924 = vrcp.f32 %v3189_v8  ;;  %v203_v51 = vperm.slane %v3250_v1, 5  ;;  %s3193_s0 = smov 112   ;;  %s3194_s7 = smov 104  }
  0x11   :  { %v88_v4 = vsel %vm87_vm1, %v3250_v1, %v85_v3  ;;  %s2690_s25 = sshll.u32 %s4113_s8, 4  ;;  %s2691_s25 = int_to_ptr.hbm [resolvable:$true] %s2690_s25 }
  0x12   :  { %v132_v6 = vsel %vm125_vm0, %v88_v4, 0.0 }
  0x13   :  { %133 = vadd.xlane.f32.xlu1 %v132_v6 }
  0x16   :  { %v2925_v9 = vpop.eup %2924 }
  0x17   :  { %v136_v10 = vmul.f32 32.0, %v2925_v9  ;;  %vm140_vm2 = vweird.f32 %v2925_v9 }
  0x18   :  { %130 = vadd.xlane.f32.xlu0 %v129_v7 }
  0x19   :  { %v137_v11 = vsub.f32 1.0, %v136_v10 }
  0x1b   :  { %v138_v12 = vmul.f32 %v2925_v9, %v137_v11 }
  0x1d   :  { %v139_v13 = vadd.f32 %v2925_v9, %v138_v12 }
  0x1f   :  { %v3257_v14 = vsel %vm140_vm2, %v2925_v9, %v139_v13 }
  0x83   :  { %v128_v15 = vpop.xlane.xlu0 %127 }
  0x84   :  { %v142_v16 = vmul.f32 %v3257_v14, %v128_v15 }
  0x86   :  { %v145_v17 = vsub.f32 %v82_v0, %v142_v16  ;;  %v134_v19 = vpop.xlane.xlu1 %133 }
  0x87   :  { %v144_v23 = vmul.f32 %v3257_v14, %v134_v19 }
  0x88   :  { %v148_v18 = vmul.f32 %v145_v17, %v145_v17 }
  0x89   :  { %v147_v26 = vsub.f32 %v88_v4, %v144_v23 }
  0x8a   :  { %v151_v20 = vsel %vm125_vm0, %v148_v18, 0.0 }
  0x8b   :  { %v131_v21 = vpop.xlane.xlu0 %130  ;;  %152 = vadd.xlane.f32.xlu1 %v151_v20  ;;  %v150_v28 = vmul.f32 %v147_v26, %v147_v26 }
  0x8c   :  { %v143_v22 = vmul.f32 %v3257_v14, %v131_v21 }
  0x8d   :  { %v157_v29 = vsel %vm125_vm0, %v150_v28, 0.0  ;;  %v283_v28 = vld [vmem:[%s4108_s3 + $0x10] sm:$0xff] }
  0x8e   :  { %v146_v24 = vsub.f32 %v83_v5, %v143_v22 }
  0x90   :  { %v149_v25 = vmul.f32 %v146_v24, %v146_v24 }
  0x92   :  { %v154_v27 = vsel %vm125_vm0, %v149_v25, 0.0 }
  0x93   :  { %155 = vadd.xlane.f32.xlu2 %v154_v27  ;;  %v2709_v27 = vld [vmem:[%s4108_s3 + $0x38] sm:$0xff] }
  0x94   :  { %339 = vmatpush.msra.mxu1 %v2709_v27 }
  0x9b   :  { %158 = vadd.xlane.f32.xlu2 %v157_v29  ;;  %v2708_v29 = vld [vmem:[%s4108_s3 + $0x30] sm:$0xff] }
  0x9c   :  { %340 = vmatpush.msra.mxu1 %v2708_v29 }
  0xfe   :  { %v153_v30 = vpop.xlane.xlu1 %152 }
  0xff   :  { %v160_v31 = vmul.f32 %v153_v30, %v3257_v14  ;;  %v282_v30 = vld [vmem:[%s4108_s3 + $0x8] sm:$0xff] }
 0x101   :  { %v163_v32 = vadd.f32 1e-05, %v160_v31  ;;  %v2707_v31 = vld [vmem:[%s4108_s3 + $0x28] sm:$0xff] }
 0x102   :  { %341 = vmatpush.msra.mxu1 %v2707_v31 }
 0x103   :  { %2926 = vrsqrt.f32 %v163_v32  ;;  %vm172_vm4 = vweird.f32 %v163_v32 }
 0x106   :  { %v156_v33 = vpop.xlane.xlu2 %155 }
 0x107   :  { %v161_v34 = vmul.f32 %v156_v33, %v3257_v14  ;;  %v2706_v33 = vld [vmem:[%s4108_s3 + $0x20] sm:$0xff] }
 0x108   :  { %342 = vmatpush.msra.mxu1 %v2706_v33 }
 0x109   :  { %v2927_v35 = vpop.eup %2926  ;;  %v164_v36 = vadd.f32 1e-05, %v161_v34  ;;  %v2716_v34 = vld [vmem:[%s4108_s3 + $0x58] sm:$0xff] }
 0x10a   :  { %v167_v37 = vmul.f32 %v2927_v35, %v163_v32  ;;  %vm173_vm3 = vweird.f32 %v2927_v35  ;;  %v281_v32 = vld [vmem:[%s4108_s3] sm:$0xff]  ;;  %2874 = vmatpush.msra.mxu2 %v2716_v34  ;;  %2875 = vmatpush.msra.mxu3 %v2716_v34 }
 0x10b   :  { %2928 = vrsqrt.f32 %v164_v36  ;;  %vm174_vm5 = vmor %vm172_vm4, %vm173_vm3  ;;  %vm182_vm7 = vweird.f32 %v164_v36 }
 0x10c   :  { %v168_v38 = vmul.f32 %v2927_v35, %v167_v37 }
 0x10e   :  { %v169_v39 = vmul.f32 0.5, %v168_v38  ;;  %v159_v40 = vpop.xlane.xlu2 %158  ;;  %v2714_v38 = vld [vmem:[%s4108_s3 + $0x48] sm:$0xff] }
 0x10f   :  { %v162_v41 = vmul.f32 %v159_v40, %v3257_v14  ;;  %v2713_v40 = vld [vmem:[%s4108_s3 + $0x40] sm:$0xff] }
 0x110   :  { %v170_v42 = vsub.f32 1.5, %v169_v39 }
 0x111   :  { %v2929_v43 = vpop.eup %2928  ;;  %v165_v44 = vadd.f32 1e-05, %v162_v41 }
 0x112   :  { %v171_v45 = vmul.f32 %v2927_v35, %v170_v42  ;;  %v177_v46 = vmul.f32 %v2929_v43, %v164_v36  ;;  %vm183_vm6 = vweird.f32 %v2929_v43 }
 0x113   :  { %2930 = vrsqrt.f32 %v165_v44  ;;  %vm184_vm8 = vmor %vm182_vm7, %vm183_vm6  ;;  %vm192_vm10 = vweird.f32 %v165_v44  ;;  %vm389_vm6 = vcmask 64512  }
 0x114   :  { %v175_v48 = vsel %vm174_vm5, %v2927_v35, %v171_v45  ;;  %v178_v49 = vmul.f32 %v2929_v43, %v177_v46  ;;  %v2715_v35 = vld [vmem:[%s4108_s3 + $0x50] sm:$0xff] }
 0x115   :  { %v196_v50 = vmul.f32 %v175_v48, %v145_v17  ;;  %2876 = vmatpush.msra.mxu2 %v2715_v35  ;;  %2877 = vmatpush.msra.mxu3 %v2715_v35 }
 0x116   :  { %v179_v52 = vmul.f32 0.5, %v178_v49 }
 0x117   :  { %v200_v53 = vmul.f32 %v199_v47, %v196_v50  ;;  %2878 = vmatpush.msra.mxu2 %v2714_v38  ;;  %2879 = vmatpush.msra.mxu3 %v2714_v38 }
 0x118   :  { %v180_v54 = vsub.f32 1.5, %v179_v52 }
 0x119   :  { %v2931_v55 = vpop.eup %2930  ;;  %v3270_v56 = vadd.f32 %v203_v51, %v200_v53  ;;  %2880 = vmatpush.msra.mxu2 %v2713_v40  ;;  %2881 = vmatpush.msra.mxu3 %v2713_v40 }
 0x11a   :  { %v181_v57 = vmul.f32 %v2929_v43, %v180_v54  ;;  %v187_v58 = vmul.f32 %v2931_v55, %v165_v44  ;;  %vm193_vm9 = vweird.f32 %v2931_v55 }
 0x11b   :  { %v207_v59 = vsel %vm125_vm0, %v3270_v56, 0.0  ;;  %vm194_vm11 = vmor %vm192_vm10, %vm193_vm9 }
 0x11c   :  { %v185_v60 = vsel %vm184_vm8, %v2929_v43, %v181_v57  ;;  %v188_v61 = vmul.f32 %v2931_v55, %v187_v58  ;;  %208 = vadd.xlane.f32.xlu0 %v207_v59 }
 0x11d   :  { %v197_v62 = vmul.f32 %v185_v60, %v146_v24 }
 0x11e   :  { %v189_v63 = vmul.f32 0.5, %v188_v61 }
 0x11f   :  { %v201_v0 = vmul.f32 %v199_v47, %v197_v62 }
 0x120   :  { %v190_v1 = vsub.f32 1.5, %v189_v63 }
 0x121   :  { %v3274_v2 = vadd.f32 %v203_v51, %v201_v0 }
 0x122   :  { %v191_v3 = vmul.f32 %v2931_v55, %v190_v1 }
 0x123   :  { %v210_v4 = vsel %vm125_vm0, %v3274_v2, 0.0 }
 0x124   :  { %v195_v5 = vsel %vm194_vm11, %v2931_v55, %v191_v3  ;;  %211 = vadd.xlane.f32.xlu1 %v210_v4  ;;  %vm434_vm11 = vcmask 195584  }
 0x125   :  { %v198_v6 = vmul.f32 %v195_v5, %v147_v26  ;;  %v284_v26 = vld [vmem:[%s4108_s3 + $0x18] sm:$0xff] }
 0x126   :  { %307 = vmatpush.msra.mxu0 %v284_v26 }
 0x127   :  { %v202_v7 = vmul.f32 %v199_v47, %v198_v6 }
 0x128   :  { %308 = vmatpush.msra.mxu0 %v283_v28 }
 0x129   :  { %v3278_v8 = vadd.f32 %v203_v51, %v202_v7  ;;  %v78_v51 = vld [vmem:[#allocation5 + $0x8] sm:$0xff] }
 0x12a   :  { %309 = vmatpush.msra.mxu0 %v282_v30  ;;  %v273_v57 = vperm.slane %v78_v51, 0  ;;  %v277_v61 = vperm.slane %v78_v51, 1 }
 0x12b   :  { %v213_v9 = vsel %vm125_vm0, %v3278_v8, 0.0 }
 0x12c   :  { %214 = vadd.xlane.f32.xlu2 %v213_v9  ;;  %310 = vmatpush.msra.mxu0 %v281_v32  ;;  %v285_v32 = vperm.slane %v78_v51, 4 }
 0x12e   :  { %371 = vmatpush.msrb.mxu0 %v2716_v34 }
 0x130   :  { %372 = vmatpush.msrb.mxu0 %v2715_v35 }
 0x132   :  { %373 = vmatpush.msrb.mxu0 %v2714_v38 }
 0x134   :  { %374 = vmatpush.msrb.mxu0 %v2713_v40 }
 0x18f   :  { %v209_v10 = vpop.xlane.xlu0 %208 }
 0x190   :  { %v216_v11 = vmul.f32 %v209_v10, %v3257_v14 }
 0x192   :  { %v3284_v12 = vsub.f32 %v3270_v56, %v216_v11 }
 0x194   :  { %v222_v13 = vmul.f32 %v3284_v12, %v3284_v12 }
 0x196   :  { %v225_v15 = vsel %vm125_vm0, %v222_v13, 0.0 }
 0x197   :  { %226 = vadd.xlane.f32.xlu0 %v225_v15  ;;  %v212_v16 = vpop.xlane.xlu1 %211 }
 0x198   :  { %v217_v17 = vmul.f32 %v212_v16, %v3257_v14 }
 0x19a   :  { %v3291_v18 = vsub.f32 %v3274_v2, %v217_v17 }
 0x19c   :  { %v223_v19 = vmul.f32 %v3291_v18, %v3291_v18 }
 0x19e   :  { %v228_v20 = vsel %vm125_vm0, %v223_v19, 0.0 }
 0x19f   :  { %v215_v21 = vpop.xlane.xlu2 %214  ;;  %229 = vadd.xlane.f32.xlu1 %v228_v20 }
 0x1a0   :  { %v218_v22 = vmul.f32 %v215_v21, %v3257_v14 }
 0x1a2   :  { %v3298_v23 = vsub.f32 %v3278_v8, %v218_v22 }
 0x1a4   :  { %v224_v24 = vmul.f32 %v3298_v23, %v3298_v23 }
 0x1a6   :  { %v231_v25 = vsel %vm125_vm0, %v224_v24, 0.0 }
 0x1a7   :  { %232 = vadd.xlane.f32.xlu2 %v231_v25  ;;  %v326_v25 = vperm.slane %v78_v51, 5 }
 0x20a   :  { %v227_v36 = vpop.xlane.xlu0 %226 }
 0x20b   :  { %v234_v37 = vmul.f32 %v227_v36, %v3257_v14 }
 0x20d   :  { %v237_v39 = vadd.f32 1e-05, %v234_v37 }
 0x20f   :  { %2932 = vrsqrt.f32 %v237_v39  ;;  %vm246_vm13 = vweird.f32 %v237_v39 }
 0x212   :  { %v230_v41 = vpop.xlane.xlu1 %229 }
 0x213   :  { %v235_v42 = vmul.f32 %v230_v41, %v3257_v14 }
 0x215   :  { %v2933_v43 = vpop.eup %2932  ;;  %v238_v44 = vadd.f32 1e-05, %v235_v42  ;;  %v89_v42 = vlaneseq }
 0x216   :  { %v241_v45 = vmul.f32 %v2933_v43, %v237_v39  ;;  %vm247_vm12 = vweird.f32 %v2933_v43 }
 0x217   :  { %2934 = vrsqrt.f32 %v238_v44  ;;  %vm248_vm14 = vmor %vm246_vm13, %vm247_vm12  ;;  %vm256_vm1 = vweird.f32 %v238_v44 }
 0x218   :  { %v242_v46 = vmul.f32 %v2933_v43, %v241_v45 }
 0x21a   :  { %v243_v47 = vmul.f32 0.5, %v242_v46  ;;  %v233_v48 = vpop.xlane.xlu2 %232 }
 0x21b   :  { %v236_v49 = vmul.f32 %v233_v48, %v3257_v14  ;;  %v90_v48 = vshrl.u32 %v89_v42, 7 }
 0x21c   :  { %v244_v50 = vsub.f32 1.5, %v243_v47 }
 0x21d   :  { %v2935_v52 = vpop.eup %2934  ;;  %v239_v53 = vadd.f32 1e-05, %v236_v49  ;;  %v3191_v49 = vmov -1e+30  }
 0x21e   :  { %v245_v54 = vmul.f32 %v2933_v43, %v244_v50  ;;  %v251_v55 = vmul.f32 %v2935_v52, %v238_v44  ;;  %vm257_vm15 = vweird.f32 %v2935_v52  ;;  %v3190_v44 = vmov 0  }
 0x21f   :  { %2936 = vrsqrt.f32 %v239_v53  ;;  %vm258_vm2 = vmor %vm256_vm1, %vm257_vm15  ;;  %vm266_vm4 = vweird.f32 %v239_v53 }
 0x220   :  { %v249_v58 = vsel %vm248_vm14, %v2933_v43, %v245_v54  ;;  %v252_v59 = vmul.f32 %v2935_v52, %v251_v55  ;;  %v94_v43 = vand.u32 127, %v89_v42 }
 0x221   :  { %v270_v60 = vmul.f32 %v249_v58, %v3284_v12 }
 0x222   :  { %v253_v62 = vmul.f32 0.5, %v252_v59  ;;  %vm113_vm7 = vcmp.ge.s32.totalorder %v94_v43, 8  ;;  %vm115_vm8 = vcmp.ge.s32.totalorder %v94_v43, 20  ;;  %vm117_vm9 = vcmp.lt.s32.totalorder %v94_v43, 16 }
 0x223   :  { %v274_v63 = vmul.f32 %v273_v57, %v270_v60  ;;  %v114_v45 = vsel %vm113_vm7, 1, %v3190_v44  ;;  %v116_v46 = vsel %vm115_vm8, 1, %v3190_v44 }
 0x224   :  { %v254_v0 = vsub.f32 1.5, %v253_v62  ;;  %v118_v47 = vsel %vm117_vm9, %v114_v45, %v116_v46 }
 0x225   :  { %v2937_v1 = vpop.eup %2936  ;;  %v278_v3 = vadd.f32 %v277_v61, %v274_v63  ;;  %vm2701_vm10 = vcmp.eq.s32.totalorder %v118_v47, 0  ;;  %vm2702_vm12 = vcmp.eq.s32.totalorder %v118_v47, 1 }
 0x226   :  { %v255_v4 = vmul.f32 %v2935_v52, %v254_v0  ;;  %v261_v5 = vmul.f32 %v2937_v1, %v239_v53  ;;  %vm267_vm3 = vweird.f32 %v2937_v1  ;;  %v3383_v50 = vsel %vm2701_vm10, 0.0, %v3191_v49 }
 0x227   :  { %2703 = vmatmul.msk.f32.vlgmr.msra.gmra.mxu0 %vm125_vm0, %v278_v3  ;;  %2710 = vmatmul.msk.f32.vlgmr.msra.gmra.mxu1 %vm125_vm0, %v278_v3  ;;  %vm268_vm5 = vmor %vm266_vm4, %vm267_vm3  ;;  %v92_v53 = vadd.s32 16, %v90_v48  ;;  %v3387_v55 = vsel %vm2702_vm12, 0.0, %v3191_v49 }
 0x228   :  { %v259_v6 = vsel %vm258_vm2, %v2935_v52, %v255_v4  ;;  %v262_v7 = vmul.f32 %v2937_v1, %v261_v5 }
 0x229   :  { %v271_v9 = vmul.f32 %v259_v6, %v3291_v18  ;;  %vm103_vm13 = vcmp.ge.s32.totalorder %v92_v53, 20 }
 0x22a   :  { %v263_v10 = vmul.f32 0.5, %v262_v7  ;;  %v106_v58 = vsel %vm103_vm13, 1, %v3190_v44 }
 0x22b   :  { %v275_v11 = vmul.f32 %v273_v57, %v271_v9  ;;  %vm121_vm14 = vcmp.eq.s32.totalorder %v106_v58, %v118_v47 }
 0x22c   :  { %v264_v12 = vsub.f32 1.5, %v263_v10 }
 0x22d   :  { %v279_v13 = vadd.f32 %v277_v61, %v275_v11 }
 0x22e   :  { %v265_v15 = vmul.f32 %v2937_v1, %v264_v12 }
 0x22f   :  { %2704 = vmatmul.msk.f32.gmra.mxu0 %vm125_vm0, %v279_v13  ;;  %2711 = vmatmul.msk.f32.gmra.mxu1 %vm125_vm0, %v279_v13 }
 0x230   :  { %v269_v16 = vsel %vm268_vm5, %v2937_v1, %v265_v15  ;;  %2718 = vmatmul.msk.f32.vlgmr.msra.gmra.mxu2 %vm125_vm0, %v279_v13 }
 0x231   :  { %v272_v17 = vmul.f32 %v269_v16, %v3298_v23  ;;  %v358_v23 = vperm.slane %v78_v51, 6 }
 0x233   :  { %v276_v19 = vmul.f32 %v273_v57, %v272_v17 }
 0x235   :  { %v280_v20 = vadd.f32 %v277_v61, %v276_v19  ;;  %v3391_v61 = vsel %vm121_vm14, 0.0, %v3191_v49 }
 0x237   :  { %2705 = vmatmul.msk.f32.gmra.mxu0 %vm125_vm0, %v280_v20  ;;  %2712 = vmatmul.msk.f32.gmra.mxu1 %vm125_vm0, %v280_v20 }
 0x238   :  { %2719 = vmatmul.msk.f32.vlgmr.msra.gmra.mxu3 %vm125_vm0, %v280_v20 }
 0x23f   :  { %2717 = vmatmul.msk.f32.vlgmr.msrb.gmra.mxu0 %vm125_vm0, %v278_v3 }
 0x2a4   :  { %v312_v18 = vpop.f32.mrf.mxu0  ;;  %v344_v21 = vpop.f32.mrf.mxu1 }
 0x2a5   :  { %v3362_v35 = vadd.f32 %v344_v21, %v326_v25  ;;  %v3368_v38 = vadd.f32 %v312_v18, %v285_v32 }
 0x2ac   :  { %v315_v22 = vpop.f32.mrf.mxu0  ;;  %v347_v24 = vpop.f32.mrf.mxu1 }
 0x2ad   :  { %v3358_v29 = vadd.f32 %v347_v24, %v326_v25  ;;  %v3375_v40 = vadd.f32 %v315_v22, %v285_v32  ;;  %v385_v24 = vld [vmem:[%s4109_s4] sm:$0xff] }
 0x2b3   :  { %v379_v30 = vpop.f32.mrf.mxu2 }
 0x2b4   :  { %v318_v26 = vpop.f32.mrf.mxu0  ;;  %v350_v27 = vpop.f32.mrf.mxu1  ;;  %v380_v33 = vadd.f32 %v379_v30, %v358_v23 }
 0x2b5   :  { %v3354_v28 = vadd.f32 %v350_v27, %v326_v25  ;;  %v3379_v41 = vadd.f32 %v318_v26, %v285_v32 }
 0x2b7   :  { %2720 = vmatpush.xpose.msk.msrb.mxu3 %vm389_vm6, %v3354_v28 }
 0x2bb   :  { %v382_v31 = vpop.f32.mrf.mxu3  ;;  %2721 = vmatpush.xpose.msk.msrb.mxu3 %vm389_vm6, %v3358_v29 }
 0x2bc   :  { %v383_v34 = vadd.f32 %v382_v31, %v358_v23  ;;  %v376_v36 = vpop.f32.mrf.mxu0 }
 0x2bd   :  { %v3370_v39 = vadd.f32 %v376_v36, %v358_v23 }
 0x2be   :  { %529 = vmatpush.msra.mxu0 %v383_v34  ;;  %v3364_v37 = vpack.i.bf16 %v380_v33, %v383_v34 }
 0x2bf   :  { %2722 = vmatpush.xpose.msk.msrb.mxu3 %vm389_vm6, %v3362_v35 }
 0x2c0   :  { %530 = vmatpush.msra.mxu0 %v380_v33 }
 0x2c2   :  { %531 = vmatpush.msra.mxu0 %v3370_v39  ;;  %2723 = vmatmul.msk.f32.vlgmr.msrb.gmra.mxu3 %vm389_vm6, %v3368_v38 }
 0x2c4   :  { %770 = vmatpush.msrb.mxu0 %v385_v24 }
 0x2ca   :  { %2724 = vmatmul.msk.f32.gmra.mxu3 %vm389_vm6, %v3375_v40 }
 0x2d2   :  { %2725 = vmatmul.msk.f32.gmra.mxu3 %vm389_vm6, %v3379_v41 }
 0x345   :  { %v425_v51 = vpop.f32.mrf.mxu3 }
 0x346   :  { %v426_v52 = vadd.f32 %v425_v51, %v3383_v50 }
 0x348   :  { %v435_v54 = vsel %vm434_vm11, %v426_v52, -inf }
 0x349   :  { %436 = vmax.xlane.f32.xlu0 %v435_v54 }
 0x34d   :  { %v428_v57 = vpop.f32.mrf.mxu3 }
 0x34e   :  { %v429_v59 = vadd.f32 %v428_v57, %v3387_v55 }
 0x350   :  { %v438_v60 = vsel %vm434_vm11, %v429_v59, -inf }
 0x351   :  { %439 = vmax.xlane.f32.xlu1 %v438_v60 }
 0x355   :  { %v431_v62 = vpop.f32.mrf.mxu3 }
 0x356   :  { %v432_v63 = vadd.f32 %v431_v62, %v3391_v61 }
 0x358   :  { %v441_v0 = vsel %vm434_vm11, %v432_v63, -inf }
 0x359   :  { %442 = vmax.xlane.f32.xlu2 %v441_v0 }
 0x3bc   :  { %v437_v1 = vpop.xlane.xlu0 %436 }
 0x3bd   :  { %v444_v3 = vsub.f32 %v426_v52, %v437_v1 }
 0x3bf   :  { %v447_v4 = vmul.f32 1.442695, %v444_v3 }
 0x3c1   :  { %2938 = vpow2.f32 %v447_v4 }
 0x3c4   :  { %v440_v5 = vpop.xlane.xlu1 %439 }
 0x3c5   :  { %v445_v6 = vsub.f32 %v429_v59, %v440_v5 }
 0x3c7   :  { %v2939_v7 = vpop.eup %2938  ;;  %v449_v9 = vmul.f32 1.442695, %v445_v6 }
 0x3c8   :  { %v453_v10 = vsel %vm434_vm11, %v2939_v7, 0.0 }
 0x3c9   :  { %2940 = vpow2.f32 %v449_v9  ;;  %454 = vadd.xlane.f32.xlu0 %v453_v10 }
 0x3cc   :  { %v443_v11 = vpop.xlane.xlu2 %442 }
 0x3cd   :  { %v446_v12 = vsub.f32 %v432_v63, %v443_v11 }
 0x3cf   :  { %v3396_v13 = vpop.eup %2940  ;;  %v451_v15 = vmul.f32 1.442695, %v446_v12 }
 0x3d0   :  { %v456_v16 = vsel %vm434_vm11, %v3396_v13, 0.0 }
 0x3d1   :  { %2942 = vpow2.f32 %v451_v15  ;;  %457 = vadd.xlane.f32.xlu1 %v456_v16 }
 0x3d7   :  { %v3400_v17 = vpop.eup %2942 }
 0x3d8   :  { %v459_v19 = vsel %vm434_vm11, %v3400_v17, 0.0 }
 0x3d9   :  { %460 = vadd.xlane.f32.xlu2 %v459_v19 }
 0x3dd   :  { %552 = vrot.lane.b32.xlu0 %v3354_v28, %s3192_s20 }
 0x3e5   :  { %542 = vrot.lane.b32.xlu0 %v3368_v38, %s3192_s20 }
 0x3ea   :  { %550 = vrot.lane.b32.xlu1 %v3358_v29, %s3192_s20 }
 0x3ed   :  { %546 = vrot.lane.b32.xlu0 %v3379_v41, %s3192_s20 }
 0x3f1   :  { %548 = vrot.lane.b32.xlu2 %v3362_v35, %s3192_s20 }
 0x3f2   :  { %791 = vrot.lane.b32.xlu1 %v3354_v28, %s3193_s0 }
 0x3f5   :  { %995 = vrot.lane.b32.xlu0 %v3354_v28, %s3194_s7 }
 0x3f9   :  { %544 = vrot.lane.b32.xlu2 %v3375_v40, %s3192_s20 }
 0x3fa   :  { %787 = vrot.lane.b32.xlu1 %v3362_v35, %s3193_s0 }
 0x3fd   :  { %991 = vrot.lane.b32.xlu0 %v3362_v35, %s3194_s7 }
 0x401   :  { %789 = vrot.lane.b32.xlu2 %v3358_v29, %s3193_s0 }
 0x402   :  { %993 = vrot.lane.b32.xlu1 %v3358_v29, %s3194_s7 }
 0x405   :  { %785 = vrot.lane.b32.xlu0 %v3379_v41, %s3193_s0 }
 0x409   :  { %781 = vrot.lane.b32.xlu2 %v3368_v38, %s3193_s0 }
 0x40a   :  { %985 = vrot.lane.b32.xlu1 %v3368_v38, %s3194_s7 }
 0x411   :  { %783 = vrot.lane.b32.xlu2 %v3375_v40, %s3193_s0 }
 0x412   :  { %989 = vrot.lane.b32.xlu1 %v3379_v41, %s3194_s7 }
 0x419   :  { %987 = vrot.lane.b32.xlu2 %v3375_v40, %s3194_s7 }
 0x43c   :  { %v455_v20 = vpop.xlane.xlu0 %454 }
 0x43d   :  { %2944 = vrcp.f32 %v455_v20  ;;  %v473_v26 = vand.u32 2147483648, %v455_v20  ;;  %v471_v28 = vand.u32 2147483647, %v455_v20  ;;  %vm467_vm1 = vweird.f32 %v455_v20 }
 0x43f   :  { %v474_v30 = vor.u32 1.1754944e-38, %v473_v26  ;;  %vm472_vm3 = vcmp.eq.f32.partialorder %v471_v28, 8.507059e+37 }
 0x443   :  { %v2945_v18 = vpop.eup %2944 }
 0x444   :  { %v463_v21 = vmul.f32 %v2945_v18, %v455_v20  ;;  %v458_v22 = vpop.xlane.xlu1 %457  ;;  %vm468_vm15 = vweird.f32 %v2945_v18 }
 0x445   :  { %2946 = vrcp.f32 %v458_v22  ;;  %vm469_vm2 = vmor %vm467_vm1, %vm468_vm15  ;;  %v488_v38 = vand.u32 2147483648, %v458_v22  ;;  %v486_v42 = vand.u32 2147483647, %v458_v22  ;;  %vm482_vm5 = vweird.f32 %v458_v22 }
 0x446   :  { %v464_v25 = vsub.f32 1.0, %v463_v21 }
 0x447   :  { %v489_v45 = vor.u32 1.1754944e-38, %v488_v38  ;;  %vm487_vm8 = vcmp.eq.f32.partialorder %v486_v42, 8.507059e+37 }
 0x448   :  { %v465_v27 = vmul.f32 %v2945_v18, %v464_v25 }
 0x44a   :  { %v466_v23 = vadd.f32 %v2945_v18, %v465_v27 }
 0x44b   :  { %v2947_v29 = vpop.eup %2946 }
 0x44c   :  { %v470_v31 = vsel %vm469_vm2, %v2945_v18, %v466_v23  ;;  %v478_v32 = vmul.f32 %v2947_v29, %v458_v22  ;;  %v461_v33 = vpop.xlane.xlu2 %460  ;;  %vm483_vm4 = vweird.f32 %v2947_v29 }
 0x44d   :  { %v475_v34 = vsel %vm472_vm3, %v474_v30, %v470_v31  ;;  %2948 = vrcp.f32 %v461_v33  ;;  %vm484_vm7 = vmor %vm482_vm5, %vm483_vm4  ;;  %v503_v53 = vand.u32 2147483648, %v461_v33  ;;  %v501_v58 = vand.u32 2147483647, %v461_v33 }
 0x44e   :  { %v479_v35 = vsub.f32 1.0, %v478_v32  ;;  %v476_v36 = vmul.f32 %v2939_v7, %v475_v34  ;;  %vm497_vm10 = vweird.f32 %v461_v33 }
 0x44f   :  { %v553_v40 = vpop.permute.xlu0 %552  ;;  %v504_v60 = vor.u32 1.1754944e-38, %v503_v53  ;;  %vm502_vm13 = vcmp.eq.f32.partialorder %v501_v58, 8.507059e+37 }
 0x450   :  { %v480_v41 = vmul.f32 %v2947_v29, %v479_v35  ;;  %2726 = vmatmul.msk.f32.vlgmr.msra.gmra.mxu0 %vm434_vm11, %v476_v36  ;;  %2729 = vmatpush.xpose.msk.msrb.mxu1 %vm389_vm6, %v553_v40 }
 0x452   :  { %v481_v43 = vadd.f32 %v2947_v29, %v480_v41 }
 0x453   :  { %v2949_v44 = vpop.eup %2948 }
 0x454   :  { %v493_v46 = vmul.f32 %v2949_v44, %v461_v33  ;;  %v549_v47 = vpop.permute.xlu2 %548  ;;  %v485_v48 = vsel %vm484_vm7, %v2947_v29, %v481_v43  ;;  %vm498_vm9 = vweird.f32 %v2949_v44 }
 0x455   :  { %v490_v49 = vsel %vm487_vm8, %v489_v45, %v485_v48  ;;  %vm499_vm12 = vmor %vm497_vm10, %vm498_vm9 }
 0x456   :  { %v494_v51 = vsub.f32 1.0, %v493_v46  ;;  %v491_v52 = vmul.f32 %v3396_v13, %v490_v49 }
 0x457   :  { %v543_v54 = vpop.permute.xlu0 %542 }
 0x458   :  { %v495_v57 = vmul.f32 %v2949_v44, %v494_v51  ;;  %2727 = vmatmul.msk.f32.gmra.mxu0 %vm434_vm11, %v491_v52 }
 0x45a   :  { %v496_v59 = vadd.f32 %v2949_v44, %v495_v57 }
 0x45c   :  { %v551_v62 = vpop.permute.xlu1 %550  ;;  %v500_v63 = vsel %vm499_vm12, %v2949_v44, %v496_v59  ;;  %v545_v1 = vpop.permute.xlu2 %544 }
 0x45d   :  { %2730 = vmatpush.xpose.msk.msrb.mxu1 %vm389_vm6, %v551_v62  ;;  %v505_v0 = vsel %vm502_vm13, %v504_v60, %v500_v63 }
 0x45e   :  { %v506_v3 = vmul.f32 %v3400_v17, %v505_v0 }
 0x45f   :  { %v547_v4 = vpop.permute.xlu0 %546 }
 0x460   :  { %2728 = vmatmul.msk.f32.gmra.mxu0 %vm434_vm11, %v506_v3 }
 0x461   :  { %2731 = vmatpush.xpose.msk.msrb.mxu1 %vm389_vm6, %v549_v47 }
 0x464   :  { %2732 = vmatmul.msk.f32.vlgmr.msrb.gmra.mxu1 %vm389_vm6, %v543_v54  ;;  %v792_v5 = vpop.permute.xlu1 %791  ;;  %v790_v7 = vpop.permute.xlu2 %789 }
 0x465   :  { %2744 = vmatpush.xpose.msk.msra.mxu1 %vm389_vm6, %v792_v5 }
 0x467   :  { %v996_v6 = vpop.permute.xlu0 %995 }
 0x468   :  { %2756 = vmatpush.xpose.msk.msra.mxu0 %vm389_vm6, %v996_v6 }
 0x469   :  { %2745 = vmatpush.xpose.msk.msra.mxu1 %vm389_vm6, %v790_v7 }
 0x46c   :  { %2733 = vmatmul.msk.f32.gmra.mxu1 %vm389_vm6, %v545_v1  ;;  %v788_v9 = vpop.permute.xlu1 %787  ;;  %v782_v12 = vpop.permute.xlu2 %781 }
 0x46d   :  { %2746 = vmatpush.xpose.msk.msra.mxu1 %vm389_vm6, %v788_v9 }
 0x46f   :  { %v992_v11 = vpop.permute.xlu0 %991 }
 0x474   :  { %2734 = vmatmul.msk.f32.gmra.mxu1 %vm389_vm6, %v547_v4  ;;  %v994_v10 = vpop.permute.xlu1 %993  ;;  %v784_v13 = vpop.permute.xlu2 %783 }
 0x475   :  { %2757 = vmatpush.xpose.msk.msra.mxu0 %vm389_vm6, %v994_v10 }
 0x477   :  { %v786_v15 = vpop.permute.xlu0 %785 }
 0x479   :  { %2758 = vmatpush.xpose.msk.msra.mxu0 %vm389_vm6, %v992_v11 }
 0x47c   :  { %2747 = vmatmul.msk.f32.vlgmr.msra.gmra.mxu1 %vm389_vm6, %v782_v12  ;;  %v986_v22 = vpop.permute.xlu1 %985  ;;  %v988_v27 = vpop.permute.xlu2 %987 }
 0x484   :  { %2748 = vmatmul.msk.f32.gmra.mxu1 %vm389_vm6, %v784_v13  ;;  %v990_v30 = vpop.permute.xlu1 %989 }
 0x48c   :  { %2749 = vmatmul.msk.f32.gmra.mxu1 %vm389_vm6, %v786_v15 }
 0x4cd   :  { %v533_v16 = vpop.f32.mrf.mxu0 }
 0x4ce   :  { %2741 = vmatmul.msk.f32.vlgmr.msrb.gmra.mxu0 %vm389_vm6, %v533_v16 }
 0x4d5   :  { %v536_v17 = vpop.f32.mrf.mxu0 }
 0x4d6   :  { %2742 = vmatmul.msk.f32.gmra.mxu0 %vm389_vm6, %v536_v17 }
 0x4dd   :  { %v539_v19 = vpop.f32.mrf.mxu0 }
 0x4de   :  { %2743 = vmatmul.msk.f32.gmra.mxu0 %vm389_vm6, %v539_v19 }
 0x4e1   :  { %v583_v20 = vpop.f32.mrf.mxu1 }
 0x4e2   :  { %v584_v18 = vadd.f32 %v583_v20, %v3383_v50 }
 0x4e4   :  { %v592_v21 = vsel %vm434_vm11, %v584_v18, -inf }
 0x4e5   :  { %593 = vmax.xlane.f32.xlu0 %v592_v21 }
 0x4e6   :  { %2759 = vmatmul.msk.f32.vlgmr.msra.gmra.mxu0 %vm389_vm6, %v986_v22 }
 0x4e9   :  { %v586_v24 = vpop.f32.mrf.mxu1 }
 0x4ea   :  { %v587_v25 = vadd.f32 %v586_v24, %v3387_v55 }
 0x4ec   :  { %v595_v26 = vsel %vm434_vm11, %v587_v25, -inf }
 0x4ed   :  { %596 = vmax.xlane.f32.xlu2 %v595_v26 }
 0x4ee   :  { %2760 = vmatmul.msk.f32.gmra.mxu0 %vm389_vm6, %v988_v27 }
 0x4f1   :  { %v589_v28 = vpop.f32.mrf.mxu1 }
 0x4f2   :  { %v590_v23 = vadd.f32 %v589_v28, %v3391_v61 }
 0x4f4   :  { %v598_v29 = vsel %vm434_vm11, %v590_v23, -inf }
 0x4f5   :  { %599 = vmax.xlane.f32.xlu1 %v598_v29 }
 0x4f6   :  { %2761 = vmatmul.msk.f32.gmra.mxu0 %vm389_vm6, %v990_v30 }
 0x4f9   :  { %v822_v31 = vpop.f32.mrf.mxu1 }
 0x4fa   :  { %v823_v32 = vadd.f32 %v822_v31, %v3383_v50 }
 0x4fc   :  { %v831_v33 = vsel %vm434_vm11, %v823_v32, -inf }
 0x4fd   :  { %832 = vmax.xlane.f32.xlu0 %v831_v33 }
 0x501   :  { %v825_v34 = vpop.f32.mrf.mxu1 }
 0x502   :  { %v826_v35 = vadd.f32 %v825_v34, %v3387_v55 }
 0x504   :  { %v834_v36 = vsel %vm434_vm11, %v826_v35, -inf }
 0x505   :  { %835 = vmax.xlane.f32.xlu2 %v834_v36 }
 0x509   :  { %v828_v38 = vpop.f32.mrf.mxu1 }
 0x50a   :  { %v3480_v40 = vadd.f32 %v828_v38, %v3391_v61 }
 0x50c   :  { %v837_v41 = vsel %vm434_vm11, %v3480_v40, -inf }
 0x50d   :  { %838 = vmax.xlane.f32.xlu0 %v837_v41 }
 0x50e   :  { %2895 = vrot.lane.b32.xlu1 %v3364_v37, %s3192_s20 }
 0x54b   :  { %v3486_v42 = vpop.f32.mrf.mxu0 }
 0x553   :  { %v3488_v43 = vpop.f32.mrf.mxu0 }
 0x558   :  { %v594_v44 = vpop.xlane.xlu0 %593 }
 0x559   :  { %v601_v45 = vsub.f32 %v584_v18, %v594_v44 }
 0x55b   :  { %v604_v46 = vmul.f32 1.442695, %v601_v45  ;;  %v3490_v47 = vpop.f32.mrf.mxu0 }
 0x55d   :  { %2950 = vpow2.f32 %v604_v46 }
 0x560   :  { %v597_v48 = vpop.xlane.xlu2 %596 }
 0x561   :  { %v602_v49 = vsub.f32 %v587_v25, %v597_v48 }
 0x563   :  { %v3492_v51 = vpop.eup %2950  ;;  %v606_v52 = vmul.f32 1.442695, %v602_v49  ;;  %v1026_v53 = vpop.f32.mrf.mxu0 }
 0x564   :  { %v1027_v54 = vadd.f32 %v1026_v53, %v3383_v50  ;;  %v610_v57 = vsel %vm434_vm11, %v3492_v51, 0.0 }
 0x565   :  { %2952 = vpow2.f32 %v606_v52  ;;  %611 = vadd.xlane.f32.xlu0 %v610_v57 }
 0x566   :  { %v1035_v58 = vsel %vm434_vm11, %v1027_v54, -inf }
 0x567   :  { %1036 = vmax.xlane.f32.xlu1 %v1035_v58 }
 0x568   :  { %v600_v59 = vpop.xlane.xlu1 %599 }
 0x569   :  { %v603_v60 = vsub.f32 %v590_v23, %v600_v59 }
 0x56b   :  { %v3498_v62 = vpop.eup %2952  ;;  %v608_v63 = vmul.f32 1.442695, %v603_v60  ;;  %v1029_v0 = vpop.f32.mrf.mxu0 }
 0x56c   :  { %v613_v1 = vsel %vm434_vm11, %v3498_v62, 0.0  ;;  %v3503_v3 = vadd.f32 %v1029_v0, %v3387_v55 }
 0x56d   :  { %2954 = vpow2.f32 %v608_v63  ;;  %614 = vadd.xlane.f32.xlu2 %v613_v1 }
 0x56e   :  { %v1038_v11 = vsel %vm434_vm11, %v3503_v3, -inf }
 0x570   :  { %v833_v4 = vpop.xlane.xlu0 %832 }
 0x571   :  { %v840_v5 = vsub.f32 %v823_v32, %v833_v4 }
 0x573   :  { %v3505_v6 = vpop.eup %2954  ;;  %v843_v7 = vmul.f32 1.442695, %v840_v5  ;;  %v1032_v9 = vpop.f32.mrf.mxu0 }
 0x574   :  { %v3508_v10 = vadd.f32 %v1032_v9, %v3391_v61  ;;  %v616_v12 = vsel %vm434_vm11, %v3505_v6, 0.0 }
 0x575   :  { %2956 = vpow2.f32 %v843_v7  ;;  %1039 = vmax.xlane.f32.xlu2 %v1038_v11  ;;  %617 = vadd.xlane.f32.xlu0 %v616_v12 }
 0x576   :  { %v1041_v13 = vsel %vm434_vm11, %v3508_v10, -inf }
 0x577   :  { %1042 = vmax.xlane.f32.xlu1 %v1041_v13 }
 0x578   :  { %v836_v15 = vpop.xlane.xlu2 %835 }
 0x579   :  { %v841_v16 = vsub.f32 %v826_v35, %v836_v15 }
 0x57b   :  { %v3516_v17 = vpop.eup %2956  ;;  %v845_v19 = vmul.f32 1.442695, %v841_v16 }
 0x57c   :  { %v849_v20 = vsel %vm434_vm11, %v3516_v17, 0.0 }
 0x57d   :  { %2958 = vpow2.f32 %v845_v19  ;;  %850 = vadd.xlane.f32.xlu0 %v849_v20 }
 0x580   :  { %v2896_v18 = vpop.permute.xlu1 %2895  ;;  %v839_v26 = vpop.xlane.xlu0 %838 }
 0x581   :  { %v2897_v21 = vunpack.i.l.bf16 %v2896_v18  ;;  %v2898_v24 = vunpack.i.h.bf16 %v2896_v18  ;;  %v842_v27 = vsub.f32 %v3480_v40, %v839_v26 }
 0x583   :  { %v3520_v22 = vpop.eup %2958  ;;  %698 = vmatpush.msrb.mxu2 %v2897_v21  ;;  %v847_v28 = vmul.f32 1.442695, %v842_v27 }
 0x584   :  { %v852_v25 = vsel %vm434_vm11, %v3520_v22, 0.0 }
 0x585   :  { %853 = vadd.xlane.f32.xlu0 %v852_v25  ;;  %699 = vmatpush.msrb.mxu2 %v2898_v24  ;;  %2960 = vpow2.f32 %v847_v28 }
 0x58b   :  { %v3531_v23 = vpop.eup %2960 }
 0x58c   :  { %v855_v29 = vsel %vm434_vm11, %v3531_v23, 0.0 }
 0x58d   :  { %667 = vrot.lane.b32.xlu2 %v3370_v39, %s3192_s20 }
 0x590   :  { %903 = vrot.lane.b32.xlu1 %v3370_v39, %s3193_s0 }
 0x599   :  { %2900 = vrot.lane.b32.xlu0 %v3364_v37, %s3193_s0 }
 0x5b6   :  { %856 = vadd.xlane.f32.xlu2 %v855_v29 }
 0x5ce   :  { %2905 = vrot.lane.b32.xlu2 %v3364_v37, %s3194_s7 }
 0x5d8   :  { %v612_v30 = vpop.xlane.xlu0 %611 }
 0x5d9   :  { %2962 = vrcp.f32 %v612_v30  ;;  %v630_v46 = vand.u32 2147483648, %v612_v30  ;;  %vm624_vm15 = vweird.f32 %v612_v30  ;;  %v628_v48 = vand.u32 2147483647, %v612_v30 }
 0x5da   :  { %v1037_v31 = vpop.xlane.xlu1 %1036 }
 0x5db   :  { %v1044_v32 = vsub.f32 %v1027_v54, %v1037_v31  ;;  %v631_v60 = vor.u32 1.1754944e-38, %v630_v46  ;;  %vm629_vm2 = vcmp.eq.f32.partialorder %v628_v48, 8.507059e+37 }
 0x5dd   :  { %v1047_v33 = vmul.f32 1.442695, %v1044_v32 }
 0x5df   :  { %v2963_v34 = vpop.eup %2962  ;;  %2964 = vpow2.f32 %v1047_v33 }
 0x5e0   :  { %v620_v35 = vmul.f32 %v2963_v34, %v612_v30  ;;  %v615_v36 = vpop.xlane.xlu2 %614  ;;  %vm625_vm14 = vweird.f32 %v2963_v34 }
 0x5e1   :  { %2966 = vrcp.f32 %v615_v36  ;;  %vm626_vm1 = vmor %vm624_vm15, %vm625_vm14  ;;  %v645_v9 = vand.u32 2147483648, %v615_v36  ;;  %vm639_vm4 = vweird.f32 %v615_v36  ;;  %v643_v16 = vand.u32 2147483647, %v615_v36 }
 0x5e2   :  { %v621_v38 = vsub.f32 1.0, %v620_v35 }
 0x5e3   :  { %v646_v18 = vor.u32 1.1754944e-38, %v645_v9  ;;  %vm644_vm7 = vcmp.eq.f32.partialorder %v643_v16, 8.507059e+37 }
 0x5e4   :  { %v622_v40 = vmul.f32 %v2963_v34, %v621_v38 }
 0x5e5   :  { %v3537_v41 = vpop.eup %2964 }
 0x5e6   :  { %v623_v44 = vadd.f32 %v2963_v34, %v622_v40  ;;  %v1053_v45 = vsel %vm434_vm11, %v3537_v41, 0.0 }
 0x5e7   :  { %v2967_v37 = vpop.eup %2966  ;;  %1054 = vadd.xlane.f32.xlu1 %v1053_v45 }
 0x5e8   :  { %v635_v49 = vmul.f32 %v2967_v37, %v615_v36  ;;  %v1040_v52 = vpop.xlane.xlu2 %1039  ;;  %v618_v53 = vpop.xlane.xlu0 %617  ;;  %v627_v59 = vsel %vm626_vm1, %v2963_v34, %v623_v44  ;;  %vm640_vm3 = vweird.f32 %v2967_v37 }
 0x5e9   :  { %v1045_v54 = vsub.f32 %v3503_v3, %v1040_v52  ;;  %2968 = vrcp.f32 %v618_v53  ;;  %v632_v4 = vsel %vm629_vm2, %v631_v60, %v627_v59  ;;  %vm641_vm5 = vmor %vm639_vm4, %vm640_vm3  ;;  %v660_v26 = vand.u32 2147483648, %v618_v53 }
 0x5ea   :  { %v636_v57 = vsub.f32 1.0, %v635_v49  ;;  %v1043_v58 = vpop.xlane.xlu1 %1042  ;;  %v633_v15 = vmul.f32 %v3492_v51, %v632_v4  ;;  %vm654_vm9 = vweird.f32 %v618_v53  ;;  %v658_v30 = vand.u32 2147483647, %v618_v53 }
 0x5eb   :  { %v1049_v63 = vmul.f32 1.442695, %v1045_v54  ;;  %v1046_v0 = vsub.f32 %v3508_v10, %v1043_v58  ;;  %v661_v33 = vor.u32 1.1754944e-38, %v660_v26  ;;  %v386_v26 = vld [vmem:[%s4109_s4 + $0x8] sm:$0xff] }
 0x5ec   :  { %v637_v1 = vmul.f32 %v2967_v37, %v636_v57  ;;  %vm659_vm12 = vcmp.eq.f32.partialorder %v658_v30, 8.507059e+37  ;;  %735 = vmatpush.msra.mxu3 %v386_v26 }
 0x5ed   :  { %2970 = vpow2.f32 %v1049_v63  ;;  %v1051_v11 = vmul.f32 1.442695, %v1046_v0 }
 0x5ee   :  { %v638_v5 = vadd.f32 %v2967_v37, %v637_v1 }
 0x5ef   :  { %v2969_v7 = vpop.eup %2968 }
 0x5f0   :  { %v650_v12 = vmul.f32 %v2969_v7, %v618_v53  ;;  %v668_v3 = vpop.permute.xlu2 %667  ;;  %v851_v13 = vpop.xlane.xlu0 %850  ;;  %v642_v10 = vsel %vm641_vm5, %v2967_v37, %v638_v5  ;;  %vm655_vm8 = vweird.f32 %v2969_v7 }
 0x5f1   :  { %700 = vmatpush.msrb.mxu2 %v668_v3  ;;  %2972 = vrcp.f32 %v851_v13  ;;  %v647_v25 = vsel %vm644_vm7, %v646_v18, %v642_v10  ;;  %vm656_vm10 = vmor %vm654_vm9, %vm655_vm8  ;;  %v869_v48 = vand.u32 2147483648, %v851_v13  ;;  %vm863_vm14 = vweird.f32 %v851_v13 }
 0x5f2   :  { %v651_v19 = vsub.f32 1.0, %v650_v12  ;;  %2735 = vmatmul.msk.f32.vlgmr.msrb.gmra.mxu2 %vm434_vm11, %v633_v15  ;;  %2974 = vpow2.f32 %v1051_v11  ;;  %v648_v29 = vmul.f32 %v3498_v62, %v647_v25  ;;  %v867_v49 = vand.u32 2147483647, %v851_v13 }
 0x5f3   :  { %v3545_v20 = vpop.eup %2970  ;;  %v870_v57 = vor.u32 1.1754944e-38, %v869_v48 }
 0x5f4   :  { %v652_v21 = vmul.f32 %v2969_v7, %v651_v19  ;;  %v1056_v24 = vsel %vm434_vm11, %v3545_v20, 0.0  ;;  %vm868_vm1 = vcmp.eq.f32.partialorder %v867_v49, 8.507059e+37 }
 0x5f5   :  { %1057 = vadd.xlane.f32.xlu0 %v1056_v24 }
 0x5f6   :  { %v653_v51 = vadd.f32 %v2969_v7, %v652_v21 }
 0x5f7   :  { %v2973_v27 = vpop.eup %2972 }
 0x5f8   :  { %v854_v28 = vpop.xlane.xlu0 %853  ;;  %v3550_v31 = vpop.eup %2974  ;;  %v657_v32 = vsel %vm656_vm10, %v2969_v7, %v653_v51  ;;  %v859_v34 = vmul.f32 %v2973_v27, %v851_v13  ;;  %vm864_vm13 = vweird.f32 %v2973_v27 }
 0x5f9   :  { %2976 = vrcp.f32 %v854_v28  ;;  %v1059_v35 = vsel %vm434_vm11, %v3550_v31, 0.0  ;;  %v662_v36 = vsel %vm659_vm12, %v661_v33, %v657_v32  ;;  %vm865_vm15 = vmor %vm863_vm14, %vm864_vm13  ;;  %v884_v60 = vand.u32 2147483648, %v854_v28 }
 0x5fa   :  { %2736 = vmatmul.msk.f32.gmra.mxu2 %vm434_vm11, %v648_v29  ;;  %v860_v38 = vsub.f32 1.0, %v859_v34  ;;  %v663_v62 = vmul.f32 %v3505_v6, %v662_v36  ;;  %vm878_vm3 = vweird.f32 %v854_v28  ;;  %v882_v1 = vand.u32 2147483647, %v854_v28 }
 0x5fb   :  { %v885_v5 = vor.u32 1.1754944e-38, %v884_v60 }
 0x5fc   :  { %v861_v44 = vmul.f32 %v2973_v27, %v860_v38  ;;  %vm883_vm5 = vcmp.eq.f32.partialorder %v882_v1, 8.507059e+37 }
 0x5fd   :  { %1060 = vadd.xlane.f32.xlu0 %v1059_v35 }
 0x5fe   :  { %v862_v37 = vadd.f32 %v2973_v27, %v861_v44 }
 0x5ff   :  { %v2977_v40 = vpop.eup %2976 }
 0x600   :  { %1107 = vrot.lane.b32.xlu1 %v3370_v39, %s3194_s7  ;;  %v874_v45 = vmul.f32 %v2977_v40, %v854_v28  ;;  %v866_v52 = vsel %vm865_vm15, %v2973_v27, %v862_v37  ;;  %vm879_vm2 = vweird.f32 %v2977_v40 }
 0x601   :  { %v871_v39 = vsel %vm868_vm1, %v870_v57, %v866_v52  ;;  %vm880_vm4 = vmor %vm878_vm3, %vm879_vm2 }
 0x602   :  { %2737 = vmatmul.msk.f32.gmra.mxu2 %vm434_vm11, %v663_v62  ;;  %v875_v46 = vsub.f32 1.0, %v874_v45  ;;  %v904_v63 = vpop.permute.xlu1 %903  ;;  %v872_v0 = vmul.f32 %v3516_v17, %v871_v39 }
 0x604   :  { %v876_v53 = vmul.f32 %v2977_v40, %v875_v46 }
 0x606   :  { %v877_v6 = vadd.f32 %v2977_v40, %v876_v53 }
 0x608   :  { %v881_v4 = vsel %vm880_vm4, %v2977_v40, %v877_v6 }
 0x609   :  { %v886_v7 = vsel %vm883_vm5, %v885_v5, %v881_v4 }
 0x60a   :  { %v887_v9 = vmul.f32 %v3520_v22, %v886_v7 }
 0x60b   :  { %v2901_v54 = vpop.permute.xlu0 %2900 }
 0x60c   :  { %v2902_v58 = vunpack.i.l.bf16 %v2901_v54  ;;  %v2903_v59 = vunpack.i.h.bf16 %v2901_v54 }
 0x60e   :  { %934 = vmatpush.msra.mxu2 %v2902_v58  ;;  %v387_v58 = vld [vmem:[%s4109_s4 + $0x10] sm:$0xff] }
 0x60f   :  { %971 = vmatpush.msrb.mxu3 %v387_v58 }
 0x610   :  { %935 = vmatpush.msra.mxu2 %v2903_v59 }
 0x612   :  { %936 = vmatpush.msra.mxu2 %v904_v63 }
 0x613   :  { %2750 = vmatmul.msk.f32.vlgmr.msra.gmra.mxu2 %vm434_vm11, %v872_v0 }
 0x61b   :  { %2751 = vmatmul.msk.f32.gmra.mxu2 %vm434_vm11, %v887_v9 }
 0x629   :  { %v857_v11 = vpop.xlane.xlu2 %856 }
 0x62a   :  { %2978 = vrcp.f32 %v857_v11  ;;  %v899_v16 = vand.u32 2147483648, %v857_v11  ;;  %v897_v18 = vand.u32 2147483647, %v857_v11  ;;  %vm893_vm8 = vweird.f32 %v857_v11 }
 0x62c   :  { %v900_v24 = vor.u32 1.1754944e-38, %v899_v16  ;;  %vm898_vm10 = vcmp.eq.f32.partialorder %v897_v18, 8.507059e+37  ;;  %v388_v16 = vld [vmem:[%s4109_s4 + $0x18] sm:$0xff] }
 0x62d   :  { %1175 = vmatpush.msrb.mxu2 %v388_v16 }
 0x630   :  { %v2979_v12 = vpop.eup %2978 }
 0x631   :  { %v889_v3 = vmul.f32 %v2979_v12, %v857_v11  ;;  %v2906_v13 = vpop.permute.xlu2 %2905  ;;  %vm894_vm7 = vweird.f32 %v2979_v12 }
 0x632   :  { %v2907_v15 = vunpack.i.l.bf16 %v2906_v13  ;;  %v2908_v19 = vunpack.i.h.bf16 %v2906_v13  ;;  %vm895_vm9 = vmor %vm893_vm8, %vm894_vm7 }
 0x633   :  { %v890_v17 = vsub.f32 1.0, %v889_v3 }
 0x634   :  { %1138 = vmatpush.msrb.mxu1 %v2907_v15 }
 0x635   :  { %v891_v10 = vmul.f32 %v2979_v12, %v890_v17 }
 0x636   :  { %1139 = vmatpush.msrb.mxu1 %v2908_v19 }
 0x637   :  { %v892_v21 = vadd.f32 %v2979_v12, %v891_v10 }
 0x639   :  { %v896_v22 = vsel %vm895_vm9, %v2979_v12, %v892_v21 }
 0x63a   :  { %v901_v25 = vsel %vm898_vm10, %v900_v24, %v896_v22 }
 0x63b   :  { %v902_v51 = vmul.f32 %v3531_v23, %v901_v25 }
 0x63d   :  { %2752 = vmatmul.msk.f32.gmra.mxu2 %vm434_vm11, %v902_v51 }
 0x65a   :  { %v1055_v27 = vpop.xlane.xlu1 %1054 }
 0x65b   :  { %2980 = vrcp.f32 %v1055_v27  ;;  %v1073_v35 = vand.u32 2147483648, %v1055_v27  ;;  %vm1067_vm13 = vweird.f32 %v1055_v27  ;;  %v1071_v23 = vand.u32 2147483647, %v1055_v27 }
 0x65d   :  { %v1074_v38 = vor.u32 1.1754944e-38, %v1073_v35  ;;  %vm1072_vm15 = vcmp.eq.f32.partialorder %v1071_v23, 8.507059e+37 }
 0x661   :  { %v2981_v28 = vpop.eup %2980 }
 0x662   :  { %v1063_v29 = vmul.f32 %v2981_v28, %v1055_v27  ;;  %vm1068_vm12 = vweird.f32 %v2981_v28 }
 0x663   :  { %vm1069_vm14 = vmor %vm1067_vm13, %vm1068_vm12 }
 0x664   :  { %v1064_v30 = vsub.f32 1.0, %v1063_v29  ;;  %v3590_v29 = vld [vmem:[#allocation5 + $0x8] sm:$0xff] }
 0x666   :  { %v1065_v32 = vmul.f32 %v2981_v28, %v1064_v30  ;;  %v1192_v30 = vperm.slane %v3590_v29, 7 }
 0x668   :  { %v1066_v33 = vadd.f32 %v2981_v28, %v1065_v32  ;;  %v1058_v34 = vpop.xlane.xlu0 %1057 }
 0x669   :  { %2982 = vrcp.f32 %v1058_v34  ;;  %v1088_v49 = vand.u32 2147483648, %v1058_v34  ;;  %v1086_v53 = vand.u32 2147483647, %v1058_v34  ;;  %vm1082_vm2 = vweird.f32 %v1058_v34 }
 0x66a   :  { %v1070_v36 = vsel %vm1069_vm14, %v2981_v28, %v1066_v33 }
 0x66b   :  { %v1075_v62 = vsel %vm1072_vm15, %v1074_v38, %v1070_v36  ;;  %v1089_v59 = vor.u32 1.1754944e-38, %v1088_v49  ;;  %vm1087_vm4 = vcmp.eq.f32.partialorder %v1086_v53, 8.507059e+37 }
 0x66c   :  { %v1076_v48 = vmul.f32 %v3537_v41, %v1075_v62 }
 0x66f   :  { %v2983_v40 = vpop.eup %2982 }
 0x670   :  { %v1078_v44 = vmul.f32 %v2983_v40, %v1058_v34  ;;  %v1061_v45 = vpop.xlane.xlu0 %1060  ;;  %vm1083_vm1 = vweird.f32 %v2983_v40 }
 0x671   :  { %2984 = vrcp.f32 %v1061_v45  ;;  %vm1084_vm3 = vmor %vm1082_vm2, %vm1083_vm1  ;;  %v1103_v1 = vand.u32 2147483648, %v1061_v45  ;;  %v1101_v5 = vand.u32 2147483647, %v1061_v45  ;;  %vm1097_vm7 = vweird.f32 %v1061_v45 }
 0x672   :  { %v1079_v37 = vsub.f32 1.0, %v1078_v44  ;;  %v1108_v46 = vpop.permute.xlu1 %1107 }
 0x673   :  { %1140 = vmatpush.msrb.mxu1 %v1108_v46  ;;  %v1104_v11 = vor.u32 1.1754944e-38, %v1103_v1  ;;  %vm1102_vm9 = vcmp.eq.f32.partialorder %v1101_v5, 8.507059e+37  ;;  %v1272_v5 = vld [vmem:[%s4110_s5 + $0x10] sm:$0xff] }
 0x674   :  { %v1080_v52 = vmul.f32 %v2983_v40, %v1079_v37  ;;  %2762 = vmatmul.msk.f32.vlgmr.msrb.gmra.mxu1 %vm434_vm11, %v1076_v48 }
 0x675   :  { %v702_v54 = vpop.f32.mrf.mxu2 }
 0x676   :  { %2738 = vmatmul.msk.f32.vlgmr.msra.gmra.mxu3 %vm389_vm6, %v702_v54  ;;  %v1081_v57 = vadd.f32 %v2983_v40, %v1080_v52 }
 0x677   :  { %v2985_v39 = vpop.eup %2984 }
 0x678   :  { %v1093_v41 = vmul.f32 %v2985_v39, %v1061_v45  ;;  %v1085_v6 = vsel %vm1084_vm3, %v2983_v40, %v1081_v57  ;;  %vm1098_vm5 = vweird.f32 %v2985_v39 }
 0x679   :  { %v1090_v60 = vsel %vm1087_vm4, %v1089_v59, %v1085_v6  ;;  %vm1099_vm8 = vmor %vm1097_vm7, %vm1098_vm5 }
 0x67a   :  { %v1094_v63 = vsub.f32 1.0, %v1093_v41  ;;  %v1091_v0 = vmul.f32 %v3545_v20, %v1090_v60 }
 0x67c   :  { %v1095_v4 = vmul.f32 %v2985_v39, %v1094_v63  ;;  %2763 = vmatmul.msk.f32.gmra.mxu1 %vm434_vm11, %v1091_v0 }
 0x67d   :  { %v705_v7 = vpop.f32.mrf.mxu2 }
 0x67e   :  { %2739 = vmatmul.msk.f32.gmra.mxu3 %vm389_vm6, %v705_v7  ;;  %v1096_v9 = vadd.f32 %v2985_v39, %v1095_v4  ;;  %v1273_v4 = vld [vmem:[%s4110_s5 + $0x18] sm:$0xff]  ;;  %v1271_v7 = vld [vmem:[%s4110_s5 + $0x8] sm:$0xff] }
 0x67f   :  { %1296 = vmatpush.msra.mxu3 %v1273_v4  ;;  %v1377_v4 = vld [vmem:[%s4111_s6 + $0x20] sm:$0xff] }
 0x680   :  { %v1100_v12 = vsel %vm1099_vm8, %v2985_v39, %v1096_v9  ;;  %v1270_v9 = vld [vmem:[%s4110_s5] sm:$0xff] }
 0x681   :  { %v1105_v3 = vsel %vm1102_vm9, %v1104_v11, %v1100_v12  ;;  %1297 = vmatpush.msra.mxu3 %v1272_v5  ;;  %v1376_v5 = vld [vmem:[%s4111_s6 + $0x18] sm:$0xff] }
 0x682   :  { %v1106_v13 = vmul.f32 %v3550_v31, %v1105_v3 }
 0x683   :  { %1298 = vmatpush.msra.mxu3 %v1271_v7 }
 0x684   :  { %2764 = vmatmul.msk.f32.gmra.mxu1 %vm434_vm11, %v1106_v13 }
 0x685   :  { %v708_v20 = vpop.f32.mrf.mxu2  ;;  %1299 = vmatpush.msra.mxu3 %v1270_v9  ;;  %v1375_v9 = vld [vmem:[%s4111_s6 + $0x10] sm:$0xff] }
 0x686   :  { %2740 = vmatmul.msk.f32.gmra.mxu3 %vm389_vm6, %v708_v20 }
 0x696   :  { %v938_v15 = vpop.f32.mrf.mxu2 }
 0x697   :  { %2753 = vmatmul.msk.f32.vlgmr.msrb.gmra.mxu3 %vm389_vm6, %v938_v15 }
 0x69e   :  { %v941_v17 = vpop.f32.mrf.mxu2 }
 0x69f   :  { %2754 = vmatmul.msk.f32.gmra.mxu3 %vm389_vm6, %v941_v17 }
 0x6c0   :  { %v944_v19 = vpop.f32.mrf.mxu2 }
 0x6c1   :  { %2755 = vmatmul.msk.f32.gmra.mxu3 %vm389_vm6, %v944_v19 }
 0x6f1   :  { %v1142_v31 = vpop.f32.mrf.mxu1 }
 0x6f2   :  { %2765 = vmatmul.msk.f32.vlgmr.msrb.gmra.mxu2 %vm389_vm6, %v1142_v31 }
 0x6f9   :  { %v1145_v10 = vpop.f32.mrf.mxu1  ;;  %v737_v21 = vpop.f32.mrf.mxu3 }
 0x6fa   :  { %2766 = vmatmul.msk.f32.gmra.mxu2 %vm389_vm6, %v1145_v10  ;;  %v773_v51 = vadd.f32 %v3486_v42, %v737_v21 }
 0x701   :  { %v1148_v18 = vpop.f32.mrf.mxu1  ;;  %v740_v24 = vpop.f32.mrf.mxu3 }
 0x702   :  { %2767 = vmatmul.msk.f32.gmra.mxu2 %vm389_vm6, %v1148_v18  ;;  %v776_v34 = vadd.f32 %v3488_v43, %v740_v24 }
 0x709   :  { %v743_v22 = vpop.f32.mrf.mxu3 }
 0x70a   :  { %v779_v44 = vadd.f32 %v3490_v47, %v743_v22 }
 0x71a   :  { %v973_v25 = vpop.f32.mrf.mxu3 }
 0x71b   :  { %v982_v26 = vadd.f32 %v973_v25, %v773_v51 }
 0x722   :  { %v976_v33 = vpop.f32.mrf.mxu3 }
 0x723   :  { %v983_v23 = vadd.f32 %v976_v33, %v776_v34 }
 0x744   :  { %v979_v62 = vpop.f32.mrf.mxu3 }
 0x775   :  { %v1177_v27 = vpop.f32.mrf.mxu2 }
 0x776   :  { %v1186_v28 = vadd.f32 %v1177_v27, %v982_v26  ;;  %v1262_v26 = vperm.slane %v3590_v29, 2 }
 0x778   :  { %v1189_v32 = vadd.f32 %v1186_v28, %v3270_v56  ;;  %v984_v56 = vadd.f32 %v979_v62, %v779_v44 }
 0x77a   :  { %v3595_v35 = vadd.f32 %v1192_v30, %v1189_v32  ;;  %v1266_v32 = vperm.slane %v3590_v29, 3 }
 0x77c   :  { %v1196_v36 = vsel %vm125_vm0, %v3595_v35, 0.0 }
 0x77d   :  { %v1180_v38 = vpop.f32.mrf.mxu2  ;;  %1197 = vadd.xlane.f32.xlu2 %v1196_v36 }
 0x77e   :  { %v1187_v42 = vadd.f32 %v1180_v38, %v983_v23 }
 0x780   :  { %v1190_v40 = vadd.f32 %v1187_v42, %v3274_v2 }
 0x782   :  { %v3601_v45 = vadd.f32 %v1192_v30, %v1190_v40 }
 0x784   :  { %v1199_v43 = vsel %vm125_vm0, %v3601_v45, 0.0 }
 0x785   :  { %v1183_v37 = vpop.f32.mrf.mxu2  ;;  %1200 = vadd.xlane.f32.xlu0 %v1199_v43 }
 0x786   :  { %v1188_v46 = vadd.f32 %v1183_v37, %v984_v56 }
 0x788   :  { %v1191_v48 = vadd.f32 %v1188_v46, %v3278_v8 }
 0x78a   :  { %v3606_v49 = vadd.f32 %v1192_v30, %v1191_v48 }
 0x78c   :  { %v1202_v52 = vsel %vm125_vm0, %v3606_v49, 0.0 }
 0x78d   :  { %1203 = vadd.xlane.f32.xlu1 %v1202_v52 }
 0x7f0   :  { %v1198_v2 = vpop.xlane.xlu2 %1197 }
 0x7f1   :  { %v1205_v47 = vmul.f32 %v1198_v2, %v3257_v14 }
 0x7f3   :  { %v1208_v53 = vsub.f32 %v3595_v35, %v1205_v47 }
 0x7f5   :  { %v1211_v54 = vmul.f32 %v1208_v53, %v1208_v53 }
 0x7f7   :  { %v1214_v57 = vsel %vm125_vm0, %v1211_v54, 0.0  ;;  %v1388_v54 = vld [vmem:[%s4111_s6 + $0x78] sm:$0xff] }
 0x7f8   :  { %1215 = vadd.xlane.f32.xlu0 %v1214_v57  ;;  %v1201_v58 = vpop.xlane.xlu0 %1200  ;;  %1390 = vmatpush.msrb.mxu0 %v1388_v54  ;;  %v1387_v57 = vld [vmem:[%s4111_s6 + $0x70] sm:$0xff] }
 0x7f9   :  { %v1206_v39 = vmul.f32 %v1201_v58, %v3257_v14  ;;  %v1386_v58 = vld [vmem:[%s4111_s6 + $0x68] sm:$0xff] }
 0x7fa   :  { %1391 = vmatpush.msrb.mxu0 %v1387_v57 }
 0x7fb   :  { %v1209_v8 = vsub.f32 %v3601_v45, %v1206_v39  ;;  %v1385_v39 = vld [vmem:[%s4111_s6 + $0x60] sm:$0xff] }
 0x7fc   :  { %1392 = vmatpush.msrb.mxu0 %v1386_v58 }
 0x7fd   :  { %v1212_v59 = vmul.f32 %v1209_v8, %v1209_v8 }
 0x7fe   :  { %1393 = vmatpush.msrb.mxu0 %v1385_v39 }
 0x7ff   :  { %v1217_v41 = vsel %vm125_vm0, %v1212_v59, 0.0  ;;  %v1383_v59 = vld [vmem:[%s4111_s6 + $0x50] sm:$0xff] }
 0x800   :  { %1218 = vadd.xlane.f32.xlu0 %v1217_v41  ;;  %v1204_v6 = vpop.xlane.xlu1 %1203  ;;  %v1382_v41 = vld [vmem:[%s4111_s6 + $0x48] sm:$0xff] }
 0x801   :  { %v1207_v60 = vmul.f32 %v1204_v6, %v3257_v14  ;;  %v1381_v6 = vld [vmem:[%s4111_s6 + $0x40] sm:$0xff] }
 0x803   :  { %v3618_v63 = vsub.f32 %v3606_v49, %v1207_v60  ;;  %v1380_v60 = vld [vmem:[%s4111_s6 + $0x38] sm:$0xff] }
 0x805   :  { %v1213_v0 = vmul.f32 %v3618_v63, %v3618_v63 }
 0x807   :  { %v1220_v1 = vsel %vm125_vm0, %v1213_v0, 0.0  ;;  %v1378_v0 = vld [vmem:[%s4111_s6 + $0x28] sm:$0xff] }
 0x808   :  { %1221 = vadd.xlane.f32.xlu0 %v1220_v1  ;;  %v81_v1 = vld [vmem:[%s4107_s2] sm:$0x3] }
 0x809   :  { %v1274_v7 = vperm.slane %v81_v1, 0 }
 0x86b   :  { %v1216_v11 = vpop.xlane.xlu0 %1215 }
 0x86c   :  { %v1223_v12 = vmul.f32 %v1216_v11, %v3257_v14 }
 0x86e   :  { %v1226_v3 = vadd.f32 1e-05, %v1223_v12  ;;  %v1374_v12 = vld [vmem:[%s4111_s6 + $0x8] sm:$0xff] }
 0x870   :  { %2986 = vrsqrt.f32 %v1226_v3  ;;  %vm1235_vm12 = vweird.f32 %v1226_v3 }
 0x873   :  { %v1219_v13 = vpop.xlane.xlu0 %1218 }
 0x874   :  { %v1224_v20 = vmul.f32 %v1219_v13, %v3257_v14  ;;  %v1373_v13 = vld [vmem:[%s4111_s6] sm:$0xff] }
 0x876   :  { %v2987_v15 = vpop.eup %2986  ;;  %v1227_v17 = vadd.f32 1e-05, %v1224_v20 }
 0x877   :  { %v1230_v16 = vmul.f32 %v2987_v15, %v1226_v3  ;;  %vm1236_vm10 = vweird.f32 %v2987_v15 }
 0x878   :  { %2988 = vrsqrt.f32 %v1227_v17  ;;  %vm1237_vm13 = vmor %vm1235_vm12, %vm1236_vm10  ;;  %vm1245_vm15 = vweird.f32 %v1227_v17 }
 0x879   :  { %v1231_v19 = vmul.f32 %v2987_v15, %v1230_v16 }
 0x87b   :  { %v1232_v31 = vmul.f32 0.5, %v1231_v19  ;;  %v1222_v10 = vpop.xlane.xlu0 %1221 }
 0x87c   :  { %v1225_v18 = vmul.f32 %v1222_v10, %v3257_v14 }
 0x87d   :  { %v1233_v21 = vsub.f32 1.5, %v1232_v31 }
 0x87e   :  { %v2989_v24 = vpop.eup %2988  ;;  %v1228_v22 = vadd.f32 1e-05, %v1225_v18 }
 0x87f   :  { %v1234_v25 = vmul.f32 %v2987_v15, %v1233_v21  ;;  %v1240_v51 = vmul.f32 %v2989_v24, %v1227_v17  ;;  %vm1246_vm14 = vweird.f32 %v2989_v24 }
 0x880   :  { %2990 = vrsqrt.f32 %v1228_v22  ;;  %vm1247_vm1 = vmor %vm1245_vm15, %vm1246_vm14  ;;  %vm1255_vm3 = vweird.f32 %v1228_v22 }
 0x881   :  { %v1238_v27 = vsel %vm1237_vm13, %v2987_v15, %v1234_v25  ;;  %v1241_v28 = vmul.f32 %v2989_v24, %v1240_v51 }
 0x882   :  { %v1259_v30 = vmul.f32 %v1238_v27, %v1208_v53 }
 0x883   :  { %v1242_v33 = vmul.f32 0.5, %v1241_v28 }
 0x884   :  { %v1263_v34 = vmul.f32 %v1262_v26, %v1259_v30 }
 0x885   :  { %v1243_v23 = vsub.f32 1.5, %v1242_v33 }
 0x886   :  { %v2991_v36 = vpop.eup %2990  ;;  %v1267_v38 = vadd.f32 %v1266_v32, %v1263_v34 }
 0x887   :  { %v1244_v42 = vmul.f32 %v2989_v24, %v1243_v23  ;;  %v1250_v40 = vmul.f32 %v2991_v36, %v1228_v22  ;;  %vm1256_vm2 = vweird.f32 %v2991_v36 }
 0x888   :  { %2768 = vmatmul.msk.f32.vlgmr.msra.gmra.mxu3 %vm125_vm0, %v1267_v38  ;;  %vm1257_vm4 = vmor %vm1255_vm3, %vm1256_vm2 }
 0x889   :  { %v1248_v62 = vsel %vm1247_vm1, %v2989_v24, %v1244_v42  ;;  %v1251_v44 = vmul.f32 %v2991_v36, %v1250_v40 }
 0x88a   :  { %v1260_v56 = vmul.f32 %v1248_v62, %v1209_v8  ;;  %v1384_v8 = vld [vmem:[%s4111_s6 + $0x58] sm:$0xff] }
 0x88b   :  { %v1252_v43 = vmul.f32 0.5, %v1251_v44  ;;  %1394 = vmatpush.msrb.mxu0 %v1384_v8 }
 0x88c   :  { %v1264_v37 = vmul.f32 %v1262_v26, %v1260_v56 }
 0x88d   :  { %v1253_v46 = vsub.f32 1.5, %v1252_v43  ;;  %1395 = vmatpush.msrb.mxu0 %v1383_v59 }
 0x88e   :  { %v1268_v29 = vadd.f32 %v1266_v32, %v1264_v37 }
 0x88f   :  { %v1254_v48 = vmul.f32 %v2991_v36, %v1253_v46  ;;  %1396 = vmatpush.msrb.mxu0 %v1382_v41 }
 0x890   :  { %2769 = vmatmul.msk.f32.gmra.mxu3 %vm125_vm0, %v1268_v29 }
 0x891   :  { %v1258_v52 = vsel %vm1257_vm4, %v2991_v36, %v1254_v48  ;;  %1397 = vmatpush.msrb.mxu0 %v1381_v6 }
 0x892   :  { %v1261_v2 = vmul.f32 %v1258_v52, %v3618_v63  ;;  %v1379_v63 = vld [vmem:[%s4111_s6 + $0x30] sm:$0xff] }
 0x893   :  { %1398 = vmatpush.msrb.mxu0 %v1380_v60 }
 0x894   :  { %v1265_v47 = vmul.f32 %v1262_v26, %v1261_v2 }
 0x895   :  { %1399 = vmatpush.msrb.mxu0 %v1379_v63 }
 0x896   :  { %v1269_v53 = vadd.f32 %v1266_v32, %v1265_v47 }
 0x897   :  { %1400 = vmatpush.msrb.mxu0 %v1378_v0 }
 0x898   :  { %2770 = vmatmul.msk.f32.gmra.mxu3 %vm125_vm0, %v1269_v53 }
 0x899   :  { %1401 = vmatpush.msrb.mxu0 %v1377_v4  ;;  %v3695_v4 = vld [vmem:[#allocation5 + $0x10] sm:$0xff] }
 0x89b   :  { %1402 = vmatpush.msrb.mxu0 %v1376_v5  ;;  %v1389_v5 = vperm.slane %v3695_v4, 0 }
 0x89d   :  { %1403 = vmatpush.msrb.mxu0 %v1375_v9 }
 0x89f   :  { %1404 = vmatpush.msrb.mxu0 %v1374_v12 }
 0x8a1   :  { %1405 = vmatpush.msrb.mxu0 %v1373_v13 }
 0x90b   :  { %v1301_v11 = vpop.f32.mrf.mxu3 }
 0x90c   :  { %v1302_v3 = vadd.f32 %v1301_v11, %v1274_v7 }
 0x90e   :  { %v2771_v20 = vmul.f32 -1.702, %v1302_v3 }
 0x910   :  { %v1316_v15 = vmul.f32 1.442695, %v2771_v20 }
 0x912   :  { %2992 = vpow2.f32 %v1316_v15 }
 0x913   :  { %v1304_v17 = vpop.f32.mrf.mxu3 }
 0x914   :  { %v1305_v16 = vadd.f32 %v1304_v17, %v1274_v7 }
 0x916   :  { %v2772_v19 = vmul.f32 -1.702, %v1305_v16 }
 0x918   :  { %v2993_v31 = vpop.eup %2992  ;;  %v1318_v10 = vmul.f32 1.442695, %v2772_v19 }
 0x919   :  { %v1322_v18 = vadd.f32 1.0, %v2993_v31 }
 0x91a   :  { %2994 = vpow2.f32 %v1318_v10 }
 0x91b   :  { %2996 = vrcp.f32 %v1322_v18  ;;  %v1307_v21 = vpop.f32.mrf.mxu3  ;;  %v1336_v32 = vand.u32 2147483648, %v1322_v18  ;;  %v1334_v34 = vand.u32 2147483647, %v1322_v18  ;;  %vm1330_vm7 = vweird.f32 %v1322_v18 }
 0x91c   :  { %v1308_v24 = vadd.f32 %v1307_v21, %v1274_v7 }
 0x91d   :  { %v1337_v42 = vor.u32 1.1754944e-38, %v1336_v32  ;;  %vm1335_vm9 = vcmp.eq.f32.partialorder %v1334_v34, 8.507059e+37  ;;  %v2777_v34 = vld [vmem:[%s4108_s3 + $0x78] sm:$0xff] }
 0x91e   :  { %v2773_v22 = vmul.f32 -1.702, %v1308_v24  ;;  %1520 = vmatpush.msra.mxu1 %v2777_v34 }
 0x920   :  { %v2995_v25 = vpop.eup %2994  ;;  %v1320_v51 = vmul.f32 1.442695, %v2773_v22 }
 0x921   :  { %v2997_v26 = vpop.eup %2996  ;;  %v1323_v27 = vadd.f32 1.0, %v2995_v25 }
 0x922   :  { %v1326_v28 = vmul.f32 %v2997_v26, %v1322_v18  ;;  %2998 = vpow2.f32 %v1320_v51  ;;  %vm1331_vm5 = vweird.f32 %v2997_v26 }
 0x923   :  { %3000 = vrcp.f32 %v1323_v27  ;;  %vm1332_vm8 = vmor %vm1330_vm7, %vm1331_vm5  ;;  %v1351_v46 = vand.u32 2147483648, %v1323_v27  ;;  %v1349_v48 = vand.u32 2147483647, %v1323_v27  ;;  %vm1345_vm12 = vweird.f32 %v1323_v27 }
 0x924   :  { %v1327_v30 = vsub.f32 1.0, %v1326_v28 }
 0x925   :  { %v1352_v47 = vor.u32 1.1754944e-38, %v1351_v46  ;;  %vm1350_vm14 = vcmp.eq.f32.partialorder %v1349_v48, 8.507059e+37 }
 0x926   :  { %v1328_v33 = vmul.f32 %v2997_v26, %v1327_v30 }
 0x928   :  { %v2999_v23 = vpop.eup %2998  ;;  %v1329_v36 = vadd.f32 %v2997_v26, %v1328_v33  ;;  %v2784_v33 = vld [vmem:[%s4108_s3 + $0x98] sm:$0xff] }
 0x929   :  { %v3001_v38 = vpop.eup %3000  ;;  %v1324_v40 = vadd.f32 1.0, %v2999_v23  ;;  %v2791_v23 = vld [vmem:[%s4108_s3 + $0xb8] sm:$0xff]  ;;  %1552 = vmatpush.msra.mxu2 %v2784_v33 }
 0x92a   :  { %v1333_v62 = vsel %vm1332_vm8, %v2997_v26, %v1329_v36  ;;  %v1341_v44 = vmul.f32 %v3001_v38, %v1323_v27  ;;  %vm1346_vm10 = vweird.f32 %v3001_v38  ;;  %1584 = vmatpush.msrb.mxu3 %v2791_v23  ;;  %v2776_v36 = vld [vmem:[%s4108_s3 + $0x70] sm:$0xff]  ;;  %v1539_v23 = vperm.slane %v3695_v4, 6 }
 0x92b   :  { %v1338_v56 = vsel %vm1335_vm9, %v1337_v42, %v1333_v62  ;;  %3002 = vrcp.f32 %v1324_v40  ;;  %vm1347_vm13 = vmor %vm1345_vm12, %vm1346_vm10  ;;  %v1366_v8 = vand.u32 2147483648, %v1324_v40  ;;  %v1364_v41 = vand.u32 2147483647, %v1324_v40  ;;  %v2790_v42 = vld [vmem:[%s4108_s3 + $0xb0] sm:$0xff]  ;;  %1521 = vmatpush.msra.mxu1 %v2776_v36  ;;  %v2782_v62 = vld [vmem:[%s4108_s3 + $0x88] sm:$0xff] }
 0x92c   :  { %v1370_v43 = vmul.f32 %v1338_v56, %v1302_v3  ;;  %v1342_v37 = vsub.f32 1.0, %v1341_v44  ;;  %vm1360_vm1 = vweird.f32 %v1324_v40  ;;  %1585 = vmatpush.msrb.mxu3 %v2790_v42  ;;  %v2789_v44 = vld [vmem:[%s4108_s3 + $0xa8] sm:$0xff]  ;;  %v2774_v56 = vld [vmem:[%s4108_s3 + $0x60] sm:$0xff]  ;;  %v1571_v36 = vperm.slane %v3695_v4, 7 }
 0x92d   :  { %v1367_v60 = vor.u32 1.1754944e-38, %v1366_v8  ;;  %vm1365_vm3 = vcmp.eq.f32.partialorder %v1364_v41, 8.507059e+37 }
 0x92e   :  { %1406 = vmatmul.f32.vlgmr.msrb.gmra.mxu0 %v1370_v43  ;;  %v1343_v29 = vmul.f32 %v3001_v38, %v1342_v37  ;;  %1586 = vmatpush.msrb.mxu3 %v2789_v44  ;;  %v2781_v43 = vld [vmem:[%s4108_s3 + $0x80] sm:$0xff] }
 0x92f   :  { %v2788_v37 = vld [vmem:[%s4108_s3 + $0xa0] sm:$0xff] }
 0x930   :  { %v1344_v52 = vadd.f32 %v3001_v38, %v1343_v29  ;;  %1587 = vmatpush.msrb.mxu3 %v2788_v37 }
 0x931   :  { %v3003_v2 = vpop.eup %3002 }
 0x932   :  { %v1348_v53 = vsel %vm1347_vm13, %v3001_v38, %v1344_v52  ;;  %v1356_v54 = vmul.f32 %v3003_v2, %v1324_v40  ;;  %vm1361_vm15 = vweird.f32 %v3003_v2  ;;  %v2783_v38 = vld [vmem:[%s4108_s3 + $0x90] sm:$0xff]  ;;  %v2775_v40 = vld [vmem:[%s4108_s3 + $0x68] sm:$0xff] }
 0x933   :  { %v1353_v57 = vsel %vm1350_vm14, %v1352_v47, %v1348_v53  ;;  %vm1362_vm2 = vmor %vm1360_vm1, %vm1361_vm15  ;;  %1553 = vmatpush.msra.mxu2 %v2783_v38  ;;  %1522 = vmatpush.msra.mxu1 %v2775_v40 }
 0x934   :  { %v1371_v58 = vmul.f32 %v1353_v57, %v1305_v16  ;;  %v1357_v39 = vsub.f32 1.0, %v1356_v54 }
 0x935   :  { %1554 = vmatpush.msra.mxu2 %v2782_v62  ;;  %1523 = vmatpush.msra.mxu1 %v2774_v56 }
 0x936   :  { %1409 = vmatmul.f32.gmra.mxu0 %v1371_v58  ;;  %v1358_v59 = vmul.f32 %v3003_v2, %v1357_v39 }
 0x937   :  { %1555 = vmatpush.msra.mxu2 %v2781_v43 }
 0x938   :  { %v1359_v6 = vadd.f32 %v3003_v2, %v1358_v59 }
 0x93a   :  { %v1363_v63 = vsel %vm1362_vm2, %v3003_v2, %v1359_v6 }
 0x93b   :  { %v1368_v0 = vsel %vm1365_vm3, %v1367_v60, %v1363_v63 }
 0x93c   :  { %v1372_v1 = vmul.f32 %v1368_v0, %v1308_v24  ;;  %v1485_v0 = vperm.slane %v3695_v4, 1 }
 0x93e   :  { %1412 = vmatmul.f32.gmra.mxu0 %v1372_v1 }
 0x9ab   :  { %v1407_v7 = vpop.f32.mrf.mxu0 }
 0x9ac   :  { %v1408_v9 = vadd.f32 %v1407_v7, %v1389_v5 }
 0x9ae   :  { %v3699_v11 = vadd.f32 %v1408_v9, %v3595_v35  ;;  %v1489_v9 = vperm.slane %v3695_v4, 2 }
 0x9b0   :  { %v1419_v12 = vsel %vm125_vm0, %v3699_v11, 0.0 }
 0x9b1   :  { %1420 = vadd.xlane.f32.xlu0 %v1419_v12 }
 0x9b3   :  { %v1410_v3 = vpop.f32.mrf.mxu0 }
 0x9b4   :  { %v1411_v13 = vadd.f32 %v1410_v3, %v1389_v5 }
 0x9b6   :  { %v3704_v20 = vadd.f32 %v1411_v13, %v3601_v45 }
 0x9b8   :  { %v1422_v15 = vsel %vm125_vm0, %v3704_v20, 0.0 }
 0x9b9   :  { %1423 = vadd.xlane.f32.xlu2 %v1422_v15 }
 0x9bb   :  { %v1413_v17 = vpop.f32.mrf.mxu0 }
 0x9bc   :  { %v1414_v16 = vadd.f32 %v1413_v17, %v1389_v5 }
 0x9be   :  { %v3709_v19 = vadd.f32 %v1414_v16, %v3606_v49 }
 0x9c0   :  { %v1425_v35 = vsel %vm125_vm0, %v3709_v19, 0.0 }
 0x9c1   :  { %1426 = vadd.xlane.f32.xlu0 %v1425_v35 }
 0xa24   :  { %v1421_v31 = vpop.xlane.xlu0 %1420 }
 0xa25   :  { %v1428_v10 = vmul.f32 %v1421_v31, %v3257_v14 }
 0xa27   :  { %v3715_v18 = vsub.f32 %v3699_v11, %v1428_v10 }
 0xa29   :  { %v1434_v45 = vmul.f32 %v3715_v18, %v3715_v18 }
 0xa2b   :  { %v1437_v21 = vsel %vm125_vm0, %v1434_v45, 0.0 }
 0xa2c   :  { %v1424_v24 = vpop.xlane.xlu2 %1423  ;;  %1438 = vadd.xlane.f32.xlu1 %v1437_v21 }
 0xa2d   :  { %v1429_v49 = vmul.f32 %v1424_v24, %v3257_v14 }
 0xa2f   :  { %v3722_v22 = vsub.f32 %v3704_v20, %v1429_v49 }
 0xa31   :  { %v1435_v25 = vmul.f32 %v3722_v22, %v3722_v22 }
 0xa33   :  { %v1440_v51 = vsel %vm125_vm0, %v1435_v25, 0.0 }
 0xa34   :  { %1441 = vadd.xlane.f32.xlu2 %v1440_v51  ;;  %v1427_v26 = vpop.xlane.xlu0 %1426 }
 0xa35   :  { %v1430_v27 = vmul.f32 %v1427_v26, %v3257_v14 }
 0xa37   :  { %v3729_v28 = vsub.f32 %v3709_v19, %v1430_v27 }
 0xa39   :  { %v1436_v30 = vmul.f32 %v3729_v28, %v3729_v28 }
 0xa3b   :  { %v1443_v32 = vsel %vm125_vm0, %v1436_v30, 0.0 }
 0xa3c   :  { %1444 = vadd.xlane.f32.xlu0 %v1443_v32 }
 0xa9f   :  { %v1439_v46 = vpop.xlane.xlu1 %1438 }
 0xaa0   :  { %v1446_v29 = vmul.f32 %v1439_v46, %v3257_v14  ;;  %v1498_v46 = vperm.slane %v3695_v4, 5 }
 0xaa2   :  { %v1449_v48 = vadd.f32 1e-05, %v1446_v29 }
 0xaa4   :  { %3004 = vrsqrt.f32 %v1449_v48  ;;  %vm1458_vm5 = vweird.f32 %v1449_v48 }
 0xaa7   :  { %v1442_v52 = vpop.xlane.xlu2 %1441 }
 0xaa8   :  { %v1447_v2 = vmul.f32 %v1442_v52, %v3257_v14 }
 0xaaa   :  { %v3005_v47 = vpop.eup %3004  ;;  %v1450_v53 = vadd.f32 1e-05, %v1447_v2 }
 0xaab   :  { %v1453_v54 = vmul.f32 %v3005_v47, %v1449_v48  ;;  %vm1459_vm4 = vweird.f32 %v3005_v47 }
 0xaac   :  { %3006 = vrsqrt.f32 %v1450_v53  ;;  %vm1460_vm7 = vmor %vm1458_vm5, %vm1459_vm4  ;;  %vm1468_vm9 = vweird.f32 %v1450_v53 }
 0xaad   :  { %v1454_v57 = vmul.f32 %v3005_v47, %v1453_v54 }
 0xaaf   :  { %v1455_v58 = vmul.f32 0.5, %v1454_v57  ;;  %v1445_v39 = vpop.xlane.xlu0 %1444 }
 0xab0   :  { %v1448_v8 = vmul.f32 %v1445_v39, %v3257_v14 }
 0xab1   :  { %v1456_v59 = vsub.f32 1.5, %v1455_v58 }
 0xab2   :  { %v3007_v41 = vpop.eup %3006  ;;  %v1451_v6 = vadd.f32 1e-05, %v1448_v8 }
 0xab3   :  { %v1457_v60 = vmul.f32 %v3005_v47, %v1456_v59  ;;  %v1463_v63 = vmul.f32 %v3007_v41, %v1450_v53  ;;  %vm1469_vm8 = vweird.f32 %v3007_v41 }
 0xab4   :  { %3008 = vrsqrt.f32 %v1451_v6  ;;  %vm1470_vm10 = vmor %vm1468_vm9, %vm1469_vm8  ;;  %vm1478_vm13 = vweird.f32 %v1451_v6 }
 0xab5   :  { %v1461_v1 = vsel %vm1460_vm7, %v3005_v47, %v1457_v60  ;;  %v1464_v5 = vmul.f32 %v3007_v41, %v1463_v63 }
 0xab6   :  { %v1482_v7 = vmul.f32 %v1461_v1, %v3715_v18 }
 0xab7   :  { %v1465_v12 = vmul.f32 0.5, %v1464_v5 }
 0xab8   :  { %v1486_v3 = vmul.f32 %v1485_v0, %v1482_v7 }
 0xab9   :  { %v1466_v13 = vsub.f32 1.5, %v1465_v12 }
 0xaba   :  { %v3009_v15 = vpop.eup %3008  ;;  %v1490_v17 = vadd.f32 %v1489_v9, %v1486_v3 }
 0xabb   :  { %v1467_v16 = vmul.f32 %v3007_v41, %v1466_v13  ;;  %v1473_v35 = vmul.f32 %v3009_v15, %v1451_v6  ;;  %vm1479_vm12 = vweird.f32 %v3009_v15 }
 0xabc   :  { %2778 = vmatmul.msk.f32.vlgmr.msra.gmra.mxu1 %vm125_vm0, %v1490_v17  ;;  %2785 = vmatmul.msk.f32.vlgmr.msra.gmra.mxu2 %vm125_vm0, %v1490_v17  ;;  %vm1480_vm14 = vmor %vm1478_vm13, %vm1479_vm12 }
 0xabd   :  { %v1471_v31 = vsel %vm1470_vm10, %v3007_v41, %v1467_v16  ;;  %v1474_v10 = vmul.f32 %v3009_v15, %v1473_v35  ;;  %2792 = vmatmul.msk.f32.vlgmr.msrb.gmra.mxu3 %vm125_vm0, %v1490_v17 }
 0xabe   :  { %v1483_v18 = vmul.f32 %v1471_v31, %v3722_v22 }
 0xabf   :  { %v1475_v45 = vmul.f32 0.5, %v1474_v10  ;;  %v2795_v10 = vld [vmem:[%s4109_s4 + $0x20] sm:$0xff] }
 0xac0   :  { %v1487_v21 = vmul.f32 %v1485_v0, %v1483_v18 }
 0xac1   :  { %v1476_v24 = vsub.f32 1.5, %v1475_v45 }
 0xac2   :  { %v1491_v49 = vadd.f32 %v1489_v9, %v1487_v21 }
 0xac3   :  { %v1477_v25 = vmul.f32 %v3009_v15, %v1476_v24 }
 0xac4   :  { %2779 = vmatmul.msk.f32.gmra.mxu1 %vm125_vm0, %v1491_v49  ;;  %2786 = vmatmul.msk.f32.gmra.mxu2 %vm125_vm0, %v1491_v49 }
 0xac5   :  { %v1481_v51 = vsel %vm1480_vm14, %v3009_v15, %v1477_v25  ;;  %2793 = vmatmul.msk.f32.gmra.mxu3 %vm125_vm0, %v1491_v49 }
 0xac6   :  { %v1484_v26 = vmul.f32 %v1481_v51, %v3729_v28 }
 0xac8   :  { %v1488_v27 = vmul.f32 %v1485_v0, %v1484_v26 }
 0xaca   :  { %v1492_v30 = vadd.f32 %v1489_v9, %v1488_v27 }
 0xacc   :  { %2780 = vmatmul.msk.f32.gmra.mxu1 %vm125_vm0, %v1492_v30  ;;  %2787 = vmatmul.msk.f32.gmra.mxu2 %vm125_vm0, %v1492_v30 }
 0xacd   :  { %2794 = vmatmul.msk.f32.gmra.mxu3 %vm125_vm0, %v1492_v30 }
 0xb39   :  { %v1525_v56 = vpop.f32.mrf.mxu1 }
 0xb3a   :  { %v1526_v48 = vadd.f32 %v1525_v56, %v1498_v46 }
 0xb3f   :  { %v1557_v22 = vpop.f32.mrf.mxu2 }
 0xb40   :  { %v1589_v32 = vpop.f32.mrf.mxu3  ;;  %v1558_v29 = vadd.f32 %v1557_v22, %v1539_v23 }
 0xb41   :  { %v3795_v37 = vadd.f32 %v1589_v32, %v1571_v36  ;;  %v1528_v52 = vpop.f32.mrf.mxu1 }
 0xb42   :  { %v1529_v2 = vadd.f32 %v1528_v52, %v1498_v46 }
 0xb47   :  { %v1560_v33 = vpop.f32.mrf.mxu2 }
 0xb48   :  { %v1592_v34 = vpop.f32.mrf.mxu3  ;;  %v1561_v43 = vadd.f32 %v1560_v33, %v1539_v23 }
 0xb49   :  { %v1593_v40 = vadd.f32 %v1592_v34, %v1571_v36  ;;  %v1531_v47 = vpop.f32.mrf.mxu1 }
 0xb4a   :  { %v1532_v53 = vadd.f32 %v1531_v47, %v1498_v46 }
 0xb4f   :  { %v1563_v38 = vpop.f32.mrf.mxu2 }
 0xb50   :  { %v3789_v42 = vadd.f32 %v1563_v38, %v1539_v23  ;;  %v1595_v28 = vpop.f32.mrf.mxu3 }
 0xb51   :  { %v1596_v62 = vadd.f32 %v1595_v28, %v1571_v36 }
 0xb52   :  { %2799 = vmatpush.xpose.msk.msrb.mxu1 %vm389_vm6, %v3789_v42 }
 0xb53   :  { %1741 = vmatpush.msrb.mxu2 %v1596_v62  ;;  %v3793_v44 = vpack.i.bf16 %v1593_v40, %v1596_v62 }
 0xb55   :  { %1742 = vmatpush.msrb.mxu2 %v1593_v40 }
 0xb56   :  { %2800 = vmatpush.xpose.msk.msrb.mxu1 %vm389_vm6, %v1561_v43 }
 0xb57   :  { %1743 = vmatpush.msrb.mxu2 %v3795_v37 }
 0xb59   :  { %1982 = vmatpush.msra.mxu2 %v2795_v10 }
 0xb5a   :  { %2801 = vmatpush.xpose.msk.msrb.mxu1 %vm389_vm6, %v1558_v29 }
 0xb5d   :  { %2802 = vmatmul.msk.f32.vlgmr.msrb.gmra.mxu1 %vm389_vm6, %v1526_v48 }
 0xb65   :  { %2803 = vmatmul.msk.f32.gmra.mxu1 %vm389_vm6, %v1529_v2 }
 0xb6d   :  { %2804 = vmatmul.msk.f32.gmra.mxu1 %vm389_vm6, %v1532_v53 }
 0xbda   :  { %v1638_v54 = vpop.f32.mrf.mxu1 }
 0xbdb   :  { %v1639_v57 = vadd.f32 %v1638_v54, %v3383_v50 }
 0xbdd   :  { %v1647_v4 = vsel %vm434_vm11, %v1639_v57, -inf }
 0xbde   :  { %1648 = vmax.xlane.f32.xlu1 %v1647_v4 }
 0xbe2   :  { %v1641_v58 = vpop.f32.mrf.mxu1 }
 0xbe3   :  { %v1642_v39 = vadd.f32 %v1641_v58, %v3387_v55 }
 0xbe5   :  { %v1650_v8 = vsel %vm434_vm11, %v1642_v39, -inf }
 0xbe6   :  { %1651 = vmax.xlane.f32.xlu2 %v1650_v8 }
 0xbea   :  { %v1644_v59 = vpop.f32.mrf.mxu1 }
 0xbeb   :  { %v1645_v41 = vadd.f32 %v1644_v59, %v3391_v61 }
 0xbed   :  { %v1653_v6 = vsel %vm434_vm11, %v1645_v41, -inf }
 0xbee   :  { %1654 = vmax.xlane.f32.xlu0 %v1653_v6 }
 0xc51   :  { %v1649_v60 = vpop.xlane.xlu1 %1648 }
 0xc52   :  { %v1656_v63 = vsub.f32 %v1639_v57, %v1649_v60 }
 0xc54   :  { %v1659_v0 = vmul.f32 1.442695, %v1656_v63 }
 0xc56   :  { %3010 = vpow2.f32 %v1659_v0 }
 0xc59   :  { %v1652_v1 = vpop.xlane.xlu2 %1651 }
 0xc5a   :  { %v1657_v5 = vsub.f32 %v1642_v39, %v1652_v1 }
 0xc5c   :  { %v3011_v7 = vpop.eup %3010  ;;  %v1661_v9 = vmul.f32 1.442695, %v1657_v5 }
 0xc5d   :  { %v1665_v12 = vsel %vm434_vm11, %v3011_v7, 0.0 }
 0xc5e   :  { %3012 = vpow2.f32 %v1661_v9  ;;  %1666 = vadd.xlane.f32.xlu1 %v1665_v12 }
 0xc61   :  { %v1655_v3 = vpop.xlane.xlu0 %1654 }
 0xc62   :  { %v1658_v13 = vsub.f32 %v1645_v41, %v1655_v3 }
 0xc64   :  { %v3811_v15 = vpop.eup %3012  ;;  %v1663_v17 = vmul.f32 1.442695, %v1658_v13 }
 0xc65   :  { %v1668_v16 = vsel %vm434_vm11, %v3811_v15, 0.0 }
 0xc66   :  { %3014 = vpow2.f32 %v1663_v17  ;;  %1669 = vadd.xlane.f32.xlu2 %v1668_v16 }
 0xc6c   :  { %v3815_v35 = vpop.eup %3014 }
 0xc6d   :  { %v1671_v31 = vsel %vm434_vm11, %v3815_v35, 0.0 }
 0xc6e   :  { %1672 = vadd.xlane.f32.xlu0 %v1671_v31 }
 0xc77   :  { %1764 = vrot.lane.b32.xlu1 %v3789_v42, %s3192_s20 }
 0xc7e   :  { %1762 = vrot.lane.b32.xlu2 %v1561_v43, %s3192_s20 }
 0xc7f   :  { %1756 = vrot.lane.b32.xlu1 %v1529_v2, %s3192_s20 }
 0xc82   :  { %1760 = vrot.lane.b32.xlu0 %v1558_v29, %s3192_s20 }
 0xc86   :  { %2207 = vrot.lane.b32.xlu2 %v3789_v42, %s3194_s7 }
 0xc87   :  { %2205 = vrot.lane.b32.xlu1 %v1561_v43, %s3194_s7 }
 0xc8a   :  { %1754 = vrot.lane.b32.xlu0 %v1526_v48, %s3192_s20 }
 0xc8e   :  { %1758 = vrot.lane.b32.xlu2 %v1532_v53, %s3192_s20 }
 0xc8f   :  { %2203 = vrot.lane.b32.xlu1 %v1558_v29, %s3194_s7 }
 0xc92   :  { %2003 = vrot.lane.b32.xlu0 %v3789_v42, %s3193_s0 }
 0xc96   :  { %2197 = vrot.lane.b32.xlu2 %v1526_v48, %s3194_s7 }
 0xc97   :  { %1993 = vrot.lane.b32.xlu1 %v1526_v48, %s3193_s0 }
 0xc9a   :  { %2001 = vrot.lane.b32.xlu0 %v1561_v43, %s3193_s0 }
 0xc9e   :  { %2199 = vrot.lane.b32.xlu2 %v1529_v2, %s3194_s7 }
 0xc9f   :  { %2201 = vrot.lane.b32.xlu1 %v1532_v53, %s3194_s7 }
 0xca2   :  { %1999 = vrot.lane.b32.xlu0 %v1558_v29, %s3193_s0 }
 0xca6   :  { %1997 = vrot.lane.b32.xlu2 %v1532_v53, %s3193_s0 }
 0xcaa   :  { %1995 = vrot.lane.b32.xlu0 %v1529_v2, %s3193_s0 }
 0xcd1   :  { %v1667_v18 = vpop.xlane.xlu1 %1666 }
 0xcd2   :  { %3016 = vrcp.f32 %v1667_v18  ;;  %v1685_v25 = vand.u32 2147483648, %v1667_v18  ;;  %v1683_v26 = vand.u32 2147483647, %v1667_v18  ;;  %vm1679_vm1 = vweird.f32 %v1667_v18 }
 0xcd4   :  { %v1686_v22 = vor.u32 1.1754944e-38, %v1685_v25  ;;  %vm1684_vm3 = vcmp.eq.f32.partialorder %v1683_v26, 8.507059e+37 }
 0xcd8   :  { %v3017_v45 = vpop.eup %3016 }
 0xcd9   :  { %v1675_v21 = vmul.f32 %v3017_v45, %v1667_v18  ;;  %v1670_v24 = vpop.xlane.xlu2 %1669  ;;  %vm1680_vm15 = vweird.f32 %v3017_v45 }
 0xcda   :  { %3018 = vrcp.f32 %v1670_v24  ;;  %vm1681_vm2 = vmor %vm1679_vm1, %vm1680_vm15  ;;  %v1700_v28 = vand.u32 2147483648, %v1670_v24  ;;  %v1698_v62 = vand.u32 2147483647, %v1670_v24  ;;  %vm1694_vm5 = vweird.f32 %v1670_v24 }
 0xcdb   :  { %v1676_v49 = vsub.f32 1.0, %v1675_v21 }
 0xcdc   :  { %v1701_v46 = vor.u32 1.1754944e-38, %v1700_v28  ;;  %vm1699_vm8 = vcmp.eq.f32.partialorder %v1698_v62, 8.507059e+37 }
 0xcdd   :  { %v1677_v51 = vmul.f32 %v3017_v45, %v1676_v49 }
 0xcdf   :  { %v1678_v27 = vadd.f32 %v3017_v45, %v1677_v51 }
 0xce0   :  { %v3019_v30 = vpop.eup %3018 }
 0xce1   :  { %v1682_v32 = vsel %vm1681_vm2, %v3017_v45, %v1678_v27  ;;  %v1690_v33 = vmul.f32 %v3019_v30, %v1670_v24  ;;  %v1763_v34 = vpop.permute.xlu2 %1762  ;;  %v1673_v23 = vpop.xlane.xlu0 %1672  ;;  %vm1695_vm4 = vweird.f32 %v3019_v30 }
 0xce2   :  { %v1687_v36 = vsel %vm1684_vm3, %v1686_v22, %v1682_v32  ;;  %3020 = vrcp.f32 %v1673_v23  ;;  %vm1696_vm7 = vmor %vm1694_vm5, %vm1695_vm4  ;;  %v1715_v57 = vand.u32 2147483648, %v1673_v23  ;;  %v1713_v58 = vand.u32 2147483647, %v1673_v23 }
 0xce3   :  { %v1691_v38 = vsub.f32 1.0, %v1690_v33  ;;  %v1688_v42 = vmul.f32 %v3011_v7, %v1687_v36  ;;  %vm1709_vm10 = vweird.f32 %v1673_v23 }
 0xce4   :  { %v1716_v8 = vor.u32 1.1754944e-38, %v1715_v57  ;;  %vm1714_vm13 = vcmp.eq.f32.partialorder %v1713_v58, 8.507059e+37 }
 0xce5   :  { %v1692_v40 = vmul.f32 %v3019_v30, %v1691_v38  ;;  %2805 = vmatmul.msk.f32.vlgmr.msrb.gmra.mxu2 %vm434_vm11, %v1688_v42 }
 0xce7   :  { %v1693_v56 = vadd.f32 %v3019_v30, %v1692_v40 }
 0xce8   :  { %v3021_v43 = vpop.eup %3020 }
 0xce9   :  { %v1705_v29 = vmul.f32 %v3021_v43, %v1673_v23  ;;  %v2208_v48 = vpop.permute.xlu2 %2207  ;;  %v1765_v52 = vpop.permute.xlu1 %1764  ;;  %v1697_v2 = vsel %vm1696_vm7, %v3019_v30, %v1693_v56  ;;  %vm1710_vm9 = vweird.f32 %v3021_v43 }
 0xcea   :  { %2808 = vmatpush.xpose.msk.msra.mxu3 %vm389_vm6, %v1765_v52  ;;  %2835 = vmatpush.xpose.msk.msrb.mxu2 %vm389_vm6, %v2208_v48  ;;  %v1702_v47 = vsel %vm1699_vm8, %v1701_v46, %v1697_v2  ;;  %vm1711_vm12 = vmor %vm1709_vm10, %vm1710_vm9 }
 0xceb   :  { %v1706_v53 = vsub.f32 1.0, %v1705_v29  ;;  %v1703_v54 = vmul.f32 %v3811_v15, %v1702_v47 }
 0xced   :  { %v1707_v4 = vmul.f32 %v3021_v43, %v1706_v53  ;;  %2806 = vmatmul.msk.f32.gmra.mxu2 %vm434_vm11, %v1703_v54 }
 0xcee   :  { %2809 = vmatpush.xpose.msk.msra.mxu3 %vm389_vm6, %v1763_v34 }
 0xcef   :  { %v1708_v39 = vadd.f32 %v3021_v43, %v1707_v4 }
 0xcf1   :  { %v1757_v59 = vpop.permute.xlu1 %1756  ;;  %v1712_v41 = vsel %vm1711_vm12, %v3021_v43, %v1708_v39  ;;  %v1759_v9 = vpop.permute.xlu2 %1758 }
 0xcf2   :  { %v1717_v6 = vsel %vm1714_vm13, %v1716_v8, %v1712_v41 }
 0xcf3   :  { %v1718_v60 = vmul.f32 %v3815_v35, %v1717_v6 }
 0xcf4   :  { %v1761_v63 = vpop.permute.xlu0 %1760 }
 0xcf5   :  { %2807 = vmatmul.msk.f32.gmra.mxu2 %vm434_vm11, %v1718_v60  ;;  %2810 = vmatpush.xpose.msk.msra.mxu3 %vm389_vm6, %v1761_v63 }
 0xcf9   :  { %v2206_v0 = vpop.permute.xlu1 %2205  ;;  %v2198_v3 = vpop.permute.xlu2 %2197 }
 0xcfa   :  { %2836 = vmatpush.xpose.msk.msrb.mxu2 %vm389_vm6, %v2206_v0 }
 0xcfc   :  { %v1755_v1 = vpop.permute.xlu0 %1754 }
 0xcfd   :  { %2811 = vmatmul.msk.f32.vlgmr.msra.gmra.mxu3 %vm389_vm6, %v1755_v1 }
 0xd01   :  { %v2204_v5 = vpop.permute.xlu1 %2203  ;;  %v2200_v17 = vpop.permute.xlu2 %2199 }
 0xd02   :  { %2837 = vmatpush.xpose.msk.msrb.mxu2 %vm389_vm6, %v2204_v5 }
 0xd04   :  { %v2004_v7 = vpop.permute.xlu0 %2003 }
 0xd05   :  { %2812 = vmatmul.msk.f32.gmra.mxu3 %vm389_vm6, %v1757_v59 }
 0xd06   :  { %2823 = vmatpush.xpose.msk.msrb.mxu3 %vm389_vm6, %v2004_v7 }
 0xd09   :  { %v1994_v15 = vpop.permute.xlu1 %1993  ;;  %v1998_v35 = vpop.permute.xlu2 %1997 }
 0xd0c   :  { %v2002_v12 = vpop.permute.xlu0 %2001 }
 0xd0d   :  { %2813 = vmatmul.msk.f32.gmra.mxu3 %vm389_vm6, %v1759_v9 }
 0xd0e   :  { %2824 = vmatpush.xpose.msk.msrb.mxu3 %vm389_vm6, %v2002_v12 }
 0xd11   :  { %v2202_v26 = vpop.permute.xlu1 %2201 }
 0xd14   :  { %v2000_v13 = vpop.permute.xlu0 %1999 }
 0xd15   :  { %2825 = vmatpush.xpose.msk.msrb.mxu3 %vm389_vm6, %v2000_v13 }
 0xd18   :  { %2826 = vmatmul.msk.f32.vlgmr.msrb.gmra.mxu3 %vm389_vm6, %v1994_v15 }
 0xd1c   :  { %v1996_v16 = vpop.permute.xlu0 %1995 }
 0xd20   :  { %2827 = vmatmul.msk.f32.gmra.mxu3 %vm389_vm6, %v1996_v16 }
 0xd28   :  { %2828 = vmatmul.msk.f32.gmra.mxu3 %vm389_vm6, %v1998_v35 }
 0xd68   :  { %v1745_v31 = vpop.f32.mrf.mxu2 }
 0xd69   :  { %2820 = vmatmul.msk.f32.vlgmr.msra.gmra.mxu2 %vm389_vm6, %v1745_v31 }
 0xd70   :  { %v1748_v10 = vpop.f32.mrf.mxu2 }
 0xd71   :  { %2821 = vmatmul.msk.f32.gmra.mxu2 %vm389_vm6, %v1748_v10 }
 0xd78   :  { %v1751_v18 = vpop.f32.mrf.mxu2 }
 0xd79   :  { %2822 = vmatmul.msk.f32.gmra.mxu2 %vm389_vm6, %v1751_v18 }
 0xd80   :  { %v1795_v45 = vpop.f32.mrf.mxu3 }
 0xd81   :  { %v1796_v21 = vadd.f32 %v1795_v45, %v3383_v50  ;;  %2838 = vmatmul.msk.f32.vlgmr.msrb.gmra.mxu2 %vm389_vm6, %v2198_v3 }
 0xd83   :  { %v1804_v24 = vsel %vm434_vm11, %v1796_v21, -inf }
 0xd84   :  { %1805 = vmax.xlane.f32.xlu0 %v1804_v24 }
 0xd88   :  { %v1798_v49 = vpop.f32.mrf.mxu3 }
 0xd89   :  { %v1799_v25 = vadd.f32 %v1798_v49, %v3387_v55  ;;  %2839 = vmatmul.msk.f32.gmra.mxu2 %vm389_vm6, %v2200_v17 }
 0xd8b   :  { %v1807_v51 = vsel %vm434_vm11, %v1799_v25, -inf }
 0xd8c   :  { %1808 = vmax.xlane.f32.xlu1 %v1807_v51 }
 0xd90   :  { %v1801_v27 = vpop.f32.mrf.mxu3 }
 0xd91   :  { %v1802_v30 = vadd.f32 %v1801_v27, %v3391_v61  ;;  %2840 = vmatmul.msk.f32.gmra.mxu2 %vm389_vm6, %v2202_v26 }
 0xd93   :  { %v1810_v22 = vsel %vm434_vm11, %v1802_v30, -inf }
 0xd94   :  { %1811 = vmax.xlane.f32.xlu2 %v1810_v22 }
 0xd9b   :  { %v2034_v32 = vpop.f32.mrf.mxu3 }
 0xd9c   :  { %v2035_v33 = vadd.f32 %v2034_v32, %v3383_v50 }
 0xd9e   :  { %v2043_v34 = vsel %vm434_vm11, %v2035_v33, -inf }
 0xd9f   :  { %2044 = vmax.xlane.f32.xlu1 %v2043_v34 }
 0xda3   :  { %v2037_v23 = vpop.f32.mrf.mxu3 }
 0xda4   :  { %v2038_v36 = vadd.f32 %v2037_v23, %v3387_v55 }
 0xda6   :  { %v2046_v38 = vsel %vm434_vm11, %v2038_v36, -inf }
 0xda7   :  { %2047 = vmax.xlane.f32.xlu0 %v2046_v38 }
 0xdab   :  { %v2040_v42 = vpop.f32.mrf.mxu3 }
 0xdac   :  { %v3880_v28 = vadd.f32 %v2040_v42, %v3391_v61 }
 0xdae   :  { %v2049_v40 = vsel %vm434_vm11, %v3880_v28, -inf }
 0xdaf   :  { %2050 = vmax.xlane.f32.xlu2 %v2049_v40 }
 0xdec   :  { %v3884_v62 = vpop.f32.mrf.mxu2 }
 0xdf4   :  { %v3886_v56 = vpop.f32.mrf.mxu2 }
 0xdf7   :  { %v1806_v43 = vpop.xlane.xlu0 %1805 }
 0xdf8   :  { %v1813_v46 = vsub.f32 %v1796_v21, %v1806_v43 }
 0xdfa   :  { %v1816_v29 = vmul.f32 1.442695, %v1813_v46 }
 0xdfc   :  { %3022 = vpow2.f32 %v1816_v29  ;;  %v3888_v48 = vpop.f32.mrf.mxu2 }
 0xdff   :  { %v1809_v52 = vpop.xlane.xlu1 %1808 }
 0xe00   :  { %v1814_v2 = vsub.f32 %v1799_v25, %v1809_v52 }
 0xe02   :  { %v3890_v47 = vpop.eup %3022  ;;  %v1818_v53 = vmul.f32 1.442695, %v1814_v2 }
 0xe03   :  { %v1822_v54 = vsel %vm434_vm11, %v3890_v47, 0.0 }
 0xe04   :  { %3024 = vpow2.f32 %v1818_v53  ;;  %v2238_v57 = vpop.f32.mrf.mxu2  ;;  %1823 = vadd.xlane.f32.xlu0 %v1822_v54 }
 0xe05   :  { %v2239_v4 = vadd.f32 %v2238_v57, %v3383_v50 }
 0xe07   :  { %v1812_v58 = vpop.xlane.xlu2 %1811  ;;  %v2247_v6 = vsel %vm434_vm11, %v2239_v4, -inf }
 0xe08   :  { %v1815_v39 = vsub.f32 %v1802_v30, %v1812_v58 }
 0xe0a   :  { %v3895_v8 = vpop.eup %3024  ;;  %v1820_v59 = vmul.f32 1.442695, %v1815_v39 }
 0xe0b   :  { %v1825_v41 = vsel %vm434_vm11, %v3895_v8, 0.0 }
 0xe0c   :  { %3026 = vpow2.f32 %v1820_v59  ;;  %v2241_v60 = vpop.f32.mrf.mxu2  ;;  %1826 = vadd.xlane.f32.xlu1 %v1825_v41  ;;  %2248 = vmax.xlane.f32.xlu0 %v2247_v6 }
 0xe0d   :  { %v2242_v63 = vadd.f32 %v2241_v60, %v3387_v55 }
 0xe0f   :  { %v2250_v0 = vsel %vm434_vm11, %v2242_v63, -inf }
 0xe10   :  { %2251 = vmax.xlane.f32.xlu2 %v2250_v0 }
 0xe12   :  { %v3902_v50 = vpop.eup %3026  ;;  %v2045_v1 = vpop.xlane.xlu1 %2044 }
 0xe13   :  { %v2052_v5 = vsub.f32 %v2035_v33, %v2045_v1  ;;  %v1828_v7 = vsel %vm434_vm11, %v3902_v50, 0.0 }
 0xe14   :  { %1829 = vadd.xlane.f32.xlu0 %v1828_v7  ;;  %v2244_v35 = vpop.f32.mrf.mxu2 }
 0xe15   :  { %v2055_v9 = vmul.f32 1.442695, %v2052_v5  ;;  %v3921_v31 = vadd.f32 %v2244_v35, %v3391_v61 }
 0xe17   :  { %3028 = vpow2.f32 %v2055_v9  ;;  %v2253_v10 = vsel %vm434_vm11, %v3921_v31, -inf }
 0xe1a   :  { %v2048_v12 = vpop.xlane.xlu0 %2047 }
 0xe1b   :  { %v2053_v3 = vsub.f32 %v2038_v36, %v2048_v12 }
 0xe1d   :  { %v3906_v13 = vpop.eup %3028  ;;  %v2057_v15 = vmul.f32 1.442695, %v2053_v3 }
 0xe1e   :  { %v2061_v55 = vsel %vm434_vm11, %v3906_v13, 0.0 }
 0xe1f   :  { %3030 = vpow2.f32 %v2057_v15  ;;  %2062 = vadd.xlane.f32.xlu0 %v2061_v55 }
 0xe22   :  { %v2051_v45 = vpop.xlane.xlu2 %2050 }
 0xe25   :  { %v3910_v17 = vpop.eup %3030  ;;  %1879 = vrot.lane.b32.xlu1 %v3795_v37, %s3192_s20 }
 0xe26   :  { %v2064_v16 = vsel %vm434_vm11, %v3910_v17, 0.0 }
 0xe27   :  { %2065 = vadd.xlane.f32.xlu0 %v2064_v16 }
 0xe28   :  { %2910 = vrot.lane.b32.xlu2 %v3793_v44, %s3192_s20 }
 0xe2d   :  { %2915 = vrot.lane.b32.xlu1 %v3793_v44, %s3194_s7 }
 0xe57   :  { %2254 = vmax.xlane.f32.xlu1 %v2253_v10 }
 0xe70   :  { %2920 = vrot.lane.b32.xlu1 %v3793_v44, %s3193_s0  ;;  %v2054_v44 = vsub.f32 %v3880_v28, %v2051_v45 }
 0xe72   :  { %v2059_v40 = vmul.f32 1.442695, %v2054_v44 }
 0xe77   :  { %v1824_v18 = vpop.xlane.xlu0 %1823 }
 0xe78   :  { %3032 = vrcp.f32 %v1824_v18  ;;  %v1842_v28 = vand.u32 2147483648, %v1824_v18  ;;  %vm1836_vm15 = vweird.f32 %v1824_v18  ;;  %v1840_v54 = vand.u32 2147483647, %v1824_v18 }
 0xe7a   :  { %v1843_v59 = vor.u32 1.1754944e-38, %v1842_v28  ;;  %vm1841_vm2 = vcmp.eq.f32.partialorder %v1840_v54, 8.507059e+37 }
 0xe7e   :  { %v3033_v21 = vpop.eup %3032 }
 0xe7f   :  { %v1827_v24 = vpop.xlane.xlu1 %1826  ;;  %v2249_v49 = vpop.xlane.xlu0 %2248  ;;  %v1832_v51 = vmul.f32 %v3033_v21, %v1824_v18  ;;  %vm1837_vm14 = vweird.f32 %v3033_v21 }
 0xe80   :  { %3034 = vrcp.f32 %v1827_v24  ;;  %v2256_v25 = vsub.f32 %v2239_v4, %v2249_v49  ;;  %vm1838_vm1 = vmor %vm1836_vm15, %vm1837_vm14  ;;  %v1857_v0 = vand.u32 2147483648, %v1827_v24  ;;  %vm1851_vm4 = vweird.f32 %v1827_v24 }
 0xe81   :  { %v1833_v30 = vsub.f32 1.0, %v1832_v51  ;;  %v1855_v7 = vand.u32 2147483647, %v1827_v24 }
 0xe82   :  { %v2259_v26 = vmul.f32 1.442695, %v2256_v25  ;;  %v1858_v15 = vor.u32 1.1754944e-38, %v1857_v0 }
 0xe83   :  { %v2252_v27 = vpop.xlane.xlu2 %2251  ;;  %v1834_v34 = vmul.f32 %v3033_v21, %v1833_v30  ;;  %vm1856_vm7 = vcmp.eq.f32.partialorder %v1855_v7, 8.507059e+37 }
 0xe84   :  { %3036 = vpow2.f32 %v2259_v26  ;;  %v2257_v61 = vsub.f32 %v2242_v63, %v2252_v27 }
 0xe85   :  { %v1835_v46 = vadd.f32 %v3033_v21, %v1834_v34 }
 0xe86   :  { %v3035_v22 = vpop.eup %3034  ;;  %v2261_v32 = vmul.f32 1.442695, %v2257_v61 }
 0xe87   :  { %v3927_v33 = vpop.xlane.xlu0 %1829  ;;  %v1847_v23 = vmul.f32 %v3035_v22, %v1827_v24  ;;  %v1839_v4 = vsel %vm1838_vm1, %v3033_v21, %v1835_v46  ;;  %vm1852_vm3 = vweird.f32 %v3035_v22 }
 0xe88   :  { %3038 = vpow2.f32 %v2261_v32  ;;  %v1844_v41 = vsel %vm1841_vm2, %v1843_v59, %v1839_v4  ;;  %vm1853_vm5 = vmor %vm1851_vm4, %vm1852_vm3  ;;  %v1872_v35 = vand.u32 2147483648, %v3927_v33  ;;  %vm1866_vm9 = vweird.f32 %v3927_v33 }
 0xe89   :  { %3040 = vrcp.f32 %v3927_v33  ;;  %v1848_v29 = vsub.f32 1.0, %v1847_v23  ;;  %v1845_v5 = vmul.f32 %v3890_v47, %v1844_v41  ;;  %v1870_v18 = vand.u32 2147483647, %v3927_v33  ;;  %v2796_v23 = vld [vmem:[%s4109_s4 + $0x28] sm:$0xff] }
 0xe8a   :  { %v3931_v36 = vpop.eup %3036  ;;  %3042 = vpow2.f32 %v2059_v40  ;;  %v1873_v24 = vor.u32 1.1754944e-38, %v1872_v35  ;;  %1947 = vmatpush.msra.mxu1 %v2796_v23 }
 0xe8b   :  { %v2911_v38 = vpop.permute.xlu2 %2910  ;;  %v2265_v42 = vsel %vm434_vm11, %v3931_v36, 0.0  ;;  %v1849_v58 = vmul.f32 %v3035_v22, %v1848_v29  ;;  %vm1871_vm12 = vcmp.eq.f32.partialorder %v1870_v18, 8.507059e+37 }
 0xe8c   :  { %v2912_v43 = vunpack.i.l.bf16 %v2911_v38  ;;  %2266 = vadd.xlane.f32.xlu0 %v2265_v42  ;;  %v2913_v2 = vunpack.i.h.bf16 %v2911_v38 }
 0xe8d   :  { %v1850_v60 = vadd.f32 %v3035_v22, %v1849_v58 }
 0xe8e   :  { %v3935_v52 = vpop.eup %3038  ;;  %1910 = vmatpush.msra.mxu0 %v2912_v43 }
 0xe8f   :  { %v3041_v53 = vpop.eup %3040  ;;  %v2268_v57 = vsel %vm434_vm11, %v3935_v52, 0.0  ;;  %v1854_v3 = vsel %vm1853_vm5, %v3035_v22, %v1850_v60 }
 0xe90   :  { %2269 = vadd.xlane.f32.xlu2 %v2268_v57  ;;  %1911 = vmatpush.msra.mxu0 %v2913_v2  ;;  %v1862_v39 = vmul.f32 %v3041_v53, %v3927_v33  ;;  %v3940_v63 = vpop.eup %3042  ;;  %v1859_v55 = vsel %vm1856_vm7, %v1858_v15, %v1854_v3  ;;  %vm1867_vm8 = vweird.f32 %v3041_v53 }
 0xe91   :  { %v2067_v12 = vsel %vm434_vm11, %v3940_v63, 0.0  ;;  %v1860_v10 = vmul.f32 %v3895_v8, %v1859_v55  ;;  %vm1868_vm10 = vmor %vm1866_vm9, %vm1867_vm8 }
 0xe92   :  { %v1863_v6 = vsub.f32 1.0, %v1862_v39 }
 0xe94   :  { %v1864_v9 = vmul.f32 %v3041_v53, %v1863_v6 }
 0xe96   :  { %v1865_v16 = vadd.f32 %v3041_v53, %v1864_v9 }
 0xe97   :  { %v1880_v1 = vpop.permute.xlu1 %1879 }
 0xe98   :  { %1912 = vmatpush.msra.mxu0 %v1880_v1  ;;  %v1869_v21 = vsel %vm1868_vm10, %v3041_v53, %v1865_v16 }
 0xe99   :  { %2814 = vmatmul.msk.f32.vlgmr.msra.gmra.mxu0 %vm434_vm11, %v1845_v5  ;;  %v1874_v25 = vsel %vm1871_vm12, %v1873_v24, %v1869_v21 }
 0xe9a   :  { %2068 = vadd.xlane.f32.xlu1 %v2067_v12  ;;  %v1875_v51 = vmul.f32 %v3902_v50, %v1874_v25  ;;  %v2063_v50 = vpop.xlane.xlu0 %2062 }
 0xe9b   :  { %v2081_v28 = vand.u32 2147483648, %v2063_v50  ;;  %vm2075_vm14 = vweird.f32 %v2063_v50 }
 0xe9d   :  { %v2082_v57 = vor.u32 1.1754944e-38, %v2081_v28 }
 0xe9f   :  { %v2916_v47 = vpop.permute.xlu1 %2915 }
 0xea0   :  { %v2917_v45 = vunpack.i.l.bf16 %v2916_v47  ;;  %v2918_v49 = vunpack.i.h.bf16 %v2916_v47 }
 0xea1   :  { %2815 = vmatmul.msk.f32.gmra.mxu0 %vm434_vm11, %v1860_v10 }
 0xea2   :  { %2350 = vmatpush.msra.mxu3 %v2917_v45  ;;  %v2066_v44 = vpop.xlane.xlu0 %2065 }
 0xea3   :  { %v2096_v39 = vand.u32 2147483648, %v2066_v44  ;;  %vm2090_vm3 = vweird.f32 %v2066_v44  ;;  %v2094_v6 = vand.u32 2147483647, %v2066_v44 }
 0xea4   :  { %2351 = vmatpush.msra.mxu3 %v2918_v49 }
 0xea5   :  { %v2097_v1 = vor.u32 1.1754944e-38, %v2096_v39  ;;  %vm2095_vm5 = vcmp.eq.f32.partialorder %v2094_v6, 8.507059e+37  ;;  %v2797_v6 = vld [vmem:[%s4109_s4 + $0x30] sm:$0xff] }
 0xea6   :  { %2183 = vmatpush.msrb.mxu1 %v2797_v6 }
 0xea8   :  { %2115 = vrot.lane.b32.xlu2 %v3795_v37, %s3193_s0 }
 0xea9   :  { %2816 = vmatmul.msk.f32.gmra.mxu0 %vm434_vm11, %v1875_v51 }
 0xeca   :  { %v2255_v8 = vpop.xlane.xlu1 %2254 }
 0xecb   :  { %v2258_v26 = vsub.f32 %v3921_v31, %v2255_v8 }
 0xecd   :  { %v2263_v27 = vmul.f32 1.442695, %v2258_v26 }
 0xecf   :  { %3044 = vpow2.f32 %v2263_v27 }
 0xed0   :  { %3046 = vrcp.f32 %v2063_v50 }
 0xed1   :  { %3048 = vrcp.f32 %v2066_v44 }
 0xed5   :  { %v3956_v61 = vpop.eup %3044 }
 0xed6   :  { %v2271_v30 = vsel %vm434_vm11, %v3956_v61, 0.0  ;;  %v3047_v31 = vpop.eup %3046 }
 0xed7   :  { %2272 = vadd.xlane.f32.xlu0 %v2271_v30  ;;  %v2071_v34 = vmul.f32 %v3047_v31, %v2063_v50  ;;  %v3049_v42 = vpop.eup %3048  ;;  %vm2076_vm13 = vweird.f32 %v3047_v31 }
 0xed8   :  { %v2086_v43 = vmul.f32 %v3049_v42, %v2066_v44  ;;  %vm2077_vm15 = vmor %vm2075_vm14, %vm2076_vm13  ;;  %vm2091_vm2 = vweird.f32 %v3049_v42 }
 0xed9   :  { %v2072_v38 = vsub.f32 1.0, %v2071_v34  ;;  %vm2092_vm4 = vmor %vm2090_vm3, %vm2091_vm2 }
 0xeda   :  { %v2087_v29 = vsub.f32 1.0, %v2086_v43 }
 0xedb   :  { %v2073_v40 = vmul.f32 %v3047_v31, %v2072_v38 }
 0xedc   :  { %v2088_v54 = vmul.f32 %v3049_v42, %v2087_v29 }
 0xedd   :  { %v2074_v46 = vadd.f32 %v3047_v31, %v2073_v40 }
 0xede   :  { %v2089_v58 = vadd.f32 %v3049_v42, %v2088_v54 }
 0xedf   :  { %v2078_v53 = vsel %vm2077_vm15, %v3047_v31, %v2074_v46 }
 0xee0   :  { %v2093_v0 = vsel %vm2092_vm4, %v3049_v42, %v2089_v58 }
 0xee1   :  { %v2098_v5 = vsel %vm2095_vm5, %v2097_v1, %v2093_v0 }
 0xee2   :  { %v2921_v22 = vpop.permute.xlu1 %2920  ;;  %v2099_v7 = vmul.f32 %v3910_v17, %v2098_v5 }
 0xee3   :  { %v2922_v32 = vunpack.i.l.bf16 %v2921_v22  ;;  %v2923_v33 = vunpack.i.h.bf16 %v2921_v22 }
 0xee5   :  { %2146 = vmatpush.msrb.mxu0 %v2922_v32 }
 0xee7   :  { %2147 = vmatpush.msrb.mxu0 %v2923_v33 }
 0xeeb   :  { %2319 = vrot.lane.b32.xlu0 %v3795_v37, %s3194_s7  ;;  %v2079_v37 = vand.u32 2147483647, %v2063_v50 }
 0xeed   :  { %vm2080_vm1 = vcmp.eq.f32.partialorder %v2079_v37, 8.507059e+37 }
 0xeee   :  { %v2083_v4 = vsel %vm2080_vm1, %v2082_v57, %v2078_v53 }
 0xeef   :  { %v2084_v41 = vmul.f32 %v3906_v13, %v2083_v4 }
 0xeff   :  { %v2267_v24 = vpop.xlane.xlu0 %2266 }
 0xf00   :  { %v2285_v33 = vand.u32 2147483648, %v2267_v24  ;;  %vm2279_vm13 = vweird.f32 %v2267_v24  ;;  %v2283_v50 = vand.u32 2147483647, %v2267_v24 }
 0xf02   :  { %v2286_v23 = vor.u32 1.1754944e-38, %v2285_v33  ;;  %vm2284_vm15 = vcmp.eq.f32.partialorder %v2283_v50, 8.507059e+37 }
 0xf03   :  { %v3965_v2 = vpop.xlane.xlu2 %2269 }
 0xf04   :  { %v2300_v43 = vand.u32 2147483648, %v3965_v2  ;;  %vm2294_vm2 = vweird.f32 %v3965_v2  ;;  %v2298_v28 = vand.u32 2147483647, %v3965_v2 }
 0xf06   :  { %v2301_v54 = vor.u32 1.1754944e-38, %v2300_v43  ;;  %vm2299_vm4 = vcmp.eq.f32.partialorder %v2298_v28, 8.507059e+37 }
 0xf0b   :  { %v2116_v59 = vpop.permute.xlu2 %2115 }
 0xf0c   :  { %2148 = vmatpush.msrb.mxu0 %v2116_v59 }
 0xf0d   :  { %v2069_v60 = vpop.xlane.xlu1 %2068  ;;  %2829 = vmatmul.msk.f32.vlgmr.msrb.gmra.mxu0 %vm434_vm11, %v2084_v41 }
 0xf0e   :  { %3050 = vrcp.f32 %v2069_v60  ;;  %v2111_v13 = vand.u32 2147483648, %v2069_v60  ;;  %v2109_v16 = vand.u32 2147483647, %v2069_v60  ;;  %vm2105_vm8 = vweird.f32 %v2069_v60 }
 0xf0f   :  { %3052 = vrcp.f32 %v2267_v24 }
 0xf10   :  { %v2112_v47 = vor.u32 1.1754944e-38, %v2111_v13  ;;  %vm2110_vm10 = vcmp.eq.f32.partialorder %v2109_v16, 8.507059e+37  ;;  %3054 = vrcp.f32 %v3965_v2  ;;  %v4000_v16 = vld [vmem:[#allocation5 + $0x18] sm:$0x3] }
 0xf14   :  { %v3051_v9 = vpop.eup %3050 }
 0xf15   :  { %v2101_v12 = vmul.f32 %v3051_v9, %v2069_v60  ;;  %2830 = vmatmul.msk.f32.gmra.mxu0 %vm434_vm11, %v2099_v7  ;;  %vm2106_vm7 = vweird.f32 %v3051_v9  ;;  %v3053_v49 = vpop.eup %3052 }
 0xf16   :  { %v1914_v3 = vpop.f32.mrf.mxu0  ;;  %vm2107_vm9 = vmor %vm2105_vm8, %vm2106_vm7  ;;  %v2275_v25 = vmul.f32 %v3053_v49, %v2267_v24  ;;  %v3055_v26 = vpop.eup %3054  ;;  %vm2280_vm12 = vweird.f32 %v3053_v49 }
 0xf17   :  { %v2102_v15 = vsub.f32 1.0, %v2101_v12  ;;  %2817 = vmatmul.msk.f32.vlgmr.msra.gmra.mxu1 %vm389_vm6, %v1914_v3  ;;  %v2290_v30 = vmul.f32 %v3055_v26, %v3965_v2  ;;  %vm2281_vm14 = vmor %vm2279_vm13, %vm2280_vm12  ;;  %vm2295_vm1 = vweird.f32 %v3055_v26 }
 0xf18   :  { %v2276_v51 = vsub.f32 1.0, %v2275_v25  ;;  %vm2296_vm3 = vmor %vm2294_vm2, %vm2295_vm1 }
 0xf19   :  { %v2103_v55 = vmul.f32 %v3051_v9, %v2102_v15 }
 0xf1a   :  { %v2277_v27 = vmul.f32 %v3053_v49, %v2276_v51 }
 0xf1b   :  { %v2104_v35 = vadd.f32 %v3051_v9, %v2103_v55 }
 0xf1c   :  { %v2278_v22 = vadd.f32 %v3053_v49, %v2277_v27 }
 0xf1d   :  { %v2108_v10 = vsel %vm2107_vm9, %v3051_v9, %v2104_v35 }
 0xf1e   :  { %v1917_v18 = vpop.f32.mrf.mxu0  ;;  %v2113_v17 = vsel %vm2110_vm10, %v2112_v47, %v2108_v10  ;;  %v2282_v44 = vsel %vm2281_vm14, %v3053_v49, %v2278_v22 }
 0xf1f   :  { %2818 = vmatmul.msk.f32.gmra.mxu1 %vm389_vm6, %v1917_v18  ;;  %v2114_v45 = vmul.f32 %v3940_v63, %v2113_v17  ;;  %v2291_v63 = vsub.f32 1.0, %v2290_v30  ;;  %v2287_v38 = vsel %vm2284_vm15, %v2286_v23, %v2282_v44  ;;  %v2404_v18 = vperm.slane %v4000_v16, 0 }
 0xf20   :  { %v2288_v29 = vmul.f32 %v3931_v36, %v2287_v38 }
 0xf21   :  { %2831 = vmatmul.msk.f32.gmra.mxu0 %vm434_vm11, %v2114_v45  ;;  %v2292_v31 = vmul.f32 %v3055_v26, %v2291_v63 }
 0xf23   :  { %v2293_v40 = vadd.f32 %v3055_v26, %v2292_v31 }
 0xf25   :  { %v2297_v53 = vsel %vm2296_vm3, %v3055_v26, %v2293_v40 }
 0xf26   :  { %v1920_v21 = vpop.f32.mrf.mxu0  ;;  %v2302_v57 = vsel %vm2299_vm4, %v2301_v54, %v2297_v53  ;;  %v2850_v53 = vld [vmem:[%s4110_s5 + $0x38] sm:$0xff]  ;;  %v2849_v54 = vld [vmem:[%s4110_s5 + $0x30] sm:$0xff] }
 0xf27   :  { %2819 = vmatmul.msk.f32.gmra.mxu1 %vm389_vm6, %v1920_v21  ;;  %v2303_v59 = vmul.f32 %v3935_v52, %v2302_v57  ;;  %v2798_v52 = vld [vmem:[%s4109_s4 + $0x38] sm:$0xff]  ;;  %v2848_v57 = vld [vmem:[%s4110_s5 + $0x28] sm:$0xff] }
 0xf28   :  { %2387 = vmatpush.msra.mxu0 %v2798_v52  ;;  %2509 = vmatpush.msra.mxu1 %v2850_v53  ;;  %v2859_v53 = vld [vmem:[%s4111_s6 + $0x90] sm:$0xff] }
 0xf2a   :  { %2510 = vmatpush.msra.mxu1 %v2849_v54 }
 0xf2c   :  { %2511 = vmatpush.msra.mxu1 %v2848_v57  ;;  %v2858_v57 = vld [vmem:[%s4111_s6 + $0x88] sm:$0xff] }
 0xf4a   :  { %v2273_v8 = vpop.xlane.xlu0 %2272 }
 0xf4b   :  { %3056 = vrcp.f32 %v2273_v8  ;;  %v2315_v58 = vand.u32 2147483648, %v2273_v8  ;;  %vm2309_vm7 = vweird.f32 %v2273_v8  ;;  %v2313_v39 = vand.u32 2147483647, %v2273_v8 }
 0xf4d   :  { %v2316_v2 = vor.u32 1.1754944e-38, %v2315_v58  ;;  %vm2314_vm9 = vcmp.eq.f32.partialorder %v2313_v39, 8.507059e+37 }
 0xf51   :  { %v3057_v32 = vpop.eup %3056 }
 0xf52   :  { %v2305_v34 = vmul.f32 %v3057_v32, %v2273_v8  ;;  %vm2310_vm5 = vweird.f32 %v3057_v32 }
 0xf53   :  { %vm2311_vm8 = vmor %vm2309_vm7, %vm2310_vm5 }
 0xf54   :  { %v2306_v42 = vsub.f32 1.0, %v2305_v34 }
 0xf56   :  { %v2307_v37 = vmul.f32 %v3057_v32, %v2306_v42 }
 0xf58   :  { %v2308_v4 = vadd.f32 %v3057_v32, %v2307_v37 }
 0xf5a   :  { %v2312_v36 = vsel %vm2311_vm8, %v3057_v32, %v2308_v4  ;;  %v2847_v4 = vld [vmem:[%s4110_s5 + $0x20] sm:$0xff] }
 0xf5b   :  { %v2317_v41 = vsel %vm2314_vm9, %v2316_v2, %v2312_v36  ;;  %2512 = vmatpush.msra.mxu1 %v2847_v4 }
 0xf5c   :  { %v2318_v60 = vmul.f32 %v3956_v61, %v2317_v41 }
 0xf5d   :  { %v2320_v46 = vpop.permute.xlu0 %2319 }
 0xf5e   :  { %2352 = vmatpush.msra.mxu3 %v2320_v46 }
 0xf5f   :  { %2841 = vmatmul.msk.f32.vlgmr.msra.gmra.mxu3 %vm434_vm11, %v2288_v29 }
 0xf67   :  { %2842 = vmatmul.msk.f32.gmra.mxu3 %vm434_vm11, %v2303_v59 }
 0xf6f   :  { %2843 = vmatmul.msk.f32.gmra.mxu3 %vm434_vm11, %v2318_v60 }
 0xf8a   :  { %v2150_v0 = vpop.f32.mrf.mxu0 }
 0xf8b   :  { %2832 = vmatmul.msk.f32.vlgmr.msrb.gmra.mxu1 %vm389_vm6, %v2150_v0 }
 0xf92   :  { %v2153_v1 = vpop.f32.mrf.mxu0 }
 0xf93   :  { %2833 = vmatmul.msk.f32.gmra.mxu1 %vm389_vm6, %v2153_v1 }
 0xf94   :  { %v1949_v12 = vpop.f32.mrf.mxu1 }
 0xf95   :  { %v1985_v55 = vadd.f32 %v3884_v62, %v1949_v12 }
 0xf9c   :  { %v1952_v3 = vpop.f32.mrf.mxu1 }
 0xf9d   :  { %v1988_v21 = vadd.f32 %v3886_v56, %v1952_v3 }
 0xf9e   :  { %v2156_v5 = vpop.f32.mrf.mxu0 }
 0xf9f   :  { %2834 = vmatmul.msk.f32.gmra.mxu1 %vm389_vm6, %v2156_v5 }
 0xfa4   :  { %v1955_v15 = vpop.f32.mrf.mxu1 }
 0xfa5   :  { %v1991_v27 = vadd.f32 %v3888_v48, %v1955_v15  ;;  %v3079_v15 = vld [vmem:[#allocation5 + $0x10] sm:$0xff] }
 0xfe2   :  { %v2354_v7 = vpop.f32.mrf.mxu3 }
 0xfe3   :  { %2844 = vmatmul.msk.f32.vlgmr.msra.gmra.mxu0 %vm389_vm6, %v2354_v7 }
 0xfea   :  { %v2357_v61 = vpop.f32.mrf.mxu3 }
 0xfeb   :  { %2845 = vmatmul.msk.f32.gmra.mxu0 %vm389_vm6, %v2357_v61 }
 0xff2   :  { %v2360_v9 = vpop.f32.mrf.mxu3 }
 0xff3   :  { %2846 = vmatmul.msk.f32.gmra.mxu0 %vm389_vm6, %v2360_v9 }
0x1008   :  { %v2185_v13 = vpop.f32.mrf.mxu1 }
0x1009   :  { %v2194_v35 = vadd.f32 %v2185_v13, %v1985_v55  ;;  %v2474_v13 = vperm.slane %v3079_v15, 3 }
0x1010   :  { %v2188_v45 = vpop.f32.mrf.mxu1 }
0x1011   :  { %v2195_v49 = vadd.f32 %v2188_v45, %v1988_v21 }
0x101c   :  { %v2191_v26 = vpop.f32.mrf.mxu1 }
0x101d   :  { %v2196_v22 = vadd.f32 %v2191_v26, %v1991_v27 }
0x1060   :  { %v2389_v47 = vpop.f32.mrf.mxu0 }
0x1061   :  { %v2398_v10 = vadd.f32 %v2389_v47, %v2194_v35  ;;  %v2478_v47 = vperm.slane %v3079_v15, 4 }
0x1063   :  { %v2401_v17 = vadd.f32 %v2398_v10, %v3699_v11 }
0x1065   :  { %v2405_v24 = vadd.f32 %v2404_v18, %v2401_v17 }
0x1067   :  { %v2408_v25 = vsel %vm125_vm0, %v2405_v24, 0.0 }
0x1068   :  { %2409 = vadd.xlane.f32.xlu0 %v2408_v25  ;;  %v2392_v51 = vpop.f32.mrf.mxu0 }
0x1069   :  { %v2399_v8 = vadd.f32 %v2392_v51, %v2195_v49 }
0x106b   :  { %v2402_v62 = vadd.f32 %v2399_v8, %v3704_v20 }
0x106d   :  { %v2406_v30 = vadd.f32 %v2404_v18, %v2402_v62 }
0x106f   :  { %v2411_v63 = vsel %vm125_vm0, %v2406_v30, 0.0 }
0x1070   :  { %2412 = vadd.xlane.f32.xlu2 %v2411_v63  ;;  %v2395_v11 = vpop.f32.mrf.mxu0 }
0x1071   :  { %v2400_v32 = vadd.f32 %v2395_v11, %v2196_v22 }
0x1073   :  { %v2403_v56 = vadd.f32 %v2400_v32, %v3709_v19 }
0x1075   :  { %v4010_v33 = vadd.f32 %v2404_v18, %v2403_v56 }
0x1077   :  { %v2414_v50 = vsel %vm125_vm0, %v4010_v33, 0.0 }
0x1078   :  { %2415 = vadd.xlane.f32.xlu1 %v2414_v50 }
0x10db   :  { %v2410_v44 = vpop.xlane.xlu0 %2409 }
0x10dc   :  { %v2417_v20 = vmul.f32 %v2410_v44, %v3257_v14  ;;  %v2872_v44 = vld [vmem:[%s4111_s6 + $0xf8] sm:$0xff] }
0x10dd   :  { %2604 = vmatpush.msra.mxu2 %v2872_v44 }
0x10de   :  { %v2420_v31 = vsub.f32 %v2405_v24, %v2417_v20  ;;  %v2871_v20 = vld [vmem:[%s4111_s6 + $0xf0] sm:$0xff] }
0x10df   :  { %2605 = vmatpush.msra.mxu2 %v2871_v20 }
0x10e0   :  { %v2423_v48 = vmul.f32 %v2420_v31, %v2420_v31 }
0x10e2   :  { %v2426_v34 = vsel %vm125_vm0, %v2423_v48, 0.0  ;;  %v2869_v48 = vld [vmem:[%s4111_s6 + $0xe0] sm:$0xff] }
0x10e3   :  { %v2413_v23 = vpop.xlane.xlu2 %2412  ;;  %2427 = vadd.xlane.f32.xlu1 %v2426_v34  ;;  %v2868_v34 = vld [vmem:[%s4111_s6 + $0xd8] sm:$0xff] }
0x10e4   :  { %v2418_v38 = vmul.f32 %v2413_v23, %v3257_v14  ;;  %v2867_v23 = vld [vmem:[%s4111_s6 + $0xd0] sm:$0xff] }
0x10e6   :  { %v2421_v42 = vsub.f32 %v2406_v30, %v2418_v38  ;;  %v2866_v38 = vld [vmem:[%s4111_s6 + $0xc8] sm:$0xff] }
0x10e8   :  { %v2424_v40 = vmul.f32 %v2421_v42, %v2421_v42 }
0x10ea   :  { %v2429_v19 = vsel %vm125_vm0, %v2424_v40, 0.0  ;;  %v2864_v40 = vld [vmem:[%s4111_s6 + $0xb8] sm:$0xff] }
0x10eb   :  { %2430 = vadd.xlane.f32.xlu1 %v2429_v19  ;;  %v2416_v43 = vpop.xlane.xlu1 %2415  ;;  %v2863_v19 = vld [vmem:[%s4111_s6 + $0xb0] sm:$0xff] }
0x10ec   :  { %v2419_v46 = vmul.f32 %v2416_v43, %v3257_v14  ;;  %v2862_v43 = vld [vmem:[%s4111_s6 + $0xa8] sm:$0xff] }
0x10ee   :  { %v4020_v29 = vsub.f32 %v4010_v33, %v2419_v46  ;;  %v2861_v46 = vld [vmem:[%s4111_s6 + $0xa0] sm:$0xff] }
0x10f0   :  { %v2425_v28 = vmul.f32 %v4020_v29, %v4020_v29 }
0x10f2   :  { %v2432_v37 = vsel %vm125_vm0, %v2425_v28, 0.0  ;;  %v3080_v28 = vld [vmem:[%s4107_s2] sm:$0x3]  ;;  %s3195_s2 = smov [#allocation8]  }
0x10f3   :  { %2433 = vadd.xlane.f32.xlu0 %v2432_v37  ;;  %v2487_v37 = vperm.slane %v3080_v28, 1 }
0x1156   :  { %v2428_v58 = vpop.xlane.xlu1 %2427 }
0x1157   :  { %v2435_v39 = vmul.f32 %v2428_v58, %v3257_v14  ;;  %v2857_v58 = vld [vmem:[%s4111_s6 + $0x80] sm:$0xff] }
0x1159   :  { %v2438_v59 = vadd.f32 1e-05, %v2435_v39 }
0x115b   :  { %3058 = vrsqrt.f32 %v2438_v59  ;;  %vm2447_vm11 = vweird.f32 %v2438_v59 }
0x115e   :  { %v2431_v36 = vpop.xlane.xlu1 %2430 }
0x115f   :  { %v2436_v2 = vmul.f32 %v2431_v36, %v3257_v14 }
0x1161   :  { %v3059_v41 = vpop.eup %3058  ;;  %v2439_v6 = vadd.f32 1e-05, %v2436_v2 }
0x1162   :  { %v2442_v60 = vmul.f32 %v3059_v41, %v2438_v59  ;;  %vm2448_vm6 = vweird.f32 %v3059_v41 }
0x1163   :  { %3060 = vrsqrt.f32 %v2439_v6  ;;  %vm2449_vm10 = vmor %vm2447_vm11, %vm2448_vm6  ;;  %vm2457_vm13 = vweird.f32 %v2439_v6 }
0x1164   :  { %v2443_v52 = vmul.f32 %v3059_v41, %v2442_v60 }
0x1166   :  { %v2444_v0 = vmul.f32 0.5, %v2443_v52  ;;  %v2434_v1 = vpop.xlane.xlu0 %2433 }
0x1167   :  { %v2437_v5 = vmul.f32 %v2434_v1, %v3257_v14 }
0x1168   :  { %v2445_v7 = vsub.f32 1.5, %v2444_v0 }
0x1169   :  { %v3061_v61 = vpop.eup %3060  ;;  %v2440_v9 = vadd.f32 1e-05, %v2437_v5 }
0x116a   :  { %v2446_v12 = vmul.f32 %v3059_v41, %v2445_v7  ;;  %v2452_v3 = vmul.f32 %v3061_v61, %v2439_v6  ;;  %vm2458_vm12 = vweird.f32 %v3061_v61 }
0x116b   :  { %3062 = vrsqrt.f32 %v2440_v9  ;;  %vm2459_vm14 = vmor %vm2457_vm13, %vm2458_vm12  ;;  %vm2467_vm1 = vweird.f32 %v2440_v9 }
0x116c   :  { %v2450_v55 = vsel %vm2449_vm10, %v3059_v41, %v2446_v12  ;;  %v2453_v35 = vmul.f32 %v3061_v61, %v2452_v3 }
0x116d   :  { %v2471_v10 = vmul.f32 %v2450_v55, %v2420_v31  ;;  %v2870_v31 = vld [vmem:[%s4111_s6 + $0xe8] sm:$0xff] }
0x116e   :  { %v2454_v18 = vmul.f32 0.5, %v2453_v35  ;;  %2606 = vmatpush.msra.mxu2 %v2870_v31 }
0x116f   :  { %v2475_v17 = vmul.f32 %v2474_v13, %v2471_v10 }
0x1170   :  { %v2455_v45 = vsub.f32 1.5, %v2454_v18  ;;  %2607 = vmatpush.msra.mxu2 %v2869_v48 }
0x1171   :  { %v3063_v21 = vpop.eup %3062  ;;  %v2479_v24 = vadd.f32 %v2478_v47, %v2475_v17 }
0x1172   :  { %v2456_v49 = vmul.f32 %v3061_v61, %v2455_v45  ;;  %v2462_v25 = vmul.f32 %v3063_v21, %v2440_v9  ;;  %vm2468_vm15 = vweird.f32 %v3063_v21  ;;  %2608 = vmatpush.msra.mxu2 %v2868_v34 }
0x1173   :  { %2851 = vmatmul.msk.f32.vlgmr.msra.gmra.mxu1 %vm125_vm0, %v2479_v24  ;;  %vm2469_vm2 = vmor %vm2467_vm1, %vm2468_vm15 }
0x1174   :  { %v2460_v51 = vsel %vm2459_vm14, %v3061_v61, %v2456_v49  ;;  %v2463_v8 = vmul.f32 %v3063_v21, %v2462_v25  ;;  %2609 = vmatpush.msra.mxu2 %v2867_v23 }
0x1175   :  { %v2472_v62 = vmul.f32 %v2460_v51, %v2421_v42  ;;  %v2865_v42 = vld [vmem:[%s4111_s6 + $0xc0] sm:$0xff] }
0x1176   :  { %v2464_v26 = vmul.f32 0.5, %v2463_v8  ;;  %2610 = vmatpush.msra.mxu2 %v2866_v38 }
0x1177   :  { %v2476_v27 = vmul.f32 %v2474_v13, %v2472_v62 }
0x1178   :  { %v2465_v30 = vsub.f32 1.5, %v2464_v26  ;;  %2611 = vmatpush.msra.mxu2 %v2865_v42 }
0x1179   :  { %v2480_v22 = vadd.f32 %v2478_v47, %v2476_v27 }
0x117a   :  { %v2466_v63 = vmul.f32 %v3063_v21, %v2465_v30  ;;  %2612 = vmatpush.msra.mxu2 %v2864_v40 }
0x117b   :  { %2852 = vmatmul.msk.f32.gmra.mxu1 %vm125_vm0, %v2480_v22 }
0x117c   :  { %v2470_v11 = vsel %vm2469_vm2, %v3063_v21, %v2466_v63  ;;  %2613 = vmatpush.msra.mxu2 %v2863_v19 }
0x117d   :  { %v2473_v32 = vmul.f32 %v2470_v11, %v4020_v29  ;;  %v2860_v29 = vld [vmem:[%s4111_s6 + $0x98] sm:$0xff]  ;;  %s2688_s6 = sshll.u32 %s3195_s2, 4  ;;  %s2689_s6 = int_to_ptr.vmem [resolvable:$true] %s2688_s6 }
0x117e   :  { %2614 = vmatpush.msra.mxu2 %v2862_v43  ;;  %v2603_v43 = vperm.slane %v4000_v16, 1  ;;  %v2656_v16 = vld [vmem:[#allocation7 + $0x8] sm:$0xff] }
0x117f   :  { %v2477_v56 = vmul.f32 %v2474_v13, %v2473_v32 }
0x1180   :  { %2615 = vmatpush.msra.mxu2 %v2861_v46 }
0x1181   :  { %v2481_v50 = vadd.f32 %v2478_v47, %v2477_v56 }
0x1182   :  { %2616 = vmatpush.msra.mxu2 %v2860_v29 }
0x1183   :  { %2853 = vmatmul.msk.f32.gmra.mxu1 %vm125_vm0, %v2481_v50 }
0x1184   :  { %2617 = vmatpush.msra.mxu2 %v2859_v53 }
0x1186   :  { %2618 = vmatpush.msra.mxu2 %v2858_v57 }
0x1188   :  { %2619 = vmatpush.msra.mxu2 %v2857_v58 }
0x11f0   :  { %v2514_v54 = vpop.f32.mrf.mxu1 }
0x11f1   :  { %v2515_v4 = vadd.f32 %v2514_v54, %v2487_v37 }
0x11f3   :  { %v2854_v39 = vmul.f32 -1.702, %v2515_v4 }
0x11f5   :  { %v2529_v59 = vmul.f32 1.442695, %v2854_v39  ;;  %v2658_v39 = vld [vmem:[#allocation7 + $0x18] sm:$0xff] }
0x11f6   :  { %2674 = vmatpush.msrb.mxu3 %v2658_v39 }
0x11f7   :  { %3064 = vpow2.f32 %v2529_v59  ;;  %v2657_v59 = vld [vmem:[#allocation7 + $0x10] sm:$0xff] }
0x11f8   :  { %v2517_v36 = vpop.f32.mrf.mxu1  ;;  %2675 = vmatpush.msrb.mxu3 %v2657_v59 }
0x11f9   :  { %v2518_v2 = vadd.f32 %v2517_v36, %v2487_v37  ;;  %v2655_v36 = vld [vmem:[#allocation7] sm:$0xff] }
0x11fa   :  { %2676 = vmatpush.msrb.mxu3 %v2656_v16 }
0x11fb   :  { %v2855_v41 = vmul.f32 -1.702, %v2518_v2 }
0x11fc   :  { %2677 = vmatpush.msrb.mxu3 %v2655_v36 }
0x11fd   :  { %v3065_v6 = vpop.eup %3064  ;;  %v2531_v60 = vmul.f32 1.442695, %v2855_v41 }
0x11fe   :  { %v2535_v52 = vadd.f32 1.0, %v3065_v6 }
0x11ff   :  { %3066 = vpow2.f32 %v2531_v60 }
0x1200   :  { %3068 = vrcp.f32 %v2535_v52  ;;  %v2520_v0 = vpop.f32.mrf.mxu1  ;;  %v2549_v13 = vand.u32 2147483648, %v2535_v52  ;;  %v2547_v35 = vand.u32 2147483647, %v2535_v52  ;;  %vm2543_vm4 = vweird.f32 %v2535_v52 }
0x1201   :  { %v2521_v1 = vadd.f32 %v2520_v0, %v2487_v37 }
0x1202   :  { %v2550_v17 = vor.u32 1.1754944e-38, %v2549_v13  ;;  %vm2548_vm7 = vcmp.eq.f32.partialorder %v2547_v35, 8.507059e+37 }
0x1203   :  { %v2856_v5 = vmul.f32 -1.702, %v2521_v1 }
0x1205   :  { %v3067_v7 = vpop.eup %3066  ;;  %v2533_v61 = vmul.f32 1.442695, %v2856_v5 }
0x1206   :  { %v3069_v9 = vpop.eup %3068  ;;  %v2536_v12 = vadd.f32 1.0, %v3067_v7  ;;  %v3081_v7 = vld [vmem:[#allocation5] sm:$0xff] }
0x1207   :  { %v2539_v3 = vmul.f32 %v3069_v9, %v2535_v52  ;;  %3070 = vpow2.f32 %v2533_v61  ;;  %vm2544_vm3 = vweird.f32 %v3069_v9  ;;  %v2651_v61 = vperm.slane %v3081_v7, 6 }
0x1208   :  { %3072 = vrcp.f32 %v2536_v12  ;;  %vm2545_vm5 = vmor %vm2543_vm4, %vm2544_vm3  ;;  %v2564_v8 = vand.u32 2147483648, %v2536_v12  ;;  %v2562_v26 = vand.u32 2147483647, %v2536_v12  ;;  %vm2558_vm9 = vweird.f32 %v2536_v12 }
0x1209   :  { %v2540_v15 = vsub.f32 1.0, %v2539_v3 }
0x120a   :  { %v2565_v22 = vor.u32 1.1754944e-38, %v2564_v8  ;;  %vm2563_vm11 = vcmp.eq.f32.partialorder %v2562_v26, 8.507059e+37 }
0x120b   :  { %v2541_v55 = vmul.f32 %v3069_v9, %v2540_v15 }
0x120d   :  { %v3071_v47 = vpop.eup %3070  ;;  %v2542_v10 = vadd.f32 %v3069_v9, %v2541_v55 }
0x120e   :  { %v3073_v18 = vpop.eup %3072  ;;  %v2537_v45 = vadd.f32 1.0, %v3071_v47 }
0x120f   :  { %v2546_v21 = vsel %vm2545_vm5, %v3069_v9, %v2542_v10  ;;  %v2554_v24 = vmul.f32 %v3073_v18, %v2536_v12  ;;  %vm2559_vm8 = vweird.f32 %v3073_v18  ;;  %v2653_v12 = vperm.slane %v3081_v7, 7 }
0x1210   :  { %v2551_v49 = vsel %vm2548_vm7, %v2550_v17, %v2546_v21  ;;  %3074 = vrcp.f32 %v2537_v45  ;;  %vm2560_vm6 = vmor %vm2558_vm9, %vm2559_vm8  ;;  %v2579_v44 = vand.u32 2147483648, %v2537_v45  ;;  %v2577_v31 = vand.u32 2147483647, %v2537_v45 }
0x1211   :  { %v2583_v25 = vmul.f32 %v2551_v49, %v2515_v4  ;;  %v2555_v51 = vsub.f32 1.0, %v2554_v24  ;;  %vm2573_vm12 = vweird.f32 %v2537_v45 }
0x1212   :  { %v2580_v34 = vor.u32 1.1754944e-38, %v2579_v44  ;;  %vm2578_vm14 = vcmp.eq.f32.partialorder %v2577_v31, 8.507059e+37 }
0x1213   :  { %2620 = vmatmul.f32.vlgmr.msra.gmra.mxu2 %v2583_v25  ;;  %v2556_v62 = vmul.f32 %v3073_v18, %v2555_v51 }
0x1215   :  { %v2557_v27 = vadd.f32 %v3073_v18, %v2556_v62 }
0x1216   :  { %v3075_v30 = vpop.eup %3074 }
0x1217   :  { %v2569_v63 = vmul.f32 %v3075_v30, %v2537_v45  ;;  %v2561_v11 = vsel %vm2560_vm6, %v3073_v18, %v2557_v27  ;;  %vm2574_vm10 = vweird.f32 %v3075_v30 }
0x1218   :  { %v2566_v32 = vsel %vm2563_vm11, %v2565_v22, %v2561_v11  ;;  %vm2575_vm13 = vmor %vm2573_vm12, %vm2574_vm10 }
0x1219   :  { %v2570_v56 = vsub.f32 1.0, %v2569_v63  ;;  %v2584_v50 = vmul.f32 %v2566_v32, %v2518_v2 }
0x121b   :  { %v2571_v20 = vmul.f32 %v3075_v30, %v2570_v56  ;;  %2622 = vmatmul.f32.gmra.mxu2 %v2584_v50 }
0x121d   :  { %v2572_v48 = vadd.f32 %v3075_v30, %v2571_v20 }
0x121f   :  { %v2576_v23 = vsel %vm2575_vm13, %v3075_v30, %v2572_v48 }
0x1220   :  { %v2581_v38 = vsel %vm2578_vm14, %v2580_v34, %v2576_v23 }
0x1221   :  { %v2585_v42 = vmul.f32 %v2581_v38, %v2521_v1 }
0x1223   :  { %2624 = vmatmul.f32.gmra.mxu2 %v2585_v42 }
0x1296   :  { %v2621_v40 = vpop.f32.mrf.mxu2 }
0x129e   :  { %v2623_v19 = vpop.f32.mrf.mxu2 }
0x12a6   :  { %v2625_v46 = vpop.f32.mrf.mxu2 }
0x12a7   :  { %v2626_v29 = vadd.f32 %v2625_v46, %v2603_v43 }
0x12a9   :  { %v2628_v28 = vadd.f32 %v2626_v29, %v4010_v33 }
0x12ab   :  { %v2629_v37 = vsel %vm125_vm0, %v2628_v28, 0.0 }
0x12ac   :  { %2630 = vadd.xlane.f32.xlu1 %v2629_v37 }
0x131f   :  { %v2631_v53 = vpop.xlane.xlu1 %2630 }
0x1320   :  { %v2632_v54 = vmul.f32 %v2631_v53, %v3257_v14 }
0x1322   :  { %v2633_v57 = vsub.f32 %v2628_v28, %v2632_v54 }
0x1324   :  { %v2634_v4 = vmul.f32 %v2633_v57, %v2633_v57 }
0x1326   :  { %v2635_v58 = vsel %vm125_vm0, %v2634_v4, 0.0 }
0x1327   :  { %2636 = vadd.xlane.f32.xlu0 %v2635_v58 }
0x139a   :  { %v2637_v33 = vpop.xlane.xlu0 %2636 }
0x139b   :  { %v2638_v2 = vmul.f32 %v2637_v33, %v3257_v14 }
0x139d   :  { %v2639_v41 = vadd.f32 1e-05, %v2638_v2 }
0x139f   :  { %3076 = vrsqrt.f32 %v2639_v41  ;;  %vm2646_vm1 = vweird.f32 %v2639_v41 }
0x13a5   :  { %v3077_v6 = vpop.eup %3076 }
0x13a6   :  { %v2641_v60 = vmul.f32 %v3077_v6, %v2639_v41  ;;  %vm2647_vm15 = vweird.f32 %v3077_v6 }
0x13a7   :  { %vm2648_vm2 = vmor %vm2646_vm1, %vm2647_vm15 }
0x13a8   :  { %v2642_v52 = vmul.f32 %v3077_v6, %v2641_v60 }
0x13aa   :  { %v2643_v0 = vmul.f32 0.5, %v2642_v52 }
0x13ac   :  { %v2644_v1 = vsub.f32 1.5, %v2643_v0 }
0x13ae   :  { %v2645_v5 = vmul.f32 %v3077_v6, %v2644_v1 }
0x13b0   :  { %v2649_v9 = vsel %vm2648_vm2, %v3077_v6, %v2645_v5 }
0x13b1   :  { %v2650_v3 = vmul.f32 %v2649_v9, %v2633_v57 }
0x13b3   :  { %v2652_v15 = vmul.f32 %v2651_v61, %v2650_v3 }
0x13b5   :  { %v2654_v13 = vadd.f32 %v2653_v12, %v2652_v15 }
0x13b7   :  { %2873 = vmatmul.msk.f32.vlgmr.msrb.gmra.mxu3 %vm125_vm0, %v2654_v13 }
0x143a   :  { %v2679_v14 = vpop.f32.mrf.mxu3 }
0x143b   :  { %2682 = vst [vmem:[#allocation8] sm:$0xff] %v2679_v14 }
0x143c   :  { %2693 = dma.vmem_to_hbm [thread:$0]  %s2689_s6, 128, %s2691_s25, [#allocation4]  }
0x143d   :  { %3182 = dma.done.wait [#allocation4], 128  }
0x143e   :  { %3183 = vsyncadd [#allocation4], 4294967168 }
0x143f   :  { %2698 = vsyncpa [#allocation3], 1 }
0x1440   :  { %2699 = vsyncpa [#allocation6], 1 }
0x1441   :  { %2700 = vsyncpa [#allocation4], 1 }

</bundles_post_ra>
